<compile_context>
chip_gen: v7x
topology: tpu7x:2x2x1
jax: 0.10.0
libtpu: 0.0.40
codegen_flags: <defaults>
</compile_context>

<pallas_src>
import jax
import jax.numpy as jnp
from jax import lax
from jax.experimental import pallas as pl
from jax.experimental.pallas import tpu as pltpu

EPS = 1e-3


def _fused_kernel(x_ref, s_ref, w_ref, gamma_ref, beta_ref, o_ref):
    # x_ref:     (Cin, P)    f32  activations, channel-major (P = H*W, N == 1)
    # s_ref:     (Cin, 1)    f32  per-channel broadcast multiplier (x441)
    # w_ref:     (Cout, Cin) bf16 1x1-conv weight
    # gamma_ref: (1, Cout)   f32  BN affine weight
    # beta_ref:  (1, Cout)   f32  BN affine bias
    # o_ref:     (P, Cout)   f32  output, spatial-major (Cout on the lane axis)

    # elementwise broadcast multiply (VPU), then cast to bf16 for the MXU
    x = (x_ref[...] * s_ref[...]).astype(jnp.bfloat16)              # (Cin, P)

    # 1x1 conv == matmul over channels; contract Cin on both sides so the
    # result is (P, Cout) -> Cout is the lane dimension (lane-dense epilogue
    # and stores).  bf16 inputs, f32 accumulation on the MXU.
    y = lax.dot_general(
        x, w_ref[...],
        dimension_numbers=(((0,), (1,)), ((), ())),
        preferred_element_type=jnp.float32)                          # (P, Cout)

    # BatchNorm2d (training mode): batch statistics over the P axis per channel
    inv_p = 1.0 / y.shape[0]
    mean = jnp.sum(y, axis=0, keepdims=True) * inv_p                 # (1, Cout)
    diff = y - mean
    var = jnp.sum(diff * diff, axis=0, keepdims=True) * inv_p        # biased var
    scale = lax.rsqrt(var + EPS) * gamma_ref[...]                    # (1, Cout)

    o_ref[...] = diff * scale + beta_ref[...]


def mul_conv_bn(x_nchw, scale_nc11, w_bf16, gamma, beta):
    """x_nchw: (1, Cin, H, W) f32; scale_nc11: (1, Cin, 1, 1) f32;
    w_bf16: (Cout, Cin) bf16 (pre-stored low-precision parameter);
    gamma, beta: (Cout,) f32.  Returns (1, Cout, H, W) f32."""
    n, cin, h, w = x_nchw.shape
    cout = w_bf16.shape[0]
    assert n == 1, "channel-major flattening is only a free view for N == 1"
    p = h * w

    # free views (no transposes, no copies)
    x_cm = x_nchw.reshape(cin, p)                   # (Cin, P)
    s_col = scale_nc11.reshape(cin, 1)              # (Cin, 1)  (lane-pads to 128; harmless)
    gamma_row = gamma.reshape(1, cout)              # (1, Cout) lane-dense
    beta_row = beta.reshape(1, cout)                # (1, Cout) lane-dense

    flops = 2 * p * cin * cout
    bytes_accessed = (x_cm.size * 4 + s_col.size * 4 + w_bf16.size * 2
                      + gamma_row.size * 4 + beta_row.size * 4 + p * cout * 4)

    out_pc = pl.pallas_call(
        _fused_kernel,
        out_shape=jax.ShapeDtypeStruct((p, cout), jnp.float32),
        grid=(1,),
        in_specs=[
            pl.BlockSpec((cin, p), lambda i: (0, 0)),
            pl.BlockSpec((cin, 1), lambda i: (0, 0)),
            pl.BlockSpec((cout, cin), lambda i: (0, 0)),
            pl.BlockSpec((1, cout), lambda i: (0, 0)),
            pl.BlockSpec((1, cout), lambda i: (0, 0)),
        ],
        out_specs=pl.BlockSpec((p, cout), lambda i: (0, 0)),
        compiler_params=pltpu.CompilerParams(
            dimension_semantics=("arbitrary",),
        ),
        cost_estimate=pl.CostEstimate(
            flops=flops, transcendentals=cout, bytes_accessed=bytes_accessed),
    )(x_cm, s_col, w_bf16, gamma_row, beta_row)

    # (P, Cout) -> (1, Cout, H, W): tiny (~60 KB) transpose in the (jitted) wrapper
    return jnp.transpose(out_pc, (1, 0)).reshape(n, cout, h, w)


def _reference(x_nchw, scale_nc11, w_conv, gamma, beta):
    """Pure-JAX f32 reference of the PyTorch forward (training-mode BN)."""
    x = x_nchw * scale_nc11                                    # broadcast mul
    n, cin, h, w = x.shape
    cout = w_conv.shape[0]
    x_flat = jnp.transpose(x, (0, 2, 3, 1)).reshape(-1, cin)
    y = x_flat @ w_conv.reshape(cout, cin).T                   # 1x1 conv
    mean = jnp.mean(y, axis=0, keepdims=True)
    var = jnp.mean((y - mean) ** 2, axis=0, keepdims=True)
    yn = (y - mean) / jnp.sqrt(var + EPS) * gamma + beta
    return jnp.transpose(yn.reshape(n, h, w, cout), (0, 3, 1, 2))


if __name__ == "__main__":
    N, CIN, H, W = 1, 1824, 7, 7
    COUT = 304

    key = jax.random.PRNGKey(0)
    k1, k2, k3, k4, k5 = jax.random.split(key, 5)

    x436 = jax.random.normal(k1, (N, CIN, H, W), dtype=jnp.float32)
    x441 = jax.random.normal(k2, (1, CIN, 1, 1), dtype=jnp.float32)

    # deterministic parameter init (synthetic; not loaded from a checkpoint)
    w_conv = jax.random.normal(k3, (COUT, CIN, 1, 1), dtype=jnp.float32) * 0.02
    gamma = 1.0 + 0.1 * jax.random.normal(k4, (COUT,), dtype=jnp.float32)
    beta = 0.1 * jax.random.normal(k5, (COUT,), dtype=jnp.float32)

    # weight is a static model parameter -> stored once in bf16 (no per-call cast)
    w_bf16 = w_conv.reshape(COUT, CIN).astype(jnp.bfloat16)

    fused = jax.jit(mul_conv_bn)
    out = fused(x436, x441, w_bf16, gamma, beta)
    out = jax.block_until_ready(out)

    ref = _reference(x436, x441, w_conv, gamma, beta)
    assert out.shape == (N, COUT, H, W)
    # tolerance accounts for bf16 MXU inputs (f32 accumulation) vs the f32 reference
    assert jnp.allclose(out, ref, atol=2e-2, rtol=2e-2), "mismatch vs reference"

    print("KERNEL_OK")
</pallas_src>

<mosaic_0001>
module attributes {stable_mosaic.version = 11 : i64} {
  func.func @_fused_kernel(%arg0: i32, %arg1: memref<1824x49xf32, #tpu.memory_space<vmem>>, %arg2: memref<1824x1xf32, #tpu.memory_space<vmem>>, %arg3: memref<304x1824xbf16, #tpu.memory_space<vmem>>, %arg4: memref<1x304xf32, #tpu.memory_space<vmem>>, %arg5: memref<1x304xf32, #tpu.memory_space<vmem>>, %arg6: memref<49x304xf32, #tpu.memory_space<vmem>>) attributes {dimension_semantics = [#tpu.dimension_semantics<arbitrary>], iteration_bounds = array<i64: 1>, scalar_prefetch = 0 : i64, scratch_operands = 0 : i64, tpu.core_type = #tpu.core_type<tc>, window_params = [{pipeline_mode = #tpu.pipeline_mode<synchronous>, transform_indices = @transform_0, window_bounds = array<i64: 1824, 49>}, {pipeline_mode = #tpu.pipeline_mode<synchronous>, transform_indices = @transform_1, window_bounds = array<i64: 1824, 1>}, {pipeline_mode = #tpu.pipeline_mode<synchronous>, transform_indices = @transform_2, window_bounds = array<i64: 304, 1824>}, {pipeline_mode = #tpu.pipeline_mode<synchronous>, transform_indices = @transform_3, window_bounds = array<i64: 1, 304>}, {pipeline_mode = #tpu.pipeline_mode<synchronous>, transform_indices = @transform_4, window_bounds = array<i64: 1, 304>}, {pipeline_mode = #tpu.pipeline_mode<synchronous>, transform_indices = @transform_5, window_bounds = array<i64: 49, 304>}]} {
    %c0 = arith.constant 0 : index
    %c0_0 = arith.constant 0 : index
    %0 = vector.load %arg1[%c0, %c0_0] : memref<1824x49xf32, #tpu.memory_space<vmem>>, vector<1824x49xf32>
    %c0_1 = arith.constant 0 : index
    %c0_2 = arith.constant 0 : index
    %1 = vector.load %arg2[%c0_1, %c0_2] : memref<1824x1xf32, #tpu.memory_space<vmem>>, vector<1824x1xf32>
    %2 = vector.broadcast %1 : vector<1824x1xf32> to vector<1824x49xf32>
    %3 = arith.mulf %0, %2 : vector<1824x49xf32>
    %4 = arith.truncf %3 : vector<1824x49xf32> to vector<1824x49xbf16>
    %c0_3 = arith.constant 0 : index
    %c0_4 = arith.constant 0 : index
    %5 = vector.load %arg3[%c0_3, %c0_4] : memref<304x1824xbf16, #tpu.memory_space<vmem>>, vector<304x1824xbf16>
    %cst = arith.constant dense<0.000000e+00> : vector<49x304xf32>
    %6 = tpu.matmul %4, %5, %cst {dimension_numbers = #tpu.dot_dimension_numbers<[0], [1], [1], [0], [0, 1, 1, 0], [], []>} : vector<1824x49xbf16>, vector<304x1824xbf16>, vector<49x304xf32> -> vector<49x304xf32>
    %cst_5 = arith.constant dense<0.000000e+00> : vector<304xf32>
    %7 = vector.multi_reduction <add>, %6, %cst_5 [0] : vector<49x304xf32> to vector<304xf32>
    %8 = vector.shape_cast %7 : vector<304xf32> to vector<1x304xf32>
    %cst_6 = arith.constant 0.0204081628 : f32
    %9 = vector.broadcast %cst_6 : f32 to vector<1x304xf32>
    %10 = arith.mulf %8, %9 : vector<1x304xf32>
    %11 = vector.broadcast %10 : vector<1x304xf32> to vector<49x304xf32>
    %12 = arith.subf %6, %11 : vector<49x304xf32>
    %13 = arith.mulf %12, %12 : vector<49x304xf32>
    %cst_7 = arith.constant dense<0.000000e+00> : vector<304xf32>
    %14 = vector.multi_reduction <add>, %13, %cst_7 [0] : vector<49x304xf32> to vector<304xf32>
    %15 = vector.shape_cast %14 : vector<304xf32> to vector<1x304xf32>
    %cst_8 = arith.constant 0.0204081628 : f32
    %16 = vector.broadcast %cst_8 : f32 to vector<1x304xf32>
    %17 = arith.mulf %15, %16 : vector<1x304xf32>
    %cst_9 = arith.constant 1.000000e-03 : f32
    %18 = vector.broadcast %cst_9 : f32 to vector<1x304xf32>
    %19 = arith.addf %17, %18 : vector<1x304xf32>
    %20 = math.rsqrt %19 : vector<1x304xf32>
    %c0_10 = arith.constant 0 : index
    %c0_11 = arith.constant 0 : index
    %21 = vector.load %arg4[%c0_10, %c0_11] : memref<1x304xf32, #tpu.memory_space<vmem>>, vector<1x304xf32>
    %22 = arith.mulf %20, %21 : vector<1x304xf32>
    %23 = vector.broadcast %22 : vector<1x304xf32> to vector<49x304xf32>
    %24 = arith.mulf %12, %23 : vector<49x304xf32>
    %c0_12 = arith.constant 0 : index
    %c0_13 = arith.constant 0 : index
    %25 = vector.load %arg5[%c0_12, %c0_13] : memref<1x304xf32, #tpu.memory_space<vmem>>, vector<1x304xf32>
    %26 = vector.broadcast %25 : vector<1x304xf32> to vector<49x304xf32>
    %27 = arith.addf %24, %26 : vector<49x304xf32>
    %c0_14 = arith.constant 0 : index
    %c0_15 = arith.constant 0 : index
    %28 = vector.load %arg6[%c0_14, %c0_15] : memref<49x304xf32, #tpu.memory_space<vmem>>, vector<49x304xf32>
    tpu.vector_store %arg6[%c0_14, %c0_15], %27 {strides = array<i32>} : memref<49x304xf32, #tpu.memory_space<vmem>>, vector<49x304xf32>,
    return
  }
  func.func @transform_0(%arg0: i32) -> (i32, i32) {
    %c0_i32 = arith.constant 0 : i32
    %c0_i32_0 = arith.constant 0 : i32
    %c0_i32_1 = arith.constant 0 : i32
    return %c0_i32, %c0_i32_0 : i32, i32
  }
  func.func @transform_1(%arg0: i32) -> (i32, i32) {
    %c0_i32 = arith.constant 0 : i32
    %c0_i32_0 = arith.constant 0 : i32
    %c0_i32_1 = arith.constant 0 : i32
    return %c0_i32, %c0_i32_0 : i32, i32
  }
  func.func @transform_2(%arg0: i32) -> (i32, i32) {
    %c0_i32 = arith.constant 0 : i32
    %c0_i32_0 = arith.constant 0 : i32
    %c0_i32_1 = arith.constant 0 : i32
    return %c0_i32, %c0_i32_0 : i32, i32
  }
  func.func @transform_3(%arg0: i32) -> (i32, i32) {
    %c0_i32 = arith.constant 0 : i32
    %c0_i32_0 = arith.constant 0 : i32
    %c0_i32_1 = arith.constant 0 : i32
    return %c0_i32, %c0_i32_0 : i32, i32
  }
  func.func @transform_4(%arg0: i32) -> (i32, i32) {
    %c0_i32 = arith.constant 0 : i32
    %c0_i32_0 = arith.constant 0 : i32
    %c0_i32_1 = arith.constant 0 : i32
    return %c0_i32, %c0_i32_0 : i32, i32
  }
  func.func @transform_5(%arg0: i32) -> (i32, i32) {
    %c0_i32 = arith.constant 0 : i32
    %c0_i32_0 = arith.constant 0 : i32
    %c0_i32_1 = arith.constant 0 : i32
    return %c0_i32, %c0_i32_0 : i32, i32
  }
}

</mosaic_0001>

<bundles_post_ra>
// kernel: mul_conv_bn.1
= control target key start
LH: loop header
LB: loop body
LE: loop exit
PB: predicated region body
PF: predicated region fallthrough
CT: control target
= control target key end

     0   :  { %v6293_v0 = vmov 0   ;;  %vm3928_vm0 = vcmask 261120   ;;  %vm5083_vm1 = vcmask 1040384   ;;  %vm5105_vm2 = vcmask 392192   ;;  %s9385_s1 = inlined_call_operand.vmem [shape: f32[1824,1], index: 1, kind: input, shape index: {}]   ;;  %s9386_s0 = inlined_call_operand.vmem [shape: f32[1824,49], index: 0, kind: input, shape index: {}]   ;;  %s9387_s2 = inlined_call_operand.vmem [shape: bf16[304,1824], index: 2, kind: input, shape index: {}]   ;;  %s9388_s3 = inlined_call_operand.vmem [shape: f32[1,304], index: 3, kind: input, shape index: {}]   ;;  %s9389_s4 = inlined_call_operand.vmem [shape: f32[1,304], index: 4, kind: input, shape index: {}]   ;;  %s9390_s5 = inlined_call_operand.vmem [shape: f32[49,304], index: 5, kind: output, shape index: {}]  }
   0x1   :  { %5868 = vset.pattern.permute.xlu1 %v6293_v0  ;;  %5867 = vset.pattern.permute.xlu0 %v6293_v0  ;;  %v251_v1 = vld [vmem:[%s9385_s1 + $0x10] sm:$0xff]  ;;  %v249_v2 = vld [vmem:[%s9385_s1] sm:$0xff]  ;;  %v252_v3 = vld [vmem:[%s9385_s1 + $0x18] sm:$0xff]  ;;  %vm5117_vm3 = vcmask 385024  }
   0x2   :  { %489 = vperm.xlu1 %5868, %v251_v1   ;;  %479 = vperm.xlu0 %5867, %v249_v2   ;;  %v250_v4 = vld [vmem:[%s9385_s1 + $0x8] sm:$0xff]  ;;  %v253_v6 = vld [vmem:[%s9385_s1 + $0x20] sm:$0xff]  ;;  %v256_v7 = vld [vmem:[%s9385_s1 + $0x38] sm:$0xff] }
   0x3   :  { %v254_v5 = vld [vmem:[%s9385_s1 + $0x28] sm:$0xff]  ;;  %v255_v8 = vld [vmem:[%s9385_s1 + $0x30] sm:$0xff]  ;;  %v257_v10 = vld [vmem:[%s9385_s1 + $0x40] sm:$0xff] }
   0x4   :  { %v258_v9 = vld [vmem:[%s9385_s1 + $0x48] sm:$0xff]  ;;  %v260_v11 = vld [vmem:[%s9385_s1 + $0x58] sm:$0xff]  ;;  %v259_v12 = vld [vmem:[%s9385_s1 + $0x50] sm:$0xff] }
   0x5   :  { %v262_v13 = vld [vmem:[%s9385_s1 + $0x68] sm:$0xff]  ;;  %v261_v14 = vld [vmem:[%s9385_s1 + $0x60] sm:$0xff]  ;;  %v264_v15 = vld [vmem:[%s9385_s1 + $0x78] sm:$0xff] }
   0x6   :  { %494 = vperm.xlu1 %5868, %v252_v3   ;;  %484 = vperm.xlu0 %5867, %v250_v4   ;;  %v263_v16 = vld [vmem:[%s9385_s1 + $0x70] sm:$0xff]  ;;  %v266_v17 = vld [vmem:[%s9385_s1 + $0x88] sm:$0xff]  ;;  %v265_v18 = vld [vmem:[%s9385_s1 + $0x80] sm:$0xff] }
   0x7   :  { %v268_v19 = vld [vmem:[%s9385_s1 + $0x98] sm:$0xff]  ;;  %v267_v20 = vld [vmem:[%s9385_s1 + $0x90] sm:$0xff]  ;;  %v270_v21 = vld [vmem:[%s9385_s1 + $0xa8] sm:$0xff] }
   0x8   :  { %v269_v22 = vld [vmem:[%s9385_s1 + $0xa0] sm:$0xff]  ;;  %v272_v23 = vld [vmem:[%s9385_s1 + $0xb8] sm:$0xff]  ;;  %v271_v24 = vld [vmem:[%s9385_s1 + $0xb0] sm:$0xff] }
   0x9   :  { %v274_v25 = vld [vmem:[%s9385_s1 + $0xc8] sm:$0xff]  ;;  %v273_v26 = vld [vmem:[%s9385_s1 + $0xc0] sm:$0xff]  ;;  %v276_v27 = vld [vmem:[%s9385_s1 + $0xd8] sm:$0xff] }
   0xa   :  { %504 = vperm.xlu1 %5868, %v254_v5   ;;  %499 = vperm.xlu0 %5867, %v253_v6   ;;  %v275_v28 = vld [vmem:[%s9385_s1 + $0xd0] sm:$0xff]  ;;  %v278_v29 = vld [vmem:[%s9385_s1 + $0xe8] sm:$0xff]  ;;  %v277_v30 = vld [vmem:[%s9385_s1 + $0xe0] sm:$0xff] }
   0xb   :  { %v280_v31 = vld [vmem:[%s9385_s1 + $0xf8] sm:$0xff]  ;;  %v279_v32 = vld [vmem:[%s9385_s1 + $0xf0] sm:$0xff]  ;;  %v282_v33 = vld [vmem:[%s9385_s1 + $0x108] sm:$0xff] }
   0xc   :  { %v281_v34 = vld [vmem:[%s9385_s1 + $0x100] sm:$0xff]  ;;  %v284_v35 = vld [vmem:[%s9385_s1 + $0x118] sm:$0xff]  ;;  %v283_v36 = vld [vmem:[%s9385_s1 + $0x110] sm:$0xff] }
   0xd   :  { %v286_v37 = vld [vmem:[%s9385_s1 + $0x128] sm:$0xff]  ;;  %v285_v38 = vld [vmem:[%s9385_s1 + $0x120] sm:$0xff]  ;;  %v288_v39 = vld [vmem:[%s9385_s1 + $0x138] sm:$0xff] }
   0xe   :  { %514 = vperm.xlu1 %5868, %v256_v7   ;;  %509 = vperm.xlu0 %5867, %v255_v8   ;;  %v287_v40 = vld [vmem:[%s9385_s1 + $0x130] sm:$0xff]  ;;  %v290_v41 = vld [vmem:[%s9385_s1 + $0x148] sm:$0xff]  ;;  %v289_v42 = vld [vmem:[%s9385_s1 + $0x140] sm:$0xff] }
   0xf   :  { %v292_v43 = vld [vmem:[%s9385_s1 + $0x158] sm:$0xff]  ;;  %v291_v44 = vld [vmem:[%s9385_s1 + $0x150] sm:$0xff]  ;;  %v294_v45 = vld [vmem:[%s9385_s1 + $0x168] sm:$0xff] }
  0x10   :  { %v293_v46 = vld [vmem:[%s9385_s1 + $0x160] sm:$0xff]  ;;  %v296_v47 = vld [vmem:[%s9385_s1 + $0x178] sm:$0xff]  ;;  %v295_v48 = vld [vmem:[%s9385_s1 + $0x170] sm:$0xff] }
  0x11   :  { %v298_v49 = vld [vmem:[%s9385_s1 + $0x188] sm:$0xff]  ;;  %v297_v50 = vld [vmem:[%s9385_s1 + $0x180] sm:$0xff]  ;;  %v300_v51 = vld [vmem:[%s9385_s1 + $0x198] sm:$0xff] }
  0x12   :  { %524 = vperm.xlu1 %5868, %v258_v9   ;;  %519 = vperm.xlu0 %5867, %v257_v10   ;;  %v299_v52 = vld [vmem:[%s9385_s1 + $0x190] sm:$0xff]  ;;  %v302_v53 = vld [vmem:[%s9385_s1 + $0x1a8] sm:$0xff]  ;;  %v301_v54 = vld [vmem:[%s9385_s1 + $0x1a0] sm:$0xff] }
  0x13   :  { %v304_v55 = vld [vmem:[%s9385_s1 + $0x1b8] sm:$0xff]  ;;  %v303_v56 = vld [vmem:[%s9385_s1 + $0x1b0] sm:$0xff]  ;;  %v306_v57 = vld [vmem:[%s9385_s1 + $0x1c8] sm:$0xff] }
  0x14   :  { %v305_v58 = vld [vmem:[%s9385_s1 + $0x1c0] sm:$0xff]  ;;  %v307_v60 = vld [vmem:[%s9385_s1 + $0x1d0] sm:$0xff]  ;;  %v362_v62 = vld [vmem:[%s9385_s1 + $0x388] sm:$0xff] }
  0x15   :  { %v361_v59 = vld [vmem:[%s9385_s1 + $0x380] sm:$0xff]  ;;  %v363_v63 = vld [vmem:[%s9385_s1 + $0x390] sm:$0xff]  ;;  %v346_v0 = vld [vmem:[%s9385_s1 + $0x308] sm:$0xff] }
  0x16   :  { %534 = vperm.xlu1 %5868, %v260_v11   ;;  %529 = vperm.xlu0 %5867, %v259_v12   ;;  %v345_v61 = vld [vmem:[%s9385_s1 + $0x300] sm:$0xff]  ;;  %v347_v1 = vld [vmem:[%s9385_s1 + $0x310] sm:$0xff]  ;;  %v364_v2 = vld [vmem:[%s9385_s1 + $0x398] sm:$0xff] }
  0x17   :  { %v23_v4 = vld [vmem:[%s9386_s0 + $0x10] sm:$0xff]  ;;  %v24_v6 = vld [vmem:[%s9386_s0 + $0x18] sm:$0xff]  ;;  %v365_v7 = vld [vmem:[%s9385_s1 + $0x3a0] sm:$0xff] }
  0x18   :  { %v348_v8 = vld [vmem:[%s9385_s1 + $0x318] sm:$0xff] }
  0x1a   :  { %544 = vperm.xlu1 %5868, %v262_v13   ;;  %539 = vperm.xlu0 %5867, %v261_v14   ;;  %v349_v13 = vld [vmem:[%s9385_s1 + $0x320] sm:$0xff]  ;;  %v366_v14 = vld [vmem:[%s9385_s1 + $0x3a8] sm:$0xff] }
  0x1e   :  { %554 = vperm.xlu1 %5868, %v264_v15   ;;  %549 = vperm.xlu0 %5867, %v263_v16   ;;  %v408_v15 = vld [vmem:[%s9385_s1 + $0x4f8] sm:$0xff] }
  0x22   :  { %564 = vperm.xlu1 %5868, %v266_v17   ;;  %559 = vperm.xlu0 %5867, %v265_v18   ;;  %v367_v18 = vld [vmem:[%s9385_s1 + $0x3b0] sm:$0xff] }
  0x26   :  { %574 = vperm.xlu1 %5868, %v268_v19   ;;  %569 = vperm.xlu0 %5867, %v267_v20   ;;  %v350_v19 = vld [vmem:[%s9385_s1 + $0x328] sm:$0xff] }
  0x2a   :  { %584 = vperm.xlu1 %5868, %v270_v21   ;;  %579 = vperm.xlu0 %5867, %v269_v22   ;;  %v351_v22 = vld [vmem:[%s9385_s1 + $0x330] sm:$0xff] }
  0x2e   :  { %594 = vperm.xlu1 %5868, %v272_v23   ;;  %589 = vperm.xlu0 %5867, %v271_v24   ;;  %v368_v23 = vld [vmem:[%s9385_s1 + $0x3b8] sm:$0xff] }
  0x32   :  { %604 = vperm.xlu1 %5868, %v274_v25   ;;  %599 = vperm.xlu0 %5867, %v273_v26   ;;  %v369_v26 = vld [vmem:[%s9385_s1 + $0x3c0] sm:$0xff] }
  0x36   :  { %614 = vperm.xlu1 %5868, %v276_v27   ;;  %609 = vperm.xlu0 %5867, %v275_v28   ;;  %v352_v27 = vld [vmem:[%s9385_s1 + $0x338] sm:$0xff] }
  0x3a   :  { %624 = vperm.xlu1 %5868, %v278_v29   ;;  %619 = vperm.xlu0 %5867, %v277_v30   ;;  %v353_v30 = vld [vmem:[%s9385_s1 + $0x340] sm:$0xff] }
  0x3e   :  { %634 = vperm.xlu1 %5868, %v280_v31   ;;  %629 = vperm.xlu0 %5867, %v279_v32   ;;  %v370_v31 = vld [vmem:[%s9385_s1 + $0x3c8] sm:$0xff] }
  0x42   :  { %644 = vperm.xlu1 %5868, %v282_v33   ;;  %639 = vperm.xlu0 %5867, %v281_v34   ;;  %v371_v34 = vld [vmem:[%s9385_s1 + $0x3d0] sm:$0xff] }
  0x46   :  { %654 = vperm.xlu1 %5868, %v284_v35   ;;  %649 = vperm.xlu0 %5867, %v283_v36   ;;  %v354_v35 = vld [vmem:[%s9385_s1 + $0x348] sm:$0xff] }
  0x4a   :  { %664 = vperm.xlu1 %5868, %v286_v37   ;;  %659 = vperm.xlu0 %5867, %v285_v38   ;;  %v355_v38 = vld [vmem:[%s9385_s1 + $0x350] sm:$0xff] }
  0x4e   :  { %674 = vperm.xlu1 %5868, %v288_v39   ;;  %669 = vperm.xlu0 %5867, %v287_v40   ;;  %v372_v39 = vld [vmem:[%s9385_s1 + $0x3d8] sm:$0xff] }
  0x52   :  { %684 = vperm.xlu1 %5868, %v290_v41   ;;  %679 = vperm.xlu0 %5867, %v289_v42   ;;  %v373_v42 = vld [vmem:[%s9385_s1 + $0x3e0] sm:$0xff] }
  0x56   :  { %694 = vperm.xlu1 %5868, %v292_v43   ;;  %689 = vperm.xlu0 %5867, %v291_v44   ;;  %v356_v43 = vld [vmem:[%s9385_s1 + $0x358] sm:$0xff] }
  0x5a   :  { %704 = vperm.xlu1 %5868, %v294_v45   ;;  %699 = vperm.xlu0 %5867, %v293_v46   ;;  %v357_v46 = vld [vmem:[%s9385_s1 + $0x360] sm:$0xff] }
  0x5e   :  { %714 = vperm.xlu1 %5868, %v296_v47   ;;  %709 = vperm.xlu0 %5867, %v295_v48   ;;  %v374_v47 = vld [vmem:[%s9385_s1 + $0x3e8] sm:$0xff] }
  0x62   :  { %724 = vperm.xlu1 %5868, %v298_v49   ;;  %719 = vperm.xlu0 %5867, %v297_v50   ;;  %v375_v50 = vld [vmem:[%s9385_s1 + $0x3f0] sm:$0xff] }
  0x66   :  { %734 = vperm.xlu1 %5868, %v300_v51   ;;  %729 = vperm.xlu0 %5867, %v299_v52   ;;  %v358_v51 = vld [vmem:[%s9385_s1 + $0x368] sm:$0xff] }
  0x6a   :  { %744 = vperm.xlu1 %5868, %v302_v53   ;;  %739 = vperm.xlu0 %5867, %v301_v54   ;;  %v376_v54 = vld [vmem:[%s9385_s1 + $0x3f8] sm:$0xff] }
  0x6e   :  { %754 = vperm.xlu1 %5868, %v304_v55   ;;  %749 = vperm.xlu0 %5867, %v303_v56  }
  0x72   :  { %764 = vperm.xlu1 %5868, %v306_v57   ;;  %759 = vperm.xlu0 %5867, %v305_v58   ;;  %v360_v57 = vld [vmem:[%s9385_s1 + $0x378] sm:$0xff] }
  0x76   :  { %1039 = vperm.xlu1 %5868, %v361_v59   ;;  %769 = vperm.xlu0 %5867, %v307_v60   ;;  %v393_v60 = vld [vmem:[%s9385_s1 + $0x480] sm:$0xff] }
  0x7a   :  { %959 = vperm.xlu1 %5868, %v345_v61   ;;  %1044 = vperm.xlu0 %5867, %v362_v62  }
  0x7e   :  { %1049 = vperm.xlu1 %5868, %v363_v63   ;;  %964 = vperm.xlu0 %5867, %v346_v0   ;;  %v378_v63 = vld [vmem:[%s9385_s1 + $0x408] sm:$0xff] }
  0x81   :  { %v490_v3 = vpop.permute.xlu1 %489  ;;  %v6525_v5 = vpop.permute.xlu0 %479 }
  0x82   :  { %969 = vperm.xlu1 %5868, %v347_v1   ;;  %1054 = vperm.xlu0 %5867, %v364_v2   ;;  %v6536_v9 = vmul.f32 %v490_v3, %v23_v4  ;;  %v396_v2 = vld [vmem:[%s9385_s1 + $0x498] sm:$0xff] }
  0x85   :  { %v495_v10 = vpop.permute.xlu1 %494  ;;  %v6538_v11 = vpop.permute.xlu0 %484 }
  0x86   :  { %v6540_v12 = vmul.f32 %v495_v10, %v24_v6  ;;  %1059 = vperm.xlu1 %5868, %v365_v7   ;;  %974 = vperm.xlu0 %5867, %v348_v8   ;;  %v380_v6 = vld [vmem:[%s9385_s1 + $0x418] sm:$0xff]  ;;  %v398_v10 = vld [vmem:[%s9385_s1 + $0x4a8] sm:$0xff] }
  0x89   :  { %v6550_v16 = vpop.permute.xlu1 %504  ;;  %v6552_v17 = vpop.permute.xlu0 %499 }
  0x8a   :  { %979 = vperm.xlu1 %5868, %v349_v13   ;;  %1064 = vperm.xlu0 %5867, %v366_v14  }
  0x8d   :  { %v6560_v20 = vpop.permute.xlu1 %514  ;;  %v6562_v21 = vpop.permute.xlu0 %509 }
  0x8e   :  { %1069 = vperm.xlu1 %5868, %v367_v18   ;;  %984 = vperm.xlu0 %5867, %v350_v19   ;;  %v382_v18 = vld [vmem:[%s9385_s1 + $0x428] sm:$0xff] }
  0x91   :  { %v6570_v24 = vpop.permute.xlu1 %524  ;;  %v6572_v25 = vpop.permute.xlu0 %519 }
  0x92   :  { %989 = vperm.xlu1 %5868, %v351_v22   ;;  %1074 = vperm.xlu0 %5867, %v368_v23   ;;  %v400_v23 = vld [vmem:[%s9385_s1 + $0x4b8] sm:$0xff] }
  0x95   :  { %v6580_v28 = vpop.permute.xlu1 %534  ;;  %v6582_v29 = vpop.permute.xlu0 %529 }
  0x96   :  { %1079 = vperm.xlu1 %5868, %v369_v26   ;;  %994 = vperm.xlu0 %5867, %v352_v27  }
  0x99   :  { %v6590_v32 = vpop.permute.xlu1 %544  ;;  %v6592_v33 = vpop.permute.xlu0 %539 }
  0x9a   :  { %999 = vperm.xlu1 %5868, %v353_v30   ;;  %1084 = vperm.xlu0 %5867, %v370_v31   ;;  %v384_v30 = vld [vmem:[%s9385_s1 + $0x438] sm:$0xff] }
  0x9d   :  { %v6600_v36 = vpop.permute.xlu1 %554  ;;  %v6602_v37 = vpop.permute.xlu0 %549 }
  0x9e   :  { %1089 = vperm.xlu1 %5868, %v371_v34   ;;  %1004 = vperm.xlu0 %5867, %v354_v35   ;;  %v402_v35 = vld [vmem:[%s9385_s1 + $0x4c8] sm:$0xff] }
  0xa1   :  { %v6610_v40 = vpop.permute.xlu1 %564  ;;  %v6612_v41 = vpop.permute.xlu0 %559 }
  0xa2   :  { %1009 = vperm.xlu1 %5868, %v355_v38   ;;  %1094 = vperm.xlu0 %5867, %v372_v39  }
  0xa5   :  { %v6620_v44 = vpop.permute.xlu1 %574  ;;  %v6622_v45 = vpop.permute.xlu0 %569 }
  0xa6   :  { %1099 = vperm.xlu1 %5868, %v373_v42   ;;  %1014 = vperm.xlu0 %5867, %v356_v43   ;;  %v68_v42 = vld [vmem:[%s9386_s0 + $0x178] sm:$0xff]  ;;  %v67_v43 = vld [vmem:[%s9386_s0 + $0x170] sm:$0xff] }
  0xa9   :  { %v6630_v48 = vpop.permute.xlu1 %584  ;;  %v6632_v49 = vpop.permute.xlu0 %579 }
  0xaa   :  { %1019 = vperm.xlu1 %5868, %v357_v46   ;;  %1104 = vperm.xlu0 %5867, %v374_v47   ;;  %v386_v46 = vld [vmem:[%s9385_s1 + $0x448] sm:$0xff] }
  0xad   :  { %v6640_v52 = vpop.permute.xlu1 %594  ;;  %v6642_v53 = vpop.permute.xlu0 %589 }
  0xae   :  { %1109 = vperm.xlu1 %5868, %v375_v50   ;;  %1024 = vperm.xlu0 %5867, %v358_v51  }
  0xb1   :  { %v6647_v55 = vpop.permute.xlu1 %604  ;;  %v6649_v56 = vpop.permute.xlu0 %599 }
  0xb2   :  { %1114 = vperm.xlu0 %5867, %v376_v54  }
  0xb5   :  { %v6654_v58 = vpop.permute.xlu1 %614  ;;  %v6656_v59 = vpop.permute.xlu0 %609 }
  0xb6   :  { %1034 = vperm.xlu0 %5867, %v360_v57   ;;  %v70_v57 = vld [vmem:[%s9386_s0 + $0x188] sm:$0xff] }
  0xb9   :  { %v6661_v61 = vpop.permute.xlu1 %624  ;;  %v6663_v62 = vpop.permute.xlu0 %619 }
  0xba   :  { %1199 = vperm.xlu0 %5867, %v393_v60   ;;  %v69_v60 = vld [vmem:[%s9386_s0 + $0x180] sm:$0xff] }
  0xbd   :  { %v6668_v0 = vpop.permute.xlu1 %634  ;;  %v6670_v1 = vpop.permute.xlu0 %629 }
  0xbe   :  { %1124 = vperm.xlu0 %5867, %v378_v63   ;;  %v404_v63 = vld [vmem:[%s9385_s1 + $0x4d8] sm:$0xff] }
  0xc1   :  { %v6675_v3 = vpop.permute.xlu1 %644  ;;  %v6677_v4 = vpop.permute.xlu0 %639 }
  0xc2   :  { %1214 = vperm.xlu0 %5867, %v396_v2  }
  0xc5   :  { %v6682_v7 = vpop.permute.xlu1 %654  ;;  %v6684_v8 = vpop.permute.xlu0 %649 }
  0xc6   :  { %1134 = vperm.xlu0 %5867, %v380_v6  }
  0xc9   :  { %v6689_v13 = vpop.permute.xlu1 %664  ;;  %v6691_v14 = vpop.permute.xlu0 %659 }
  0xca   :  { %9400 = vst [vmem:[#allocation2_spill] sm:$0xff] %v6689_v13  ;;  %9401 = vst [vmem:[#allocation3_spill] sm:$0xff] %v6691_v14  ;;  %1224 = vperm.xlu0 %5867, %v398_v10  }
  0xcd   :  { %v6696_v19 = vpop.permute.xlu1 %674  ;;  %v6698_v22 = vpop.permute.xlu0 %669 }
  0xce   :  { %9402 = vst [vmem:[#allocation4_spill] sm:$0xff] %v6696_v19  ;;  %9403 = vst [vmem:[#allocation5_spill] sm:$0xff] %v6698_v22  ;;  %1144 = vperm.xlu0 %5867, %v382_v18  }
  0xd1   :  { %v6703_v26 = vpop.permute.xlu1 %684  ;;  %v6705_v27 = vpop.permute.xlu0 %679 }
  0xd2   :  { %9404 = vst [vmem:[#allocation6_spill] sm:$0xff] %v6703_v26  ;;  %9405 = vst [vmem:[#allocation7_spill] sm:$0xff] %v6705_v27  ;;  %1234 = vperm.xlu0 %5867, %v400_v23  }
  0xd5   :  { %v6710_v31 = vpop.permute.xlu1 %694  ;;  %v6712_v34 = vpop.permute.xlu0 %689 }
  0xd6   :  { %9406 = vst [vmem:[#allocation8_spill] sm:$0xff] %v6710_v31  ;;  %9407 = vst [vmem:[#allocation9_spill] sm:$0xff] %v6712_v34  ;;  %1154 = vperm.xlu0 %5867, %v384_v30   ;;  %v72_v30 = vld [vmem:[%s9386_s0 + $0x198] sm:$0xff]  ;;  %v135_v34 = vld [vmem:[%s9386_s0 + $0x390] sm:$0xff] }
  0xd7   :  { %v136_v31 = vld [vmem:[%s9386_s0 + $0x398] sm:$0xff] }
  0xd9   :  { %v6717_v38 = vpop.permute.xlu1 %704  ;;  %v6719_v39 = vpop.permute.xlu0 %699 }
  0xda   :  { %9408 = vst [vmem:[#allocation10_spill] sm:$0xff] %v6717_v38  ;;  %9409 = vst [vmem:[#allocation11_spill] sm:$0xff] %v6719_v39  ;;  %1244 = vperm.xlu0 %5867, %v402_v35   ;;  %v71_v35 = vld [vmem:[%s9386_s0 + $0x190] sm:$0xff] }
  0xdd   :  { %v715_v47 = vpop.permute.xlu1 %714  ;;  %v710_v50 = vpop.permute.xlu0 %709 }
  0xde   :  { %v6730_v51 = vmul.f32 %v715_v47, %v68_v42  ;;  %v6732_v54 = vmul.f32 %v710_v50, %v67_v43  ;;  %1164 = vperm.xlu0 %5867, %v386_v46   ;;  %v388_v42 = vld [vmem:[%s9385_s1 + $0x458] sm:$0xff]  ;;  %v77_v43 = vld [vmem:[%s9386_s0 + $0x1c0] sm:$0xff] }
  0xe0   :  { %9410 = vst [vmem:[#allocation12_spill] sm:$0xff] %v6730_v51  ;;  %9411 = vst [vmem:[#allocation13_spill] sm:$0xff] %v6732_v54  ;;  %v133_v54 = vld [vmem:[%s9386_s0 + $0x380] sm:$0xff] }
  0xe1   :  { %v725_v6 = vpop.permute.xlu1 %724  ;;  %v720_v10 = vpop.permute.xlu0 %719 }
  0xe2   :  { %v6745_v18 = vmul.f32 %v725_v6, %v70_v57  ;;  %v6747_v23 = vmul.f32 %v720_v10, %v69_v60  ;;  %1254 = vperm.xlu0 %5867, %v404_v63   ;;  %v406_v60 = vld [vmem:[%s9385_s1 + $0x4e8] sm:$0xff] }
  0xe4   :  { %9412 = vst [vmem:[#allocation14_spill] sm:$0xff] %v6747_v23 }
  0xe5   :  { %v735_v46 = vpop.permute.xlu1 %734  ;;  %v730_v47 = vpop.permute.xlu0 %729 }
  0xe6   :  { %v6760_v50 = vmul.f32 %v735_v46, %v72_v30  ;;  %v6762_v57 = vmul.f32 %v730_v47, %v71_v35  ;;  %1174 = vperm.xlu0 %5867, %v388_v42   ;;  %v76_v30 = vld [vmem:[%s9386_s0 + $0x1b8] sm:$0xff]  ;;  %v75_v35 = vld [vmem:[%s9386_s0 + $0x1b0] sm:$0xff]  ;;  %v390_v42 = vld [vmem:[%s9385_s1 + $0x468] sm:$0xff] }
  0xe8   :  { %9413 = vst [vmem:[#allocation15_spill] sm:$0xff] %v6760_v50  ;;  %9414 = vst [vmem:[#allocation16_spill] sm:$0xff] %v6762_v57  ;;  %v122_v50 = vld [vmem:[%s9386_s0 + $0x328] sm:$0xff] }
  0xe9   :  { %v6769_v6 = vpop.permute.xlu1 %744  ;;  %v6771_v10 = vpop.permute.xlu0 %739 }
  0xea   :  { %9415 = vst [vmem:[#allocation17_spill] sm:$0xff] %v6769_v6  ;;  %9416 = vst [vmem:[#allocation18_spill] sm:$0xff] %v6771_v10  ;;  %1264 = vperm.xlu0 %5867, %v406_v60   ;;  %v78_v60 = vld [vmem:[%s9386_s0 + $0x1c8] sm:$0xff] }
  0xed   :  { %v755_v46 = vpop.permute.xlu1 %754  ;;  %v750_v47 = vpop.permute.xlu0 %749 }
  0xee   :  { %v6782_v2 = vmul.f32 %v755_v46, %v76_v30  ;;  %v6784_v63 = vmul.f32 %v750_v47, %v75_v35  ;;  %1184 = vperm.xlu0 %5867, %v390_v42   ;;  %v392_v47 = vld [vmem:[%s9385_s1 + $0x478] sm:$0xff] }
  0xf0   :  { %9417 = vst [vmem:[#allocation19_spill] sm:$0xff] %v6782_v2  ;;  %9418 = vst [vmem:[#allocation20_spill] sm:$0xff] %v6784_v63 }
  0xf1   :  { %v765_v30 = vpop.permute.xlu1 %764  ;;  %v760_v46 = vpop.permute.xlu0 %759 }
  0xf2   :  { %v6797_v35 = vmul.f32 %v765_v30, %v78_v60  ;;  %v6799_v42 = vmul.f32 %v760_v46, %v77_v43  ;;  %1274 = vperm.xlu0 %5867, %v408_v15   ;;  %v134_v43 = vld [vmem:[%s9386_s0 + $0x388] sm:$0xff]  ;;  %v309_v15 = vld [vmem:[%s9385_s1 + $0x1e0] sm:$0xff] }
  0xf4   :  { %9419 = vst [vmem:[#allocation21_spill] sm:$0xff] %v6797_v35  ;;  %9420 = vst [vmem:[#allocation22_spill] sm:$0xff] %v6799_v42 }
  0xf5   :  { %v1040_v39 = vpop.permute.xlu1 %1039  ;;  %v6806_v38 = vpop.permute.xlu0 %769 }
  0xf6   :  { %9421 = vst [vmem:[#allocation23_spill] sm:$0xff] %v6806_v38  ;;  %1194 = vperm.xlu0 %5867, %v392_v47   ;;  %v1729_v46 = vmul.f32 %v1040_v39, %v133_v54  ;;  %v311_v47 = vld [vmem:[%s9385_s1 + $0x1f0] sm:$0xff] }
  0xf9   :  { %v960_v60 = vpop.permute.xlu1 %959  ;;  %v1045_v30 = vpop.permute.xlu0 %1044 }
  0xfa   :  { %v1730_v51 = vmul.f32 %v1045_v30, %v134_v43  ;;  %779 = vperm.xlu0 %5867, %v309_v15  }
  0xfc   :  { %v1901_v42 = vpack.c.bf16 %v1730_v51, %v1729_v46  ;;  %v137_v51 = vld [vmem:[%s9386_s0 + $0x3a0] sm:$0xff] }
  0xfd   :  { %v1050_v35 = vpop.permute.xlu1 %1049  ;;  %v965_v38 = vpop.permute.xlu0 %964 }
  0xfe   :  { %789 = vperm.xlu0 %5867, %v311_v47   ;;  %2375 = vxpose.xlu1.c.b16.start [1/8] (narrow) %v1901_v42, 64  ;;  %v1731_v43 = vmul.f32 %v1050_v35, %v135_v34  ;;  %v138_v42 = vld [vmem:[%s9386_s0 + $0x3a8] sm:$0xff]  ;;  %v140_v35 = vld [vmem:[%s9386_s0 + $0x3b8] sm:$0xff] }
 0x101   :  { %v970_v39 = vpop.permute.xlu1 %969  ;;  %v1055_v54 = vpop.permute.xlu0 %1054 }
 0x102   :  { %v1732_v15 = vmul.f32 %v1055_v54, %v136_v31  ;;  %v139_v31 = vld [vmem:[%s9386_s0 + $0x3b0] sm:$0xff] }
 0x104   :  { %v1902_v30 = vpack.c.bf16 %v1732_v15, %v1731_v43 }
 0x105   :  { %v1060_v63 = vpop.permute.xlu1 %1059  ;;  %v975_v2 = vpop.permute.xlu0 %974 }
 0x106   :  { %2376 = vxpose.xlu1.c.b16.cont [2/8] (narrow) %v1902_v30, 64  ;;  %v1733_v27 = vmul.f32 %v1060_v63, %v137_v51  ;;  %v118_v63 = vld [vmem:[%s9386_s0 + $0x308] sm:$0xff] }
 0x109   :  { %v980_v46 = vpop.permute.xlu1 %979  ;;  %v1065_v47 = vpop.permute.xlu0 %1064 }
 0x10a   :  { %v1734_v26 = vmul.f32 %v1065_v47, %v138_v42  ;;  %v1714_v42 = vmul.f32 %v965_v38, %v118_v63  ;;  %v120_v47 = vld [vmem:[%s9386_s0 + $0x318] sm:$0xff] }
 0x10b   :  { %v1716_v63 = vmul.f32 %v975_v2, %v120_v47  ;;  %v124_v2 = vld [vmem:[%s9386_s0 + $0x338] sm:$0xff] }
 0x10c   :  { %v1903_v22 = vpack.c.bf16 %v1734_v26, %v1733_v27 }
 0x10d   :  { %v1070_v19 = vpop.permute.xlu1 %1069  ;;  %v985_v34 = vpop.permute.xlu0 %984 }
 0x10e   :  { %2377 = vxpose.xlu1.c.b16.cont [3/8] (narrow) %v1903_v22, 64  ;;  %v1735_v15 = vmul.f32 %v1070_v19, %v139_v31  ;;  %v117_v22 = vld [vmem:[%s9386_s0 + $0x300] sm:$0xff]  ;;  %v142_v31 = vld [vmem:[%s9386_s0 + $0x3c8] sm:$0xff]  ;;  %v1718_v23 = vmul.f32 %v985_v34, %v122_v50 }
 0x10f   :  { %v141_v19 = vld [vmem:[%s9386_s0 + $0x3c0] sm:$0xff] }
 0x111   :  { %v990_v54 = vpop.permute.xlu1 %989  ;;  %v1075_v43 = vpop.permute.xlu0 %1074 }
 0x112   :  { %v1736_v30 = vmul.f32 %v1075_v43, %v140_v35  ;;  %v1713_v35 = vmul.f32 %v960_v60, %v117_v22  ;;  %v119_v43 = vld [vmem:[%s9386_s0 + $0x310] sm:$0xff]  ;;  %v121_v60 = vld [vmem:[%s9386_s0 + $0x320] sm:$0xff] }
 0x113   :  { %v1715_v10 = vmul.f32 %v970_v39, %v119_v43  ;;  %v1717_v39 = vmul.f32 %v980_v46, %v121_v60  ;;  %v125_v46 = vld [vmem:[%s9386_s0 + $0x340] sm:$0xff]  ;;  %v5871_v60 = vld [vmem:[%s9387_s2 + $0x18] ss:$60 sps:$4 sm:$0xff]  }
 0x114   :  { %v1904_v26 = vpack.c.bf16 %v1736_v30, %v1735_v15  ;;  %v1893_v30 = vpack.c.bf16 %v1714_v42, %v1713_v35 }
 0x115   :  { %v1080_v27 = vpop.permute.xlu1 %1079  ;;  %v995_v51 = vpop.permute.xlu0 %994  ;;  %v1894_v13 = vpack.c.bf16 %v1716_v63, %v1715_v10  ;;  %v123_v10 = vld [vmem:[%s9386_s0 + $0x330] sm:$0xff]  ;;  %v1895_v34 = vpack.c.bf16 %v1718_v23, %v1717_v39 }
 0x116   :  { %2378 = vxpose.xlu1.c.b16.cont [4/8] (narrow) %v1904_v26, 64  ;;  %v1737_v26 = vmul.f32 %v1080_v27, %v141_v19  ;;  %v143_v27 = vld [vmem:[%s9386_s0 + $0x3d0] sm:$0xff]  ;;  %v1720_v42 = vmul.f32 %v995_v51, %v124_v2  ;;  %v1719_v35 = vmul.f32 %v990_v54, %v123_v10  ;;  %v128_v51 = vld [vmem:[%s9386_s0 + $0x358] sm:$0xff]  ;;  %v146_v54 = vld [vmem:[%s9386_s0 + $0x3e8] sm:$0xff] }
 0x117   :  { %v5872_v2 = vld [vmem:[%s9387_s2 + $0x94] ss:$60 sps:$4 sm:$0xff]  }
 0x119   :  { %v1000_v15 = vpop.permute.xlu1 %999  ;;  %v1085_v38 = vpop.permute.xlu0 %1084 }
 0x11a   :  { %v1738_v57 = vmul.f32 %v1085_v38, %v142_v31  ;;  %v126_v31 = vld [vmem:[%s9386_s0 + $0x348] sm:$0xff]  ;;  %v145_v38 = vld [vmem:[%s9386_s0 + $0x3e0] sm:$0xff] }
 0x11c   :  { %v1905_v6 = vpack.c.bf16 %v1738_v57, %v1737_v26  ;;  %2359 = vxpose.xlu0.c.b16.start [1/8] (narrow) %v1893_v30, 64  ;;  %v144_v57 = vld [vmem:[%s9386_s0 + $0x3d8] sm:$0xff]  ;;  %v1896_v30 = vpack.c.bf16 %v1720_v42, %v1719_v35 }
 0x11d   :  { %v1090_v22 = vpop.permute.xlu1 %1089  ;;  %v1005_v14 = vpop.permute.xlu0 %1004  ;;  %v5869_v26 = vld [vmem:[%s9387_s2 + $0x1c] ss:$60 sps:$4 sm:$0xff]  }
 0x11e   :  { %2379 = vxpose.xlu1.c.b16.cont [5/8] (narrow) %v1905_v6, 64  ;;  %v1739_v47 = vmul.f32 %v1090_v22, %v143_v27  ;;  %v1722_v63 = vmul.f32 %v1005_v14, %v126_v31  ;;  %v1721_v22 = vmul.f32 %v1000_v15, %v125_v46  ;;  %4211 = vmatprep.subr.bf16.mxu0 %v5869_v26  ;;  %v127_v14 = vld [vmem:[%s9386_s0 + $0x350] sm:$0xff]  ;;  %v130_v15 = vld [vmem:[%s9386_s0 + $0x368] sm:$0xff]  ;;  %v148_v46 = vld [vmem:[%s9386_s0 + $0x3f8] sm:$0xff] }
 0x11f   :  { %4212 = vmatpush1.bf16.xpose.msra.mxu0 %v5871_v60  ;;  %v147_v31 = vld [vmem:[%s9386_s0 + $0x3f0] sm:$0xff]  ;;  %v22_v26 = vld [vmem:[%s9386_s0 + $0x8] sm:$0xff] }
 0x120   :  { %2360 = vxpose.xlu0.c.b16.cont [2/8] (narrow) %v1894_v13, 64  ;;  %v1897_v39 = vpack.c.bf16 %v1722_v63, %v1721_v22  ;;  %4213 = vmatprep.subr.bf16.mxu0 %v5872_v2  ;;  %v21_v22 = vld [vmem:[%s9386_s0] sm:$0xff] }
 0x121   :  { %v1010_v50 = vpop.permute.xlu1 %1009  ;;  %v1095_v6 = vpop.permute.xlu0 %1094 }
 0x122   :  { %v1740_v19 = vmul.f32 %v1095_v6, %v144_v57  ;;  %v1723_v42 = vmul.f32 %v1010_v50, %v127_v14  ;;  %v5883_v50 = vld [vmem:[%s9387_s2 + $0x4] ss:$60 sps:$4 sm:$0xff]  }
 0x123   :  { %3998 = vmatprep.subr.bf16.mxu1 %v5883_v50  ;;  %v5881_v50 = vld [vmem:[%s9387_s2 + $0x1fc] ss:$60 sps:$4 sm:$0xff]  }
 0x124   :  { %v1906_v13 = vpack.c.bf16 %v1740_v19, %v1739_v47  ;;  %2361 = vxpose.xlu0.c.b16.cont [3/8] (narrow) %v1895_v34, 64  ;;  %v129_v47 = vld [vmem:[%s9386_s0 + $0x360] sm:$0xff] }
 0x125   :  { %v1100_v43 = vpop.permute.xlu1 %1099  ;;  %v1015_v23 = vpop.permute.xlu0 %1014 }
 0x126   :  { %2380 = vxpose.xlu1.c.b16.cont [6/8] (narrow) %v1906_v13, 64  ;;  %v1741_v10 = vmul.f32 %v1100_v43, %v145_v38  ;;  %v1724_v6 = vmul.f32 %v1015_v23, %v128_v51  ;;  %v5874_v13 = vld [vmem:[%s9387_s2 + $0x90] ss:$60 sps:$4 sm:$0xff]   ;;  %v5886_v43 = vld [vmem:[%s9387_s2] ss:$60 sps:$4 sm:$0xff]  }
 0x127   :  { %v5875_v51 = vld [vmem:[%s9387_s2 + $0x10c] ss:$60 sps:$4 sm:$0xff]   ;;  %3999 = vmatpush1.bf16.xpose.msra.mxu1 %v5886_v43  ;;  %4214 = vmatpush1.bf16.xpose.msra.mxu0 %v5874_v13  ;;  %v9422_v43 = vpack.c.bf16 %v6540_v12, %v6536_v9  ;;  %v32_v9 = vld [vmem:[%s9386_s0 + $0x58] sm:$0xff]  ;;  %v31_v12 = vld [vmem:[%s9386_s0 + $0x50] sm:$0xff] }
 0x128   :  { %2362 = vxpose.xlu0.c.b16.cont [4/8] (narrow) %v1896_v30, 64  ;;  %v1898_v38 = vpack.c.bf16 %v1724_v6, %v1723_v42  ;;  %v5889_v30 = vld [vmem:[%s9387_s2 + $0x7c] ss:$60 sps:$4 sm:$0xff]   ;;  %4215 = vmatprep.subr.bf16.mxu0 %v5875_v51  ;;  %v1618_v6 = vmul.f32 %v6538_v11, %v22_v26  ;;  %v1617_v42 = vmul.f32 %v6525_v5, %v21_v22  ;;  %v27_v5 = vld [vmem:[%s9386_s0 + $0x30] sm:$0xff]  ;;  %v34_v26 = vld [vmem:[%s9386_s0 + $0x68] sm:$0xff] }
 0x129   :  { %v1020_v27 = vpop.permute.xlu1 %1019  ;;  %v1105_v57 = vpop.permute.xlu0 %1104  ;;  %4000 = vmatprep.subr.bf16.mxu1 %v5889_v30  ;;  %v28_v11 = vld [vmem:[%s9386_s0 + $0x38] sm:$0xff] }
 0x12a   :  { %v1742_v34 = vmul.f32 %v1105_v57, %v146_v54  ;;  %v1725_v63 = vmul.f32 %v1020_v27, %v129_v47  ;;  %v5892_v27 = vld [vmem:[%s9387_s2 + $0x78] ss:$60 sps:$4 sm:$0xff]   ;;  %v26_v47 = vld [vmem:[%s9386_s0 + $0x28] sm:$0xff] }
 0x12c   :  { %v1907_v19 = vpack.c.bf16 %v1742_v34, %v1741_v10  ;;  %2363 = vxpose.xlu0.c.b16.cont [5/8] (narrow) %v1897_v39, 64  ;;  %v5877_v39 = vld [vmem:[%s9387_s2 + $0x108] ss:$60 sps:$4 sm:$0xff]   ;;  %v5895_v10 = vld [vmem:[%s9387_s2 + $0xf4] ss:$60 sps:$4 sm:$0xff]  }
 0x12d   :  { %v1025_v35 = vpop.permute.xlu0 %1024  ;;  %v1110_v54 = vpop.permute.xlu1 %1109 }
 0x12e   :  { %v1726_v23 = vmul.f32 %v1025_v35, %v130_v15  ;;  %2381 = vxpose.xlu1.c.b16.cont [7/8] (narrow) %v1907_v19, 64  ;;  %v1743_v2 = vmul.f32 %v1110_v54, %v147_v31  ;;  %v5878_v15 = vld [vmem:[%s9387_s2 + $0x184] ss:$60 sps:$4 sm:$0xff]   ;;  %v1845_v31 = vpack.c.bf16 %v1618_v6, %v1617_v42  ;;  %v5885_v54 = vld [vmem:[%s9387_s2 + $0x1f8] ss:$60 sps:$4 sm:$0xff]  }
 0x12f   :  { %v25_v19 = vld [vmem:[%s9386_s0 + $0x20] sm:$0xff]  ;;  %4001 = vmatpush1.bf16.xpose.msra.mxu1 %v5892_v27  ;;  %4216 = vmatpush1.bf16.xpose.msra.mxu0 %v5877_v39  ;;  %v5893_v39 = vld [vmem:[%s9387_s2 + $0x2ec] ss:$60 sps:$4 sm:$0xff]  }
 0x130   :  { %2364 = vxpose.xlu0.c.b16.cont [6/8] (narrow) %v1898_v38, 64  ;;  %v1899_v14 = vpack.c.bf16 %v1726_v23, %v1725_v63  ;;  %4002 = vmatprep.subr.bf16.mxu1 %v5895_v10  ;;  %v5880_v35 = vld [vmem:[%s9387_s2 + $0x180] ss:$60 sps:$4 sm:$0xff]   ;;  %v1621_v13 = vmul.f32 %v6552_v17, %v25_v19  ;;  %v30_v38 = vld [vmem:[%s9386_s0 + $0x48] sm:$0xff]  ;;  %v1623_v17 = vmul.f32 %v6562_v21, %v27_v5  ;;  %v5887_v63 = vld [vmem:[%s9387_s2 + $0x274] ss:$60 sps:$4 sm:$0xff]  }
 0x131   :  { %v1115_v60 = vpop.permute.xlu0 %1114  ;;  %4217 = vmatprep.subr.bf16.mxu0 %v5878_v15  ;;  %v29_v23 = vld [vmem:[%s9386_s0 + $0x40] sm:$0xff]  ;;  %v5898_v42 = vld [vmem:[%s9387_s2 + $0xf0] ss:$60 sps:$4 sm:$0xff]  }
 0x132   :  { %v1744_v57 = vmul.f32 %v1115_v60, %v148_v46  ;;  %v1622_v46 = vmul.f32 %v6550_v16, %v26_v47  ;;  %v1624_v16 = vmul.f32 %v6560_v20, %v28_v11  ;;  %v1626_v20 = vmul.f32 %v6570_v24, %v30_v38  ;;  %v33_v60 = vld [vmem:[%s9386_s0 + $0x60] sm:$0xff]  ;;  %v5901_v19 = vld [vmem:[%s9387_s2 + $0x16c] ss:$60 sps:$4 sm:$0xff]   ;;  %v395_v5 = vld [vmem:[%s9385_s1 + $0x490] sm:$0xff] }
 0x133   :  { %v1625_v21 = vmul.f32 %v6572_v25, %v29_v23  ;;  %v1627_v24 = vmul.f32 %v6582_v29, %v31_v12  ;;  %v36_v25 = vld [vmem:[%s9386_s0 + $0x78] sm:$0xff]  ;;  %v1629_v29 = vmul.f32 %v6592_v33, %v33_v60  ;;  %v5897_v15 = vld [vmem:[%s9387_s2 + $0x2e8] ss:$60 sps:$4 sm:$0xff]   ;;  %v359_v33 = vld [vmem:[%s9385_s1 + $0x370] sm:$0xff] }
 0x134   :  { %v1908_v34 = vpack.c.bf16 %v1744_v57, %v1743_v2  ;;  %2365 = vxpose.xlu0.c.b16.cont [7/8] (narrow) %v1899_v14, 64  ;;  %v1847_v51 = vpack.c.bf16 %v1622_v46, %v1621_v13  ;;  %v1848_v30 = vpack.c.bf16 %v1624_v16, %v1623_v17  ;;  %v1628_v2 = vmul.f32 %v6580_v28, %v32_v9  ;;  %v35_v14 = vld [vmem:[%s9386_s0 + $0x70] sm:$0xff]  ;;  %v5899_v47 = vld [vmem:[%s9387_s2 + $0x364] ss:$60 sps:$4 sm:$0xff]   ;;  %v5905_v46 = vld [vmem:[%s9387_s2 + $0x3dc] ss:$60 sps:$4 sm:$0xff]  }
 0x135   :  { %v1849_v22 = vpack.c.bf16 %v1626_v20, %v1625_v21  ;;  %v5891_v57 = vld [vmem:[%s9387_s2 + $0x270] ss:$60 sps:$4 sm:$0xff]   ;;  %v1630_v28 = vmul.f32 %v6590_v32, %v34_v26  ;;  %v1632_v6 = vmul.f32 %v6600_v36, %v36_v25  ;;  %v5904_v11 = vld [vmem:[%s9387_s2 + $0x168] ss:$60 sps:$4 sm:$0xff]   ;;  %v5913_v16 = vld [vmem:[%s9387_s2 + $0x25c] ss:$60 sps:$4 sm:$0xff]  }
 0x136   :  { %2382 = vxpose.xlu1.c.b16.end [8/8] (narrow) %v1908_v34, 64  ;;  %v1850_v27 = vpack.c.bf16 %v1628_v2, %v1627_v24  ;;  %v1631_v34 = vmul.f32 %v6602_v37, %v35_v14  ;;  %v394_v36 = vld [vmem:[%s9385_s1 + $0x488] sm:$0xff]  ;;  %v377_v37 = vld [vmem:[%s9385_s1 + $0x400] sm:$0xff]  ;;  %v5916_v9 = vld [vmem:[%s9387_s2 + $0x258] ss:$60 sps:$4 sm:$0xff]  }
 0x137   :  { %4218 = vmatpush1.bf16.xpose.msra.mxu0 %v5880_v35  ;;  %v1851_v10 = vpack.c.bf16 %v1630_v28, %v1629_v29  ;;  %4003 = vmatpush1.bf16.xpose.msra.mxu1 %v5898_v42  ;;  %v379_v35 = vld [vmem:[%s9385_s1 + $0x410] sm:$0xff]  ;;  %v5907_v13 = vld [vmem:[%s9387_s2 + $0x1e4] ss:$60 sps:$4 sm:$0xff]   ;;  %v5925_v2 = vld [vmem:[%s9387_s2 + $0x34c] ss:$60 sps:$4 sm:$0xff]  }
 0x138   :  { %4219 = vmatprep.subr.bf16.mxu0 %v5881_v50  ;;  %v1852_v32 = vpack.c.bf16 %v1632_v6, %v1631_v34  ;;  %4004 = vmatprep.subr.bf16.mxu1 %v5901_v19  ;;  %v5909_v50 = vld [vmem:[%s9387_s2 + $0x3d8] ss:$60 sps:$4 sm:$0xff]   ;;  %v397_v38 = vld [vmem:[%s9385_s1 + $0x4a0] sm:$0xff]  ;;  %v5915_v17 = vld [vmem:[%s9387_s2 + $0x450] ss:$60 sps:$4 sm:$0xff]  }
 0x139   :  { %v381_v23 = vld [vmem:[%s9385_s1 + $0x420] sm:$0xff]  ;;  %v399_v12 = vld [vmem:[%s9385_s1 + $0x4b0] sm:$0xff]  ;;  %v5929_v28 = vld [vmem:[%s9387_s2 + $0x5bc] ss:$60 sps:$4 sm:$0xff]  }
 0x13a   :  { %2263 = vxpose.xlu1.c.b16.start [1/8] (narrow) %v1845_v31, 64  ;;  %v5903_v31 = vld [vmem:[%s9387_s2 + $0x360] ss:$60 sps:$4 sm:$0xff]   ;;  %v5919_v20 = vld [vmem:[%s9387_s2 + $0x2d4] ss:$60 sps:$4 sm:$0xff]  }
 0x13b   :  { %v5921_v21 = vld [vmem:[%s9387_s2 + $0x4c8] ss:$60 sps:$4 sm:$0xff]   ;;  %v5927_v24 = vld [vmem:[%s9387_s2 + $0x540] ss:$60 sps:$4 sm:$0xff]   ;;  %v5940_v42 = vld [vmem:[%s9387_s2 + $0x438] ss:$60 sps:$4 sm:$0xff]  }
 0x13c   :  { %v401_v26 = vld [vmem:[%s9385_s1 + $0x4c0] sm:$0xff]  ;;  %v5943_v19 = vld [vmem:[%s9387_s2 + $0x4b4] ss:$60 sps:$4 sm:$0xff]  }
 0x13d   :  { %v385_v60 = vld [vmem:[%s9385_s1 + $0x440] sm:$0xff] }
 0x13e   :  { %2264 = vxpose.xlu1.c.b16.cont [2/8] (narrow) %v9422_v43, 64  ;;  %v5910_v43 = vld [vmem:[%s9387_s2 + $0x1e0] ss:$60 sps:$4 sm:$0xff]   ;;  %v5928_v14 = vld [vmem:[%s9387_s2 + $0x348] ss:$60 sps:$4 sm:$0xff]  }
 0x13f   :  { %4220 = vmatpush1.bf16.xpose.msra.mxu0 %v5885_v54  ;;  %4005 = vmatpush1.bf16.xpose.msra.mxu1 %v5904_v11  ;;  %v383_v54 = vld [vmem:[%s9385_s1 + $0x430] sm:$0xff]  ;;  %v5931_v29 = vld [vmem:[%s9387_s2 + $0x3c4] ss:$60 sps:$4 sm:$0xff]  }
 0x140   :  { %4221 = vmatprep.subr.bf16.mxu0 %v5887_v63  ;;  %4006 = vmatprep.subr.bf16.mxu1 %v5907_v13  ;;  %v5922_v63 = vld [vmem:[%s9387_s2 + $0x2d0] ss:$60 sps:$4 sm:$0xff]   ;;  %v405_v6 = vld [vmem:[%s9385_s1 + $0x4e0] sm:$0xff] }
 0x141   :  { %v389_v34 = vld [vmem:[%s9385_s1 + $0x460] sm:$0xff]  ;;  %v5946_v11 = vld [vmem:[%s9387_s2 + $0x4b0] ss:$60 sps:$4 sm:$0xff]  }
 0x142   :  { %2265 = vxpose.xlu1.c.b16.cont [3/8] (narrow) %v1847_v51, 64  ;;  %v5911_v51 = vld [vmem:[%s9387_s2 + $0x454] ss:$60 sps:$4 sm:$0xff]   ;;  %v5949_v13 = vld [vmem:[%s9387_s2 + $0x52c] ss:$60 sps:$4 sm:$0xff]  }
 0x146   :  { %2266 = vxpose.xlu1.c.b16.cont [4/8] (narrow) %v1848_v30, 64  ;;  %v5917_v30 = vld [vmem:[%s9387_s2 + $0x4cc] ss:$60 sps:$4 sm:$0xff]  }
 0x147   :  { %4222 = vmatpush1.bf16.xpose.msra.mxu0 %v5891_v57  ;;  %4007 = vmatpush1.bf16.xpose.msra.mxu1 %v5910_v43  ;;  %v403_v57 = vld [vmem:[%s9385_s1 + $0x4d0] sm:$0xff]  ;;  %v5952_v43 = vld [vmem:[%s9387_s2 + $0x528] ss:$60 sps:$4 sm:$0xff]  }
 0x148   :  { %4223 = vmatprep.subr.bf16.mxu0 %v5893_v39  ;;  %4008 = vmatprep.subr.bf16.mxu1 %v5913_v16  ;;  %v5933_v39 = vld [vmem:[%s9387_s2 + $0x5b8] ss:$60 sps:$4 sm:$0xff]   ;;  %v5958_v16 = vld [vmem:[%s9387_s2 + $0x5a0] ss:$60 sps:$4 sm:$0xff]  }
 0x14a   :  { %2267 = vxpose.xlu1.c.b16.cont [5/8] (narrow) %v1849_v22, 64  ;;  %v5923_v22 = vld [vmem:[%s9387_s2 + $0x544] ss:$60 sps:$4 sm:$0xff]  }
 0x14e   :  { %2268 = vxpose.xlu1.c.b16.cont [6/8] (narrow) %v1850_v27, 64  ;;  %v387_v27 = vld [vmem:[%s9385_s1 + $0x450] sm:$0xff] }
 0x14f   :  { %4224 = vmatpush1.bf16.xpose.msra.mxu0 %v5897_v15  ;;  %4009 = vmatpush1.bf16.xpose.msra.mxu1 %v5916_v9  ;;  %v5935_v15 = vld [vmem:[%s9387_s2 + $0x634] ss:$60 sps:$4 sm:$0xff]   ;;  %v5962_v9 = vld [vmem:[%s9387_s2 + $0x61c] ss:$60 sps:$4 sm:$0xff]  }
 0x150   :  { %4225 = vmatprep.subr.bf16.mxu0 %v5899_v47  ;;  %4010 = vmatprep.subr.bf16.mxu1 %v5919_v20  ;;  %v5941_v47 = vld [vmem:[%s9387_s2 + $0x6ac] ss:$60 sps:$4 sm:$0xff]   ;;  %v5968_v20 = vld [vmem:[%s9387_s2 + $0x694] ss:$60 sps:$4 sm:$0xff]  }
 0x152   :  { %2269 = vxpose.xlu1.c.b16.cont [7/8] (narrow) %v1851_v10, 64  ;;  %v5934_v10 = vld [vmem:[%s9387_s2 + $0x3c0] ss:$60 sps:$4 sm:$0xff]  }
 0x156   :  { %2270 = vxpose.xlu1.c.b16.end [8/8] (narrow) %v1852_v32, 64  ;;  %v5937_v32 = vld [vmem:[%s9387_s2 + $0x43c] ss:$60 sps:$4 sm:$0xff]  }
 0x157   :  { %4226 = vmatpush1.bf16.xpose.msra.mxu0 %v5903_v31  ;;  %4011 = vmatpush1.bf16.xpose.msra.mxu1 %v5922_v63  ;;  %v5945_v31 = vld [vmem:[%s9387_s2 + $0x6a8] ss:$60 sps:$4 sm:$0xff]  }
 0x158   :  { %4227 = vmatprep.subr.bf16.mxu0 %v5905_v46  ;;  %4012 = vmatprep.subr.bf16.mxu1 %v5925_v2  ;;  %v5947_v46 = vld [vmem:[%s9387_s2 + $0x724] ss:$60 sps:$4 sm:$0xff]  }
 0x159   :  { %v5976_v2 = vld [vmem:[%s9387_s2 + $0x708] ss:$60 sps:$4 sm:$0xff]  }
 0x15a   :  { %1029 = vperm.xlu1 %5868, %v359_v33   ;;  %v5939_v33 = vld [vmem:[%s9387_s2 + $0x630] ss:$60 sps:$4 sm:$0xff]  }
 0x15e   :  { %1204 = vperm.xlu1 %5868, %v394_v36   ;;  %v407_v36 = vld [vmem:[%s9385_s1 + $0x4f0] sm:$0xff] }
 0x15f   :  { %4228 = vmatpush1.bf16.xpose.msra.mxu0 %v5909_v50  ;;  %4013 = vmatpush1.bf16.xpose.msra.mxu1 %v5928_v14  ;;  %v5951_v50 = vld [vmem:[%s9387_s2 + $0x720] ss:$60 sps:$4 sm:$0xff]  }
 0x160   :  { %4229 = vmatprep.subr.bf16.mxu0 %v5911_v51  ;;  %4014 = vmatprep.subr.bf16.mxu1 %v5931_v29  ;;  %v5956_v51 = vld [vmem:[%s9387_s2 + $0x5a4] ss:$60 sps:$4 sm:$0xff]  }
 0x162   :  { %1119 = vperm.xlu1 %5868, %v377_v37   ;;  %v391_v37 = vld [vmem:[%s9385_s1 + $0x470] sm:$0xff] }
 0x166   :  { %1209 = vperm.xlu1 %5868, %v395_v5   ;;  %v308_v5 = vld [vmem:[%s9385_s1 + $0x1d8] sm:$0xff] }
 0x167   :  { %4230 = vmatpush1.bf16.xpose.msra.mxu0 %v5915_v17  ;;  %4015 = vmatpush1.bf16.xpose.msra.mxu1 %v5934_v10 }
 0x168   :  { %4231 = vmatprep.subr.bf16.mxu0 %v5917_v30  ;;  %4016 = vmatprep.subr.bf16.mxu1 %v5937_v32  ;;  %v1035_v30 = vpop.permute.xlu0 %1034  ;;  %v37_v32 = vld [vmem:[%s9386_s0 + $0x80] sm:$0xff] }
 0x16a   :  { %1129 = vperm.xlu1 %5868, %v379_v35   ;;  %v310_v35 = vld [vmem:[%s9385_s1 + $0x1e8] sm:$0xff] }
 0x16e   :  { %1219 = vperm.xlu1 %5868, %v397_v38   ;;  %v312_v38 = vld [vmem:[%s9385_s1 + $0x1f8] sm:$0xff] }
 0x16f   :  { %4232 = vmatpush1.bf16.xpose.msra.mxu0 %v5921_v21  ;;  %4017 = vmatpush1.bf16.xpose.msra.mxu1 %v5940_v42  ;;  %v5970_v21 = vld [vmem:[%s9387_s2 + $0x690] ss:$60 sps:$4 sm:$0xff]  }
 0x170   :  { %4233 = vmatprep.subr.bf16.mxu0 %v5923_v22  ;;  %4018 = vmatprep.subr.bf16.mxu1 %v5943_v19  ;;  %v1633_v19 = vmul.f32 %v6612_v41, %v37_v32 }
 0x172   :  { %1139 = vperm.xlu1 %5868, %v381_v23   ;;  %v5955_v23 = vld [vmem:[%s9387_s2 + $0x24] ss:$60 sps:$4 sm:$0xff]  }
 0x176   :  { %1229 = vperm.xlu1 %5868, %v399_v12   ;;  %v5964_v12 = vld [vmem:[%s9387_s2 + $0x618] ss:$60 sps:$4 sm:$0xff]  }
 0x177   :  { %4234 = vmatpush1.bf16.xpose.msra.mxu0 %v5927_v24  ;;  %4019 = vmatpush1.bf16.xpose.msra.mxu1 %v5946_v11  ;;  %v40_v11 = vld [vmem:[%s9386_s0 + $0x98] sm:$0xff] }
 0x178   :  { %4235 = vmatprep.subr.bf16.mxu0 %v5929_v28  ;;  %4020 = vmatprep.subr.bf16.mxu1 %v5949_v13  ;;  %v1636_v13 = vmul.f32 %v6620_v44, %v40_v11 }
 0x17a   :  { %1149 = vperm.xlu1 %5868, %v383_v54  }
 0x17e   :  { %1239 = vperm.xlu1 %5868, %v401_v26   ;;  %v7221_v26 = vpop.permute.xlu0 %1199 }
 0x17f   :  { %4236 = vmatpush1.bf16.xpose.msra.mxu0 %v5933_v39  ;;  %4021 = vmatpush1.bf16.xpose.msra.mxu1 %v5952_v43  ;;  %v42_v43 = vld [vmem:[%s9386_s0 + $0xa8] sm:$0xff] }
 0x180   :  { %v7113_v25 = vpop.trf.xlu1  ;;  %4237 = vmatprep.subr.bf16.mxu0 %v5935_v15  ;;  %4022 = vmatprep.subr.bf16.mxu1 %v5956_v51  ;;  %v38_v15 = vld [vmem:[%s9386_s0 + $0x88] sm:$0xff] }
 0x181   :  { %4243 = vmatprep.mubr.bf16.mxu0 %v7113_v25 }
 0x182   :  { %1159 = vperm.xlu1 %5868, %v385_v60   ;;  %v5974_v60 = vld [vmem:[%s9387_s2 + $0x70c] ss:$60 sps:$4 sm:$0xff]   ;;  %v1125_v24 = vpop.permute.xlu0 %1124 }
 0x184   :  { %v7203_v17 = vpop.trf.xlu1 }
 0x186   :  { %1249 = vperm.xlu1 %5868, %v403_v57   ;;  %v5982_v57 = vld [vmem:[%s9387_s2 + $0xc] ss:$60 sps:$4 sm:$0xff]  }
 0x187   :  { %4238 = vmatpush1.bf16.xpose.msra.mxu0 %v5939_v33  ;;  %4023 = vmatpush1.bf16.xpose.msra.mxu1 %v5958_v16 }
 0x188   :  { %4239 = vmatprep.subr.bf16.mxu0 %v5941_v47  ;;  %4024 = vmatprep.subr.bf16.mxu1 %v5962_v9  ;;  %v7211_v54 = vpop.trf.xlu1  ;;  %v1634_v47 = vmul.f32 %v6610_v40, %v38_v15  ;;  %v149_v40 = vld [vmem:[%s9386_s0 + $0x400] sm:$0xff] }
 0x189   :  { %v45_v15 = vld [vmem:[%s9386_s0 + $0xc0] sm:$0xff] }
 0x18a   :  { %1169 = vperm.xlu1 %5868, %v387_v27   ;;  %v7236_v27 = vpop.permute.xlu0 %1214  ;;  %v1853_v41 = vpack.c.bf16 %v1634_v47, %v1633_v19  ;;  %v1641_v19 = vmul.f32 %v6649_v56, %v45_v15  ;;  %v153_v56 = vld [vmem:[%s9386_s0 + $0x420] sm:$0xff] }
 0x18c   :  { %v7219_v63 = vpop.trf.xlu1 }
 0x18e   :  { %1259 = vperm.xlu1 %5868, %v405_v6   ;;  %v1135_v29 = vpop.permute.xlu0 %1134  ;;  %v132_v6 = vld [vmem:[%s9386_s0 + $0x378] sm:$0xff] }
 0x18f   :  { %4240 = vmatpush1.bf16.xpose.msra.mxu0 %v5945_v31  ;;  %4025 = vmatpush1.bf16.xpose.msra.mxu1 %v5964_v12  ;;  %v1728_v42 = vmul.f32 %v1035_v30, %v132_v6  ;;  %v1638_v30 = vmul.f32 %v6630_v48, %v42_v43 }
 0x190   :  { %4241 = vmatprep.subr.bf16.mxu0 %v5947_v46  ;;  %4026 = vmatprep.subr.bf16.mxu1 %v5968_v20  ;;  %v150_v46 = vld [vmem:[%s9386_s0 + $0x408] sm:$0xff]  ;;  %v44_v20 = vld [vmem:[%s9386_s0 + $0xb8] sm:$0xff] }
 0x191   :  { %v1746_v16 = vmul.f32 %v1125_v24, %v150_v46 }
 0x192   :  { %1179 = vperm.xlu1 %5868, %v389_v34   ;;  %v7242_v10 = vpop.permute.xlu0 %1224  ;;  %v131_v34 = vld [vmem:[%s9386_s0 + $0x370] sm:$0xff] }
 0x196   :  { %1269 = vperm.xlu1 %5868, %v407_v36  }
 0x197   :  { %4242 = vmatpush1.bf16.xpose.msra.mxu0 %v5951_v50  ;;  %4027 = vmatpush1.bf16.xpose.msra.mxu1 %v5970_v21  ;;  %v43_v21 = vld [vmem:[%s9386_s0 + $0xb0] sm:$0xff] }
 0x198   :  { %4282 = vmatprep.subr.bf16.mxu0 %v5955_v23  ;;  %4028 = vmatprep.subr.bf16.mxu1 %v5974_v60  ;;  %v1639_v6 = vmul.f32 %v6642_v53, %v43_v21  ;;  %v48_v53 = vld [vmem:[%s9386_s0 + $0xd8] sm:$0xff] }
 0x199   :  { %v1644_v46 = vmul.f32 %v6654_v58, %v48_v53 }
 0x19a   :  { %1189 = vperm.xlu1 %5868, %v391_v37   ;;  %v1145_v37 = vpop.permute.xlu0 %1144 }
 0x19e   :  { %774 = vperm.xlu1 %5868, %v308_v5   ;;  %v39_v5 = vld [vmem:[%s9386_s0 + $0x90] sm:$0xff]  ;;  %v7280_v23 = vpop.permute.xlu0 %1234 }
 0x19f   :  { %4029 = vmatpush1.bf16.xpose.msra.mxu1 %v5976_v2  ;;  %v1635_v50 = vmul.f32 %v6622_v45, %v39_v5  ;;  %v152_v2 = vld [vmem:[%s9386_s0 + $0x418] sm:$0xff] }
 0x1a0   :  { %v7226_v22 = vpop.trf.xlu1  ;;  %4069 = vmatprep.subr.bf16.mxu1 %v5982_v57  ;;  %v1640_v57 = vmul.f32 %v6640_v52, %v44_v20 }
 0x1a1   :  { %v1854_v12 = vpack.c.bf16 %v1636_v13, %v1635_v50  ;;  %v49_v13 = vld [vmem:[%s9386_s0 + $0xe0] sm:$0xff] }
 0x1a2   :  { %784 = vperm.xlu1 %5868, %v310_v35   ;;  %v1155_v48 = vpop.permute.xlu0 %1154  ;;  %v1645_v58 = vmul.f32 %v6663_v62, %v49_v13 }
 0x1a4   :  { %v7231_v14 = vpop.trf.xlu1 }
 0x1a6   :  { %794 = vperm.xlu1 %5868, %v312_v38   ;;  %v41_v38 = vld [vmem:[%s9386_s0 + $0xa0] sm:$0xff]  ;;  %v7314_v11 = vpop.permute.xlu0 %1244 }
 0x1a7   :  { %v1637_v44 = vmul.f32 %v6632_v49, %v41_v38  ;;  %v151_v49 = vld [vmem:[%s9386_s0 + $0x410] sm:$0xff] }
 0x1a8   :  { %v7238_v28 = vpop.trf.xlu1 }
 0x1a9   :  { %v1855_v24 = vpack.c.bf16 %v1638_v30, %v1637_v44  ;;  %v51_v30 = vld [vmem:[%s9386_s0 + $0xf0] sm:$0xff] }
 0x1aa   :  { %v1647_v20 = vmul.f32 %v6670_v1, %v51_v30  ;;  %v167_v1 = vld [vmem:[%s9386_s0 + $0x490] sm:$0xff] }
 0x1ac   :  { %v7240_v39 = vpop.trf.xlu1 }
 0x1d9   :  { %v1030_v33 = vpop.permute.xlu1 %1029 }
 0x1da   :  { %v1727_v36 = vmul.f32 %v1030_v33, %v131_v34  ;;  %v46_v34 = vld [vmem:[%s9386_s0 + $0xc8] sm:$0xff]  ;;  %v1748_v33 = vmul.f32 %v1135_v29, %v152_v2 }
 0x1db   :  { %v1642_v47 = vmul.f32 %v6647_v55, %v46_v34  ;;  %v154_v55 = vld [vmem:[%s9386_s0 + $0x428] sm:$0xff] }
 0x1dc   :  { %v1900_v31 = vpack.c.bf16 %v1728_v42, %v1727_v36  ;;  %v1856_v36 = vpack.c.bf16 %v1640_v57, %v1639_v6  ;;  %v1750_v43 = vmul.f32 %v1145_v37, %v154_v55  ;;  %v156_v37 = vld [vmem:[%s9386_s0 + $0x438] sm:$0xff]  ;;  %v166_v2 = vld [vmem:[%s9386_s0 + $0x488] sm:$0xff]  ;;  %v165_v6 = vld [vmem:[%s9386_s0 + $0x480] sm:$0xff] }
 0x1dd   :  { %v7264_v35 = vpop.permute.xlu1 %1204  ;;  %v1857_v29 = vpack.c.bf16 %v1642_v47, %v1641_v19 }
 0x1de   :  { %2366 = vxpose.xlu0.c.b16.end [8/8] (narrow) %v1900_v31, 64  ;;  %v47_v31 = vld [vmem:[%s9386_s0 + $0xd0] sm:$0xff]  ;;  %v1762_v15 = vmul.f32 %v7264_v35, %v166_v2  ;;  %v157_v35 = vld [vmem:[%s9386_s0 + $0x440] sm:$0xff]  ;;  %v162_v2 = vld [vmem:[%s9386_s0 + $0x468] sm:$0xff] }
 0x1e1   :  { %v1120_v51 = vpop.permute.xlu1 %1119 }
 0x1e2   :  { %v1745_v9 = vmul.f32 %v1120_v51, %v149_v40  ;;  %2279 = vxpose.xlu0.c.b16.start [1/8] (narrow) %v1853_v41, 64  ;;  %v1643_v40 = vmul.f32 %v6656_v59, %v47_v31  ;;  %v50_v41 = vld [vmem:[%s9386_s0 + $0xe8] sm:$0xff]  ;;  %v1165_v51 = vpop.permute.xlu0 %1164  ;;  %v52_v59 = vld [vmem:[%s9386_s0 + $0xf8] sm:$0xff] }
 0x1e4   :  { %v1909_v45 = vpack.c.bf16 %v1746_v16, %v1745_v9  ;;  %v1858_v16 = vpack.c.bf16 %v1644_v46, %v1643_v40  ;;  %v1646_v9 = vmul.f32 %v6661_v61, %v50_v41  ;;  %v155_v61 = vld [vmem:[%s9386_s0 + $0x430] sm:$0xff] }
 0x1e5   :  { %v7290_v60 = vpop.permute.xlu1 %1209 }
 0x1e6   :  { %2280 = vxpose.xlu0.c.b16.cont [2/8] (narrow) %v1854_v12, 64  ;;  %2391 = vxpose.xlu1.c.b16.start [1/8] (narrow) %v1909_v45, 64  ;;  %v1859_v62 = vpack.c.bf16 %v1646_v9, %v1645_v58  ;;  %v1648_v45 = vmul.f32 %v6668_v0, %v52_v59  ;;  %v7346_v21 = vpop.permute.xlu0 %1254  ;;  %v1763_v19 = vmul.f32 %v7290_v60, %v167_v1  ;;  %v171_v60 = vld [vmem:[%s9386_s0 + $0x4b0] sm:$0xff]  ;;  %v174_v59 = vld [vmem:[%s9386_s0 + $0x4c8] sm:$0xff] }
 0x1e8   :  { %v1860_v34 = vpack.c.bf16 %v1648_v45, %v1647_v20  ;;  %v1770_v20 = vmul.f32 %v7314_v11, %v174_v59  ;;  %v177_v11 = vld [vmem:[%s9386_s0 + $0x4e0] sm:$0xff] }
 0x1e9   :  { %v1130_v32 = vpop.permute.xlu1 %1129 }
 0x1ea   :  { %v1747_v42 = vmul.f32 %v1130_v32, %v151_v49  ;;  %2281 = vxpose.xlu0.c.b16.cont [3/8] (narrow) %v1855_v24, 64  ;;  %v1752_v24 = vmul.f32 %v1155_v48, %v156_v37  ;;  %v168_v48 = vld [vmem:[%s9386_s0 + $0x498] sm:$0xff] }
 0x1eb   :  { %v1764_v53 = vmul.f32 %v7236_v27, %v168_v48  ;;  %v172_v27 = vld [vmem:[%s9386_s0 + $0x4b8] sm:$0xff] }
 0x1ec   :  { %v1910_v52 = vpack.c.bf16 %v1748_v33, %v1747_v42  ;;  %v1761_v33 = vmul.f32 %v7221_v26, %v165_v6  ;;  %v158_v42 = vld [vmem:[%s9386_s0 + $0x448] sm:$0xff]  ;;  %v169_v26 = vld [vmem:[%s9386_s0 + $0x4a0] sm:$0xff]  ;;  %v1768_v9 = vmul.f32 %v7280_v23, %v172_v27  ;;  %v176_v23 = vld [vmem:[%s9386_s0 + $0x4d8] sm:$0xff] }
 0x1ed   :  { %v1220_v5 = vpop.permute.xlu1 %1219  ;;  %v1754_v31 = vmul.f32 %v1165_v51, %v158_v42 }
 0x1ee   :  { %2282 = vxpose.xlu0.c.b16.cont [4/8] (narrow) %v1856_v36, 64  ;;  %2392 = vxpose.xlu1.c.b16.cont [2/8] (narrow) %v1910_v52, 64  ;;  %v1175_v36 = vpop.permute.xlu0 %1174  ;;  %v1917_v47 = vpack.c.bf16 %v1762_v15, %v1761_v33  ;;  %v1765_v46 = vmul.f32 %v1220_v5, %v169_v26  ;;  %v159_v5 = vld [vmem:[%s9386_s0 + $0x450] sm:$0xff]  ;;  %v1772_v15 = vmul.f32 %v7346_v21, %v176_v23  ;;  %v180_v21 = vld [vmem:[%s9386_s0 + $0x4f8] sm:$0xff] }
 0x1ef   :  { %v164_v26 = vld [vmem:[%s9386_s0 + $0x478] sm:$0xff] }
 0x1f1   :  { %v1140_v50 = vpop.permute.xlu1 %1139 }
 0x1f2   :  { %v1749_v38 = vmul.f32 %v1140_v50, %v153_v56  ;;  %2283 = vxpose.xlu0.c.b16.cont [5/8] (narrow) %v1857_v29, 64  ;;  %v170_v56 = vld [vmem:[%s9386_s0 + $0x4a8] sm:$0xff]  ;;  %v1918_v29 = vpack.c.bf16 %v1764_v53, %v1763_v19  ;;  %v1265_v41 = vpop.permute.xlu0 %1264 }
 0x1f3   :  { %v1766_v50 = vmul.f32 %v7242_v10, %v170_v56  ;;  %v173_v10 = vld [vmem:[%s9386_s0 + $0x4c0] sm:$0xff] }
 0x1f4   :  { %v1911_v12 = vpack.c.bf16 %v1750_v43, %v1749_v38  ;;  %v160_v43 = vld [vmem:[%s9386_s0 + $0x458] sm:$0xff]  ;;  %v53_v56 = vld [vmem:[%s9386_s0 + $0x100] sm:$0xff] }
 0x1f5   :  { %v1230_v44 = vpop.permute.xlu1 %1229  ;;  %v1919_v38 = vpack.c.bf16 %v1766_v50, %v1765_v46  ;;  %v1756_v58 = vmul.f32 %v1175_v36, %v160_v43  ;;  %v179_v36 = vld [vmem:[%s9386_s0 + $0x4f0] sm:$0xff]  ;;  %v56_v43 = vld [vmem:[%s9386_s0 + $0x118] sm:$0xff] }
 0x1f6   :  { %2284 = vxpose.xlu0.c.b16.cont [6/8] (narrow) %v1858_v16, 64  ;;  %2393 = vxpose.xlu1.c.b16.cont [3/8] (narrow) %v1911_v12, 64  ;;  %v1767_v51 = vmul.f32 %v1230_v44, %v171_v60  ;;  %v1185_v30 = vpop.permute.xlu0 %1184  ;;  %v175_v44 = vld [vmem:[%s9386_s0 + $0x4d0] sm:$0xff] }
 0x1f8   :  { %v1920_v37 = vpack.c.bf16 %v1768_v9, %v1767_v51  ;;  %v74_v9 = vld [vmem:[%s9386_s0 + $0x1a8] sm:$0xff] }
 0x1f9   :  { %v1150_v49 = vpop.permute.xlu1 %1149 }
 0x1fa   :  { %v1751_v57 = vmul.f32 %v1150_v49, %v155_v61  ;;  %2285 = vxpose.xlu0.c.b16.cont [7/8] (narrow) %v1859_v62, 64  ;;  %v161_v49 = vld [vmem:[%s9386_s0 + $0x460] sm:$0xff]  ;;  %v1275_v6 = vpop.permute.xlu0 %1274 }
 0x1fb   :  { %v1776_v46 = vmul.f32 %v1275_v6, %v180_v21  ;;  %v5953_v6 = vld [vmem:[%s9387_s2 + $0x20] ss:$60 sps:$4 sm:$0xff]  }
 0x1fc   :  { %v1912_v0 = vpack.c.bf16 %v1752_v24, %v1751_v57  ;;  %v9434_v21 = vld [vmem:[#allocation6_spill] sm:$0xff] }
 0x1fd   :  { %v1240_v32 = vpop.permute.xlu1 %1239 }
 0x1fe   :  { %2286 = vxpose.xlu0.c.b16.end [8/8] (narrow) %v1860_v34, 64  ;;  %2394 = vxpose.xlu1.c.b16.cont [4/8] (narrow) %v1912_v0, 64  ;;  %v1769_v61 = vmul.f32 %v1240_v32, %v173_v10  ;;  %v1758_v0 = vmul.f32 %v1185_v30, %v162_v2  ;;  %v178_v32 = vld [vmem:[%s9386_s0 + $0x4e8] sm:$0xff]  ;;  %v1195_v19 = vpop.permute.xlu0 %1194  ;;  %v1652_v10 = vmul.f32 %v6682_v7, %v56_v43  ;;  %v9423_v7 = vld [vmem:[#allocation14_spill] sm:$0xff]  ;;  %v60_v2 = vld [vmem:[%s9386_s0 + $0x138] sm:$0xff] }
 0x1ff   :  { %v9425_v30 = vld [vmem:[#allocation2_spill] sm:$0xff]  ;;  %v79_v43 = vld [vmem:[%s9386_s0 + $0x1d0] sm:$0xff] }
 0x200   :  { %v1921_v24 = vpack.c.bf16 %v1770_v20, %v1769_v61  ;;  %v9426_v61 = vld [vmem:[#allocation3_spill] sm:$0xff]  ;;  %v9428_v20 = vld [vmem:[#allocation18_spill] sm:$0xff] }
 0x201   :  { %v1160_v52 = vpop.permute.xlu1 %1159 }
 0x202   :  { %v1753_v55 = vmul.f32 %v1160_v52, %v157_v35  ;;  %2407 = vxpose.xlu0.c.b16.start [1/8] (narrow) %v1917_v47, 64  ;;  %v1774_v47 = vmul.f32 %v1265_v41, %v178_v32  ;;  %v163_v52 = vld [vmem:[%s9386_s0 + $0x470] sm:$0xff]  ;;  %v9433_v32 = vld [vmem:[#allocation5_spill] sm:$0xff] }
 0x204   :  { %v1913_v40 = vpack.c.bf16 %v1754_v31, %v1753_v55  ;;  %v54_v55 = vld [vmem:[%s9386_s0 + $0x108] sm:$0xff] }
 0x205   :  { %v1250_v13 = vpop.permute.xlu1 %1249  ;;  %v1650_v60 = vmul.f32 %v6675_v3, %v54_v55  ;;  %v80_v55 = vld [vmem:[%s9386_s0 + $0x1d8] sm:$0xff] }
 0x206   :  { %2408 = vxpose.xlu0.c.b16.cont [2/8] (narrow) %v1918_v29, 64  ;;  %2395 = vxpose.xlu1.c.b16.cont [5/8] (narrow) %v1913_v40, 64  ;;  %v1771_v57 = vmul.f32 %v1250_v13, %v175_v44  ;;  %v1760_v40 = vmul.f32 %v1195_v19, %v164_v26  ;;  %v1649_v13 = vmul.f32 %v6677_v4, %v53_v56  ;;  %v58_v4 = vld [vmem:[%s9386_s0 + $0x128] sm:$0xff]  ;;  %v9427_v44 = vld [vmem:[#allocation17_spill] sm:$0xff] }
 0x207   :  { %v9435_v26 = vld [vmem:[#allocation7_spill] sm:$0xff]  ;;  %v5959_v56 = vld [vmem:[%s9387_s2 + $0x98] ss:$60 sps:$4 sm:$0xff]  }
 0x208   :  { %v1922_v33 = vpack.c.bf16 %v1772_v15, %v1771_v57  ;;  %v1861_v51 = vpack.c.bf16 %v1650_v60, %v1649_v13  ;;  %v9439_v60 = vld [vmem:[#allocation8_spill] sm:$0xff] }
 0x209   :  { %v1170_v16 = vpop.permute.xlu1 %1169 }
 0x20a   :  { %v1755_v12 = vmul.f32 %v1170_v16, %v159_v5  ;;  %2409 = vxpose.xlu0.c.b16.cont [3/8] (narrow) %v1919_v38, 64  ;;  %v55_v5 = vld [vmem:[%s9386_s0 + $0x110] sm:$0xff]  ;;  %v7442_v38 = vpop.permute.xlu0 %779  ;;  %v57_v16 = vld [vmem:[%s9386_s0 + $0x120] sm:$0xff] }
 0x20b   :  { %v1651_v3 = vmul.f32 %v6684_v8, %v55_v5 }
 0x20c   :  { %v1914_v62 = vpack.c.bf16 %v1756_v58, %v1755_v12  ;;  %v73_v58 = vld [vmem:[%s9386_s0 + $0x1a0] sm:$0xff]  ;;  %v9424_v12 = vpack.c.bf16 %v6745_v18, %v9423_v7  ;;  %v59_v18 = vld [vmem:[%s9386_s0 + $0x130] sm:$0xff] }
 0x20d   :  { %v1260_v45 = vpop.permute.xlu1 %1259  ;;  %v1862_v8 = vpack.c.bf16 %v1652_v10, %v1651_v3  ;;  %v1669_v23 = vmul.f32 %v9428_v20, %v73_v58  ;;  %v9441_v58 = vld [vmem:[#allocation23_spill] sm:$0xff] }
 0x20e   :  { %2410 = vxpose.xlu0.c.b16.cont [4/8] (narrow) %v1920_v37, 64  ;;  %2396 = vxpose.xlu1.c.b16.cont [6/8] (narrow) %v1914_v62, 64  ;;  %v1773_v48 = vmul.f32 %v1260_v45, %v177_v11  ;;  %v7461_v59 = vpop.permute.xlu0 %789  ;;  %v1654_v37 = vmul.f32 %v9425_v30, %v58_v4  ;;  %v1653_v62 = vmul.f32 %v9426_v61, %v57_v16  ;;  %v66_v4 = vld [vmem:[%s9386_s0 + $0x168] sm:$0xff]  ;;  %v65_v16 = vld [vmem:[%s9386_s0 + $0x160] sm:$0xff] }
 0x20f   :  { %v1670_v45 = vmul.f32 %v9427_v44, %v74_v9  ;;  %v82_v9 = vld [vmem:[%s9386_s0 + $0x1e8] sm:$0xff]  ;;  %v1675_v7 = vmul.f32 %v9441_v58, %v79_v43  ;;  %v81_v61 = vld [vmem:[%s9386_s0 + $0x1e0] sm:$0xff]  ;;  %v5992_v58 = vld [vmem:[%s9387_s2 + $0xf8] ss:$60 sps:$4 sm:$0xff]  }
 0x210   :  { %v1923_v53 = vpack.c.bf16 %v1774_v47, %v1773_v48  ;;  %v1863_v15 = vpack.c.bf16 %v1654_v37, %v1653_v62  ;;  %v9445_v62 = vld [vmem:[#allocation10_spill] sm:$0xff]  ;;  %v430_v43 = vld [vmem:[%s9385_s1 + $0x5a8] sm:$0xff] }
 0x211   :  { %v1180_v34 = vpop.permute.xlu1 %1179  ;;  %v1871_v48 = vpack.c.bf16 %v1670_v45, %v1669_v23  ;;  %v1662_v44 = vmul.f32 %v9445_v62, %v66_v4  ;;  %v9446_v45 = vld [vmem:[#allocation11_spill] sm:$0xff]  ;;  %v431_v62 = vld [vmem:[%s9385_s1 + $0x5b0] sm:$0xff] }
 0x212   :  { %v1757_v1 = vmul.f32 %v1180_v34, %v161_v49  ;;  %2411 = vxpose.xlu0.c.b16.cont [5/8] (narrow) %v1921_v24, 64  ;;  %v9429_v49 = vld [vmem:[#allocation15_spill] sm:$0xff]  ;;  %v9430_v24 = vld [vmem:[#allocation16_spill] sm:$0xff]  ;;  %v5961_v34 = vld [vmem:[%s9387_s2 + $0x9c] ss:$60 sps:$4 sm:$0xff]   ;;  %v1661_v20 = vmul.f32 %v9446_v45, %v65_v16 }
 0x213   :  { %v9431_v57 = vpack.c.bf16 %v9429_v49, %v9430_v24  ;;  %v5965_v24 = vld [vmem:[%s9387_s2 + $0x110] ss:$60 sps:$4 sm:$0xff]   ;;  %v429_v16 = vld [vmem:[%s9385_s1 + $0x5a0] sm:$0xff] }
 0x214   :  { %v1915_v42 = vpack.c.bf16 %v1758_v0, %v1757_v1  ;;  %v9432_v0 = vld [vmem:[#allocation4_spill] sm:$0xff]  ;;  %v414_v4 = vld [vmem:[%s9385_s1 + $0x528] sm:$0xff] }
 0x215   :  { %v1270_v35 = vpop.permute.xlu1 %1269  ;;  %v1656_v1 = vmul.f32 %v9432_v0, %v60_v2  ;;  %v1867_v0 = vpack.c.bf16 %v1662_v44, %v1661_v20  ;;  %v5995_v44 = vld [vmem:[%s9387_s2 + $0x368] ss:$60 sps:$4 sm:$0xff]   ;;  %v5998_v45 = vld [vmem:[%s9387_s2 + $0x170] ss:$60 sps:$4 sm:$0xff]  }
 0x216   :  { %2412 = vxpose.xlu0.c.b16.cont [6/8] (narrow) %v1922_v33, 64  ;;  %2397 = vxpose.xlu1.c.b16.cont [7/8] (narrow) %v1915_v42, 64  ;;  %v1775_v31 = vmul.f32 %v1270_v35, %v179_v36  ;;  %v1655_v33 = vmul.f32 %v9433_v32, %v59_v18  ;;  %v62_v42 = vld [vmem:[%s9386_s0 + $0x148] sm:$0xff]  ;;  %v61_v36 = vld [vmem:[%s9386_s0 + $0x140] sm:$0xff]  ;;  %v84_v18 = vld [vmem:[%s9386_s0 + $0x1f8] sm:$0xff] }
 0x217   :  { %v1658_v19 = vmul.f32 %v9434_v21, %v62_v42  ;;  %v9447_v42 = vld [vmem:[#allocation12_spill] sm:$0xff]  ;;  %v434_v20 = vld [vmem:[%s9385_s1 + $0x5c8] sm:$0xff] }
 0x218   :  { %v1924_v50 = vpack.c.bf16 %v1776_v46, %v1775_v31  ;;  %v1864_v47 = vpack.c.bf16 %v1656_v1, %v1655_v33  ;;  %v63_v31 = vld [vmem:[%s9386_s0 + $0x150] sm:$0xff]  ;;  %v9436_v46 = vld [vmem:[#allocation19_spill] sm:$0xff] }
 0x219   :  { %v1190_v29 = vpop.permute.xlu1 %1189 }
 0x21a   :  { %v1759_v41 = vmul.f32 %v1190_v29, %v163_v52  ;;  %2413 = vxpose.xlu0.c.b16.cont [7/8] (narrow) %v1923_v53, 64  ;;  %v1657_v52 = vmul.f32 %v9435_v26, %v61_v36  ;;  %v64_v53 = vld [vmem:[%s9386_s0 + $0x158] sm:$0xff]  ;;  %v425_v26 = vld [vmem:[%s9385_s1 + $0x580] sm:$0xff] }
 0x21b   :  { %v1660_v13 = vmul.f32 %v9439_v60, %v64_v53  ;;  %v9448_v36 = vld [vmem:[#allocation13_spill] sm:$0xff]  ;;  %v5980_v53 = vld [vmem:[%s9387_s2 + $0x8] ss:$60 sps:$4 sm:$0xff]  }
 0x21c   :  { %v1916_v27 = vpack.c.bf16 %v1760_v40, %v1759_v41  ;;  %v9437_v40 = vld [vmem:[#allocation20_spill] sm:$0xff]  ;;  %v1865_v10 = vpack.c.bf16 %v1658_v19, %v1657_v52  ;;  %v410_v19 = vld [vmem:[%s9385_s1 + $0x508] sm:$0xff]  ;;  %v5977_v52 = vld [vmem:[%s9387_s2 + $0x200] ss:$60 sps:$4 sm:$0xff]  }
 0x21d   :  { %v775_v35 = vpop.permute.xlu1 %774  ;;  %v9438_v41 = vpack.c.bf16 %v9436_v46, %v9437_v40  ;;  %v409_v46 = vld [vmem:[%s9385_s1 + $0x500] sm:$0xff] }
 0x21e   :  { %2414 = vxpose.xlu0.c.b16.end [8/8] (narrow) %v1924_v50, 64  ;;  %2398 = vxpose.xlu1.c.b16.end [8/8] (narrow) %v1916_v27, 64  ;;  %v9440_v50 = vld [vmem:[#allocation9_spill] sm:$0xff]  ;;  %v1676_v3 = vmul.f32 %v775_v35, %v80_v55  ;;  %v9449_v35 = vpack.c.bf16 %v9447_v42, %v9448_v36  ;;  %v5988_v40 = vld [vmem:[%s9387_s2 + $0x84] ss:$60 sps:$4 sm:$0xff]  }
 0x21f   :  { %v1659_v27 = vmul.f32 %v9440_v50, %v63_v31  ;;  %v428_v55 = vld [vmem:[%s9385_s1 + $0x598] sm:$0xff] }
 0x220   :  { %v1874_v23 = vpack.c.bf16 %v1676_v3, %v1675_v7  ;;  %v5983_v50 = vld [vmem:[%s9387_s2 + $0x278] ss:$60 sps:$4 sm:$0xff]   ;;  %v6010_v36 = vld [vmem:[%s9387_s2 + $0x260] ss:$60 sps:$4 sm:$0xff]  }
 0x221   :  { %v785_v5 = vpop.permute.xlu1 %784  ;;  %v1866_v37 = vpack.c.bf16 %v1660_v13, %v1659_v27  ;;  %v427_v13 = vld [vmem:[%s9385_s1 + $0x590] sm:$0xff]  ;;  %v5986_v27 = vld [vmem:[%s9387_s2 + $0x80] ss:$60 sps:$4 sm:$0xff]  }
 0x222   :  { %2311 = vxpose.xlu0.c.b16.start [1/8] (narrow) %v9424_v12, 64  ;;  %2295 = vxpose.xlu1.c.b16.start [1/8] (narrow) %v1861_v51, 64  ;;  %v5967_v51 = vld [vmem:[%s9387_s2 + $0x114] ss:$60 sps:$4 sm:$0xff]   ;;  %v9442_v12 = vld [vmem:[#allocation21_spill] sm:$0xff]  ;;  %v1678_v2 = vmul.f32 %v785_v5, %v82_v9 }
 0x223   :  { %v5991_v5 = vld [vmem:[%s9387_s2 + $0x2f4] ss:$60 sps:$4 sm:$0xff]   ;;  %v432_v7 = vld [vmem:[%s9385_s1 + $0x5b8] sm:$0xff] }
 0x224   :  { %v5989_v9 = vld [vmem:[%s9387_s2 + $0x2f0] ss:$60 sps:$4 sm:$0xff]   ;;  %v6007_v42 = vld [vmem:[%s9387_s2 + $0x458] ss:$60 sps:$4 sm:$0xff]  }
 0x225   :  { %v795_v49 = vpop.permute.xlu1 %794 }
 0x226   :  { %2312 = vxpose.xlu0.c.b16.cont [2/8] (narrow) %v9431_v57, 64  ;;  %2296 = vxpose.xlu1.c.b16.cont [2/8] (narrow) %v1862_v8, 64  ;;  %v9443_v8 = vld [vmem:[#allocation22_spill] sm:$0xff]  ;;  %v1680_v32 = vmul.f32 %v795_v49, %v84_v18  ;;  %v6006_v18 = vld [vmem:[%s9387_s2 + $0x1ec] ss:$60 sps:$4 sm:$0xff]  }
 0x227   :  { %v9444_v30 = vpack.c.bf16 %v9442_v12, %v9443_v8  ;;  %v5997_v12 = vld [vmem:[%s9387_s2 + $0x36c] ss:$60 sps:$4 sm:$0xff]   ;;  %v413_v8 = vld [vmem:[%s9385_s1 + $0x520] sm:$0xff] }
 0x228   :  { %v7479_v11 = vpop.trf.xlu0  ;;  %v418_v49 = vld [vmem:[%s9385_s1 + $0x548] sm:$0xff] }
 0x229   :  { %4244 = vmatmul.mubr.bf16.vlgmr.msra.gmra.mrb[0].mxu0 %v7479_v11 }
 0x22a   :  { %4283 = vmatpush1.bf16.xpose.msra.mxu0 %v5953_v6  ;;  %4253 = vmatprep.mubr.bf16.mxu0 %v7203_v17  ;;  %v1677_v6 = vmul.f32 %v7442_v38, %v81_v61  ;;  %v416_v61 = vld [vmem:[%s9385_s1 + $0x538] sm:$0xff] }
 0x22b   :  { %2313 = vxpose.xlu0.c.b16.cont [3/8] (narrow) %v1871_v48, 64  ;;  %2297 = vxpose.xlu1.c.b16.cont [3/8] (narrow) %v1863_v15, 64  ;;  %v5973_v15 = vld [vmem:[%s9387_s2 + $0x18c] ss:$60 sps:$4 sm:$0xff]  }
 0x22c   :  { %4284 = vmatprep.subr.bf16.mxu0 %v5961_v34  ;;  %v7508_v29 = vpop.trf.xlu0  ;;  %v83_v34 = vld [vmem:[%s9386_s0 + $0x1f0] sm:$0xff]  ;;  %v1875_v1 = vpack.c.bf16 %v1678_v2, %v1677_v6  ;;  %v5971_v48 = vld [vmem:[%s9387_s2 + $0x188] ss:$60 sps:$4 sm:$0xff]   ;;  %v6001_v6 = vld [vmem:[%s9387_s2 + $0x3e0] ss:$60 sps:$4 sm:$0xff]  }
 0x22d   :  { %v1679_v38 = vmul.f32 %v7461_v59, %v83_v34  ;;  %v426_v59 = vld [vmem:[%s9385_s1 + $0x588] sm:$0xff]  ;;  %v415_v2 = vld [vmem:[%s9385_s1 + $0x530] sm:$0xff] }
 0x22e   :  { %v6004_v34 = vld [vmem:[%s9387_s2 + $0x1e8] ss:$60 sps:$4 sm:$0xff]  }
 0x22f   :  { %2314 = vxpose.xlu0.c.b16.cont [4/8] (narrow) %v9438_v41, 64  ;;  %2298 = vxpose.xlu1.c.b16.cont [4/8] (narrow) %v1864_v47, 64  ;;  %v1876_v33 = vpack.c.bf16 %v1680_v32, %v1679_v38  ;;  %v5979_v47 = vld [vmem:[%s9387_s2 + $0x204] ss:$60 sps:$4 sm:$0xff]   ;;  %v412_v41 = vld [vmem:[%s9385_s1 + $0x518] sm:$0xff] }
 0x230   :  { %v7547_v57 = vpop.trf.xlu0  ;;  %v417_v32 = vld [vmem:[%s9385_s1 + $0x540] sm:$0xff] }
 0x231   :  { %4254 = vmatmul.mubr.bf16.gmra.mrb[4].mxu0 %v7508_v29  ;;  %v6012_v38 = vld [vmem:[%s9387_s2 + $0x264] ss:$60 sps:$4 sm:$0xff]  }
 0x232   :  { %4285 = vmatpush1.bf16.xpose.msra.mxu0 %v5959_v56  ;;  %4263 = vmatprep.mubr.bf16.mxu0 %v7211_v54  ;;  %v5985_v56 = vld [vmem:[%s9387_s2 + $0x27c] ss:$60 sps:$4 sm:$0xff]  }
 0x233   :  { %2315 = vxpose.xlu0.c.b16.cont [5/8] (narrow) %v9444_v30, 64  ;;  %2299 = vxpose.xlu1.c.b16.cont [5/8] (narrow) %v1865_v10, 64  ;;  %v5994_v10 = vld [vmem:[%s9387_s2 + $0xfc] ss:$60 sps:$4 sm:$0xff]   ;;  %v6000_v30 = vld [vmem:[%s9387_s2 + $0x174] ss:$60 sps:$4 sm:$0xff]  }
 0x234   :  { %4286 = vmatprep.subr.bf16.mxu0 %v5967_v51  ;;  %v7571_v21 = vpop.trf.xlu0  ;;  %v411_v51 = vld [vmem:[%s9385_s1 + $0x510] sm:$0xff] }
 0x237   :  { %2300 = vxpose.xlu1.c.b16.cont [6/8] (narrow) %v1866_v37, 64  ;;  %2316 = vxpose.xlu0.c.b16.cont [6/8] (narrow) %v1874_v23, 64  ;;  %v6003_v23 = vld [vmem:[%s9387_s2 + $0x3e4] ss:$60 sps:$4 sm:$0xff]  }
 0x239   :  { %4264 = vmatmul.mubr.bf16.gmra.mrb[8].mxu0 %v7547_v57 }
 0x23a   :  { %4287 = vmatpush1.bf16.xpose.msra.mxu0 %v5965_v24  ;;  %4273 = vmatprep.mubr.bf16.mxu0 %v7219_v63  ;;  %v433_v24 = vld [vmem:[%s9385_s1 + $0x5c0] sm:$0xff] }
 0x23b   :  { %2301 = vxpose.xlu1.c.b16.cont [7/8] (narrow) %v1867_v0, 64  ;;  %2317 = vxpose.xlu0.c.b16.cont [7/8] (narrow) %v1875_v1, 64  ;;  %v6009_v0 = vld [vmem:[%s9387_s2 + $0x45c] ss:$60 sps:$4 sm:$0xff]  }
 0x23c   :  { %4288 = vmatprep.subr.bf16.mxu0 %v5973_v15  ;;  %v436_v15 = vld [vmem:[%s9385_s1 + $0x5d8] sm:$0xff] }
 0x23f   :  { %2302 = vxpose.xlu1.c.b16.end [8/8] (narrow) %v9449_v35, 64  ;;  %2318 = vxpose.xlu0.c.b16.end [8/8] (narrow) %v1876_v33, 64  ;;  %v420_v33 = vld [vmem:[%s9385_s1 + $0x558] sm:$0xff]  ;;  %v438_v35 = vld [vmem:[%s9385_s1 + $0x5e8] sm:$0xff] }
 0x241   :  { %4274 = vmatmul.mubr.bf16.gmra.mrb[12].mxu0 %v7571_v21 }
 0x242   :  { %4289 = vmatpush1.bf16.xpose.msra.mxu0 %v5971_v48  ;;  %v435_v48 = vld [vmem:[%s9385_s1 + $0x5d0] sm:$0xff] }
 0x243   :  { %1364 = vperm.xlu1 %5868, %v426_v59   ;;  %4290 = vmatprep.subr.bf16.mxu0 %v5979_v47  ;;  %v6015_v47 = vld [vmem:[%s9387_s2 + $0x4d4] ss:$60 sps:$4 sm:$0xff]  }
 0x244   :  { %v419_v59 = vld [vmem:[%s9385_s1 + $0x550] sm:$0xff] }
 0x247   :  { %1284 = vperm.xlu1 %5868, %v410_v19   ;;  %v6018_v19 = vld [vmem:[%s9387_s2 + $0x2dc] ss:$60 sps:$4 sm:$0xff]  }
 0x248   :  { %1359 = vperm.xlu0 %5867, %v425_v26   ;;  %v7586_v31 = vpop.trf.xlu0  ;;  %v422_v26 = vld [vmem:[%s9385_s1 + $0x568] sm:$0xff] }
 0x249   :  { %4030 = vmatprep.mubr.bf16.mxu1 %v7586_v31 }
 0x24a   :  { %4291 = vmatpush1.bf16.xpose.msra.mxu0 %v5977_v52  ;;  %4031 = vmatmul.mubr.bf16.vlgmr.msra.gmra.mrb[0].mxu1 %v7226_v22  ;;  %v437_v52 = vld [vmem:[%s9385_s1 + $0x5e0] sm:$0xff] }
 0x24b   :  { %4070 = vmatpush1.bf16.xpose.msra.mxu1 %v5980_v53  ;;  %1374 = vperm.xlu1 %5868, %v428_v55   ;;  %v6013_v53 = vld [vmem:[%s9387_s2 + $0x4d0] ss:$60 sps:$4 sm:$0xff]   ;;  %v6016_v55 = vld [vmem:[%s9387_s2 + $0x2d8] ss:$60 sps:$4 sm:$0xff]  }
 0x24c   :  { %1279 = vperm.xlu0 %5867, %v409_v46   ;;  %4292 = vmatprep.subr.bf16.mxu0 %v5985_v56  ;;  %v7605_v60 = vpop.trf.xlu0  ;;  %v440_v46 = vld [vmem:[%s9385_s1 + $0x5f8] sm:$0xff] }
 0x24d   :  { %4040 = vmatprep.mubr.bf16.mxu1 %v7605_v60  ;;  %4071 = vmatprep.subr.bf16.mxu1 %v5988_v40  ;;  %v6021_v40 = vld [vmem:[%s9387_s2 + $0x54c] ss:$60 sps:$4 sm:$0xff]  }
 0x24f   :  { %1294 = vperm.xlu1 %5868, %v412_v41   ;;  %v421_v41 = vld [vmem:[%s9385_s1 + $0x560] sm:$0xff] }
 0x250   :  { %1369 = vperm.xlu0 %5867, %v427_v13   ;;  %v7630_v3 = vpop.trf.xlu0  ;;  %v6024_v13 = vld [vmem:[%s9387_s2 + $0x354] ss:$60 sps:$4 sm:$0xff]  }
 0x252   :  { %4293 = vmatpush1.bf16.xpose.msra.mxu0 %v5983_v50  ;;  %4041 = vmatmul.mubr.bf16.gmra.mrb[4].mxu1 %v7231_v14  ;;  %v424_v50 = vld [vmem:[%s9385_s1 + $0x578] sm:$0xff] }
 0x253   :  { %4072 = vmatpush1.bf16.xpose.msra.mxu1 %v5986_v27  ;;  %1384 = vperm.xlu1 %5868, %v430_v43   ;;  %v439_v27 = vld [vmem:[%s9385_s1 + $0x5f0] sm:$0xff] }
 0x254   :  { %1289 = vperm.xlu0 %5867, %v411_v51   ;;  %4294 = vmatprep.subr.bf16.mxu0 %v5991_v5  ;;  %v7658_v37 = vpop.trf.xlu0  ;;  %v6019_v5 = vld [vmem:[%s9387_s2 + $0x548] ss:$60 sps:$4 sm:$0xff]   ;;  %v6022_v51 = vld [vmem:[%s9387_s2 + $0x350] ss:$60 sps:$4 sm:$0xff]  }
 0x255   :  { %4050 = vmatprep.mubr.bf16.mxu1 %v7630_v3  ;;  %4073 = vmatprep.subr.bf16.mxu1 %v5994_v10  ;;  %v330_v10 = vld [vmem:[%s9385_s1 + $0x288] sm:$0xff] }
 0x257   :  { %1304 = vperm.xlu1 %5868, %v414_v4   ;;  %v6027_v4 = vld [vmem:[%s9387_s2 + $0x5c4] ss:$60 sps:$4 sm:$0xff]  }
 0x258   :  { %1379 = vperm.xlu0 %5867, %v429_v16   ;;  %v423_v16 = vld [vmem:[%s9385_s1 + $0x570] sm:$0xff] }
 0x25a   :  { %4295 = vmatpush1.bf16.xpose.msra.mxu0 %v5989_v9  ;;  %4051 = vmatmul.mubr.bf16.gmra.mrb[8].mxu1 %v7238_v28  ;;  %v6030_v9 = vld [vmem:[%s9387_s2 + $0x3cc] ss:$60 sps:$4 sm:$0xff]  }
 0x25b   :  { %4074 = vmatpush1.bf16.xpose.msra.mxu1 %v5992_v58  ;;  %1394 = vperm.xlu1 %5868, %v432_v7   ;;  %v314_v7 = vld [vmem:[%s9385_s1 + $0x208] sm:$0xff] }
 0x25c   :  { %1299 = vperm.xlu0 %5867, %v413_v8   ;;  %4296 = vmatprep.subr.bf16.mxu0 %v5997_v12  ;;  %v329_v12 = vld [vmem:[%s9385_s1 + $0x280] sm:$0xff] }
 0x25d   :  { %4060 = vmatprep.mubr.bf16.mxu1 %v7658_v37  ;;  %4075 = vmatprep.subr.bf16.mxu1 %v6000_v30  ;;  %v6025_v8 = vld [vmem:[%s9387_s2 + $0x5c0] ss:$60 sps:$4 sm:$0xff]   ;;  %v6028_v30 = vld [vmem:[%s9387_s2 + $0x3c8] ss:$60 sps:$4 sm:$0xff]  }
 0x25f   :  { %1314 = vperm.xlu1 %5868, %v416_v61   ;;  %v332_v61 = vld [vmem:[%s9385_s1 + $0x298] sm:$0xff] }
 0x260   :  { %1389 = vperm.xlu0 %5867, %v431_v62   ;;  %v6033_v62 = vld [vmem:[%s9387_s2 + $0x63c] ss:$60 sps:$4 sm:$0xff]  }
 0x262   :  { %4297 = vmatpush1.bf16.xpose.msra.mxu0 %v5995_v44  ;;  %4061 = vmatmul.mubr.bf16.gmra.mrb[12].mxu1 %v7240_v39  ;;  %v313_v44 = vld [vmem:[%s9385_s1 + $0x200] sm:$0xff] }
 0x263   :  { %4076 = vmatpush1.bf16.xpose.msra.mxu1 %v5998_v45  ;;  %1404 = vperm.xlu1 %5868, %v434_v20   ;;  %v6036_v45 = vld [vmem:[%s9387_s2 + $0x444] ss:$60 sps:$4 sm:$0xff]  }
 0x264   :  { %1309 = vperm.xlu0 %5867, %v415_v2   ;;  %4298 = vmatprep.subr.bf16.mxu0 %v6003_v23  ;;  %v316_v23 = vld [vmem:[%s9385_s1 + $0x218] sm:$0xff]  ;;  %v331_v2 = vld [vmem:[%s9385_s1 + $0x290] sm:$0xff] }
 0x265   :  { %4077 = vmatprep.subr.bf16.mxu1 %v6006_v18  ;;  %v6031_v18 = vld [vmem:[%s9387_s2 + $0x638] ss:$60 sps:$4 sm:$0xff]  }
 0x267   :  { %1324 = vperm.xlu1 %5868, %v418_v49   ;;  %v6034_v49 = vld [vmem:[%s9387_s2 + $0x440] ss:$60 sps:$4 sm:$0xff]  }
 0x268   :  { %1399 = vperm.xlu0 %5867, %v433_v24   ;;  %v7704_v1 = vpop.trf.xlu0  ;;  %v334_v24 = vld [vmem:[%s9385_s1 + $0x2a8] sm:$0xff] }
 0x269   :  { %4314 = vmatprep.mubr.bf16.mxu0 %v7704_v1 }
 0x26a   :  { %4299 = vmatpush1.bf16.xpose.msra.mxu0 %v6001_v6  ;;  %v6039_v6 = vld [vmem:[%s9387_s2 + $0x6b4] ss:$60 sps:$4 sm:$0xff]  }
 0x26b   :  { %4078 = vmatpush1.bf16.xpose.msra.mxu1 %v6004_v34  ;;  %1414 = vperm.xlu1 %5868, %v436_v15   ;;  %v315_v34 = vld [vmem:[%s9385_s1 + $0x210] sm:$0xff]  ;;  %v6042_v15 = vld [vmem:[%s9387_s2 + $0x4bc] ss:$60 sps:$4 sm:$0xff]  }
 0x26c   :  { %1319 = vperm.xlu0 %5867, %v417_v32   ;;  %4300 = vmatprep.subr.bf16.mxu0 %v6009_v0  ;;  %v7749_v56 = vpop.trf.xlu0  ;;  %v7842_v0 = vpop.trf.xlu1  ;;  %v318_v32 = vld [vmem:[%s9385_s1 + $0x228] sm:$0xff] }
 0x26d   :  { %4079 = vmatprep.subr.bf16.mxu1 %v6012_v38  ;;  %v333_v38 = vld [vmem:[%s9385_s1 + $0x2a0] sm:$0xff] }
 0x26f   :  { %1334 = vperm.xlu1 %5868, %v420_v33   ;;  %v6037_v33 = vld [vmem:[%s9387_s2 + $0x6b0] ss:$60 sps:$4 sm:$0xff]  }
 0x270   :  { %1409 = vperm.xlu0 %5867, %v435_v48   ;;  %v7769_v43 = vpop.trf.xlu0  ;;  %v6040_v48 = vld [vmem:[%s9387_s2 + $0x4b8] ss:$60 sps:$4 sm:$0xff]  }
 0x272   :  { %4301 = vmatpush1.bf16.xpose.msra.mxu0 %v6007_v42  ;;  %v336_v42 = vld [vmem:[%s9385_s1 + $0x2b8] sm:$0xff] }
 0x273   :  { %4080 = vmatpush1.bf16.xpose.msra.mxu1 %v6010_v36  ;;  %1424 = vperm.xlu1 %5868, %v438_v35   ;;  %v6045_v36 = vld [vmem:[%s9387_s2 + $0x72c] ss:$60 sps:$4 sm:$0xff]   ;;  %v7862_v35 = vpop.trf.xlu1 }
 0x274   :  { %1329 = vperm.xlu0 %5867, %v419_v59   ;;  %4302 = vmatprep.subr.bf16.mxu0 %v6015_v47  ;;  %v7789_v58 = vpop.trf.xlu0  ;;  %v317_v47 = vld [vmem:[%s9385_s1 + $0x220] sm:$0xff]  ;;  %v6048_v59 = vld [vmem:[%s9387_s2 + $0x534] ss:$60 sps:$4 sm:$0xff]  }
 0x275   :  { %4081 = vmatprep.subr.bf16.mxu1 %v6018_v19  ;;  %v320_v19 = vld [vmem:[%s9385_s1 + $0x238] sm:$0xff] }
 0x277   :  { %1344 = vperm.xlu1 %5868, %v422_v26   ;;  %v335_v26 = vld [vmem:[%s9385_s1 + $0x2b0] sm:$0xff] }
 0x278   :  { %1419 = vperm.xlu0 %5867, %v437_v52   ;;  %v6043_v52 = vld [vmem:[%s9387_s2 + $0x728] ss:$60 sps:$4 sm:$0xff]  }
 0x27a   :  { %4303 = vmatpush1.bf16.xpose.msra.mxu0 %v6013_v53  ;;  %v7879_v53 = vpop.trf.xlu1 }
 0x27b   :  { %4082 = vmatpush1.bf16.xpose.msra.mxu1 %v6016_v55  ;;  %1434 = vperm.xlu1 %5868, %v440_v46   ;;  %v6046_v55 = vld [vmem:[%s9387_s2 + $0x530] ss:$60 sps:$4 sm:$0xff]  }
 0x27c   :  { %1339 = vperm.xlu0 %5867, %v421_v41   ;;  %4304 = vmatprep.subr.bf16.mxu0 %v6021_v40  ;;  %v338_v46 = vld [vmem:[%s9385_s1 + $0x2c8] sm:$0xff]  ;;  %v319_v41 = vld [vmem:[%s9385_s1 + $0x230] sm:$0xff] }
 0x27d   :  { %4083 = vmatprep.subr.bf16.mxu1 %v6024_v13  ;;  %v6051_v40 = vld [vmem:[%s9387_s2 + $0x5ac] ss:$60 sps:$4 sm:$0xff]  }
 0x27e   :  { %v6069_v13 = vld [vmem:[%s9387_s2 + $0x2c] ss:$60 sps:$4 sm:$0xff]  }
 0x27f   :  { %1354 = vperm.xlu1 %5868, %v424_v50   ;;  %v322_v50 = vld [vmem:[%s9385_s1 + $0x248] sm:$0xff] }
 0x280   :  { %1429 = vperm.xlu0 %5867, %v439_v27   ;;  %v7899_v27 = vpop.trf.xlu1 }
 0x282   :  { %4305 = vmatpush1.bf16.xpose.msra.mxu0 %v6019_v5  ;;  %v337_v5 = vld [vmem:[%s9385_s1 + $0x2c0] sm:$0xff] }
 0x283   :  { %4084 = vmatpush1.bf16.xpose.msra.mxu1 %v6022_v51  ;;  %884 = vperm.xlu1 %5868, %v330_v10   ;;  %v6067_v51 = vld [vmem:[%s9387_s2 + $0x28] ss:$60 sps:$4 sm:$0xff]  }
 0x284   :  { %1349 = vperm.xlu0 %5867, %v423_v16   ;;  %4306 = vmatprep.subr.bf16.mxu0 %v6027_v4  ;;  %v6049_v10 = vld [vmem:[%s9387_s2 + $0x5a8] ss:$60 sps:$4 sm:$0xff]   ;;  %v340_v4 = vld [vmem:[%s9385_s1 + $0x2d8] sm:$0xff] }
 0x285   :  { %4085 = vmatprep.subr.bf16.mxu1 %v6030_v9  ;;  %v6054_v16 = vld [vmem:[%s9387_s2 + $0x624] ss:$60 sps:$4 sm:$0xff]  }
 0x286   :  { %v321_v9 = vld [vmem:[%s9385_s1 + $0x240] sm:$0xff] }
 0x287   :  { %804 = vperm.xlu1 %5868, %v314_v7   ;;  %v6075_v7 = vld [vmem:[%s9387_s2 + $0xa4] ss:$60 sps:$4 sm:$0xff]  }
 0x288   :  { %879 = vperm.xlu0 %5867, %v329_v12  }
 0x289   :  { %v7815_v20 = vpop.trf.xlu0  ;;  %v7924_v12 = vpop.trf.xlu1 }
 0x28a   :  { %4307 = vmatpush1.bf16.xpose.msra.mxu0 %v6025_v8  ;;  %4101 = vmatprep.mubr.bf16.mxu1 %v7815_v20  ;;  %v324_v8 = vld [vmem:[%s9385_s1 + $0x258] sm:$0xff] }
 0x28b   :  { %4086 = vmatpush1.bf16.xpose.msra.mxu1 %v6028_v30  ;;  %894 = vperm.xlu1 %5868, %v332_v61   ;;  %v339_v30 = vld [vmem:[%s9385_s1 + $0x2d0] sm:$0xff]  ;;  %v6073_v61 = vld [vmem:[%s9387_s2 + $0xa0] ss:$60 sps:$4 sm:$0xff]  }
 0x28c   :  { %799 = vperm.xlu0 %5867, %v313_v44   ;;  %4308 = vmatprep.subr.bf16.mxu0 %v6033_v62  ;;  %v6052_v62 = vld [vmem:[%s9387_s2 + $0x620] ss:$60 sps:$4 sm:$0xff]   ;;  %v342_v44 = vld [vmem:[%s9385_s1 + $0x2e8] sm:$0xff] }
 0x28d   :  { %4087 = vmatprep.subr.bf16.mxu1 %v6036_v45  ;;  %v7941_v45 = vpop.trf.xlu1 }
 0x28f   :  { %814 = vperm.xlu1 %5868, %v316_v23   ;;  %v6057_v23 = vld [vmem:[%s9387_s2 + $0x69c] ss:$60 sps:$4 sm:$0xff]  }
 0x290   :  { %889 = vperm.xlu0 %5867, %v331_v2   ;;  %v323_v2 = vld [vmem:[%s9385_s1 + $0x250] sm:$0xff] }
 0x292   :  { %4309 = vmatpush1.bf16.xpose.msra.mxu0 %v6031_v18  ;;  %v6081_v18 = vld [vmem:[%s9387_s2 + $0x11c] ss:$60 sps:$4 sm:$0xff]  }
 0x293   :  { %4088 = vmatpush1.bf16.xpose.msra.mxu1 %v6034_v49  ;;  %904 = vperm.xlu1 %5868, %v334_v24   ;;  %v326_v49 = vld [vmem:[%s9385_s1 + $0x268] sm:$0xff]  ;;  %v341_v24 = vld [vmem:[%s9385_s1 + $0x2e0] sm:$0xff] }
 0x294   :  { %809 = vperm.xlu0 %5867, %v315_v34   ;;  %4310 = vmatprep.subr.bf16.mxu0 %v6039_v6  ;;  %v7960_v6 = vpop.trf.xlu0  ;;  %v7962_v34 = vpop.trf.xlu1 }
 0x295   :  { %4089 = vmatprep.subr.bf16.mxu1 %v6042_v15  ;;  %v6079_v15 = vld [vmem:[%s9387_s2 + $0x118] ss:$60 sps:$4 sm:$0xff]  }
 0x297   :  { %824 = vperm.xlu1 %5868, %v318_v32   ;;  %v6055_v32 = vld [vmem:[%s9387_s2 + $0x698] ss:$60 sps:$4 sm:$0xff]  }
 0x298   :  { %899 = vperm.xlu0 %5867, %v333_v38   ;;  %v344_v38 = vld [vmem:[%s9385_s1 + $0x2f8] sm:$0xff] }
 0x29a   :  { %4311 = vmatpush1.bf16.xpose.msra.mxu0 %v6037_v33  ;;  %v6060_v33 = vld [vmem:[%s9387_s2 + $0x714] ss:$60 sps:$4 sm:$0xff]  }
 0x29b   :  { %4090 = vmatpush1.bf16.xpose.msra.mxu1 %v6040_v48  ;;  %914 = vperm.xlu1 %5868, %v336_v42   ;;  %v325_v48 = vld [vmem:[%s9385_s1 + $0x260] sm:$0xff]  ;;  %v6087_v42 = vld [vmem:[%s9387_s2 + $0x194] ss:$60 sps:$4 sm:$0xff]  }
 0x29c   :  { %819 = vperm.xlu0 %5867, %v317_v47   ;;  %4312 = vmatprep.subr.bf16.mxu0 %v6045_v36  ;;  %v7984_v36 = vpop.trf.xlu0  ;;  %v7986_v47 = vpop.trf.xlu1 }
 0x29d   :  { %4091 = vmatprep.subr.bf16.mxu1 %v6048_v59  ;;  %v328_v59 = vld [vmem:[%s9385_s1 + $0x278] sm:$0xff] }
 0x29f   :  { %834 = vperm.xlu1 %5868, %v320_v19   ;;  %v343_v19 = vld [vmem:[%s9385_s1 + $0x2f0] sm:$0xff] }
 0x2a0   :  { %909 = vperm.xlu0 %5867, %v335_v26   ;;  %v6085_v26 = vld [vmem:[%s9387_s2 + $0x190] ss:$60 sps:$4 sm:$0xff]  }
 0x2a2   :  { %4313 = vmatpush1.bf16.xpose.msra.mxu0 %v6043_v52  ;;  %v6058_v52 = vld [vmem:[%s9387_s2 + $0x710] ss:$60 sps:$4 sm:$0xff]  }
 0x2a3   :  { %4092 = vmatpush1.bf16.xpose.msra.mxu1 %v6046_v55  ;;  %924 = vperm.xlu1 %5868, %v338_v46   ;;  %v6063_v55 = vld [vmem:[%s9387_s2 + $0x14] ss:$60 sps:$4 sm:$0xff]   ;;  %v6093_v46 = vld [vmem:[%s9387_s2 + $0x20c] ss:$60 sps:$4 sm:$0xff]  }
 0x2a4   :  { %829 = vperm.xlu0 %5867, %v319_v41   ;;  %4093 = vmatprep.subr.bf16.mxu1 %v6051_v40  ;;  %v8007_v40 = vpop.trf.xlu0  ;;  %v327_v41 = vld [vmem:[%s9385_s1 + $0x270] sm:$0xff] }
 0x2a5   :  { %4353 = vmatprep.subr.bf16.mxu0 %v6069_v13 }
 0x2a7   :  { %844 = vperm.xlu1 %5868, %v322_v50  }
 0x2a8   :  { %919 = vperm.xlu0 %5867, %v337_v5   ;;  %v6091_v5 = vld [vmem:[%s9387_s2 + $0x208] ss:$60 sps:$4 sm:$0xff]  }
 0x2a9   :  { %4315 = vmatmul.mubr.bf16.vlgmr.msra.gmra.mrb[0].mxu0 %v7842_v0 }
 0x2aa   :  { %4324 = vmatprep.mubr.bf16.mxu0 %v7749_v56  ;;  %4354 = vmatpush1.bf16.xpose.msra.mxu0 %v6067_v51 }
 0x2ab   :  { %4094 = vmatpush1.bf16.xpose.msra.mxu1 %v6049_v10  ;;  %934 = vperm.xlu1 %5868, %v340_v4   ;;  %v6061_v10 = vld [vmem:[%s9387_s2 + $0x10] ss:$60 sps:$4 sm:$0xff]  }
 0x2ac   :  { %839 = vperm.xlu0 %5867, %v321_v9   ;;  %4095 = vmatprep.subr.bf16.mxu1 %v6054_v16  ;;  %v6066_v4 = vld [vmem:[%s9387_s2 + $0x8c] ss:$60 sps:$4 sm:$0xff]   ;;  %v6099_v16 = vld [vmem:[%s9387_s2 + $0x284] ss:$60 sps:$4 sm:$0xff]  }
 0x2ad   :  { %4355 = vmatprep.subr.bf16.mxu0 %v6075_v7 }
 0x2af   :  { %854 = vperm.xlu1 %5868, %v324_v8  }
 0x2b0   :  { %929 = vperm.xlu0 %5867, %v339_v30   ;;  %v6097_v30 = vld [vmem:[%s9387_s2 + $0x280] ss:$60 sps:$4 sm:$0xff]  }
 0x2b1   :  { %4325 = vmatmul.mubr.bf16.gmra.mrb[4].mxu0 %v7862_v35 }
 0x2b2   :  { %4334 = vmatprep.mubr.bf16.mxu0 %v7769_v43  ;;  %4356 = vmatpush1.bf16.xpose.msra.mxu0 %v6073_v61 }
 0x2b3   :  { %4096 = vmatpush1.bf16.xpose.msra.mxu1 %v6052_v62  ;;  %944 = vperm.xlu1 %5868, %v342_v44   ;;  %v6064_v62 = vld [vmem:[%s9387_s2 + $0x88] ss:$60 sps:$4 sm:$0xff]  }
 0x2b4   :  { %849 = vperm.xlu0 %5867, %v323_v2   ;;  %4097 = vmatprep.subr.bf16.mxu1 %v6057_v23  ;;  %v6072_v44 = vld [vmem:[%s9387_s2 + $0x104] ss:$60 sps:$4 sm:$0xff]   ;;  %v6105_v23 = vld [vmem:[%s9387_s2 + $0x2fc] ss:$60 sps:$4 sm:$0xff]  }
 0x2b5   :  { %4357 = vmatprep.subr.bf16.mxu0 %v6081_v18 }
 0x2b7   :  { %864 = vperm.xlu1 %5868, %v326_v49  }
 0x2b8   :  { %939 = vperm.xlu0 %5867, %v341_v24   ;;  %v6103_v24 = vld [vmem:[%s9387_s2 + $0x2f8] ss:$60 sps:$4 sm:$0xff]  }
 0x2b9   :  { %4335 = vmatmul.mubr.bf16.gmra.mrb[8].mxu0 %v7879_v53 }
 0x2ba   :  { %4344 = vmatprep.mubr.bf16.mxu0 %v7789_v58  ;;  %4358 = vmatpush1.bf16.xpose.msra.mxu0 %v6079_v15 }
 0x2bb   :  { %4098 = vmatpush1.bf16.xpose.msra.mxu1 %v6055_v32  ;;  %954 = vperm.xlu1 %5868, %v344_v38   ;;  %v6070_v32 = vld [vmem:[%s9387_s2 + $0x100] ss:$60 sps:$4 sm:$0xff]  }
 0x2bc   :  { %859 = vperm.xlu0 %5867, %v325_v48   ;;  %4099 = vmatprep.subr.bf16.mxu1 %v6060_v33  ;;  %v6078_v38 = vld [vmem:[%s9387_s2 + $0x17c] ss:$60 sps:$4 sm:$0xff]   ;;  %v6111_v33 = vld [vmem:[%s9387_s2 + $0x374] ss:$60 sps:$4 sm:$0xff]   ;;  %v197_v48 = vld [vmem:[%s9386_s0 + $0x580] sm:$0xff] }
 0x2bd   :  { %4359 = vmatprep.subr.bf16.mxu0 %v6087_v42  ;;  %v181_v42 = vld [vmem:[%s9386_s0 + $0x500] sm:$0xff] }
 0x2bf   :  { %874 = vperm.xlu1 %5868, %v328_v59  }
 0x2c0   :  { %949 = vperm.xlu0 %5867, %v343_v19   ;;  %v198_v19 = vld [vmem:[%s9386_s0 + $0x588] sm:$0xff] }
 0x2c1   :  { %4345 = vmatmul.mubr.bf16.gmra.mrb[12].mxu0 %v7899_v27 }
 0x2c2   :  { %v1365_v13 = vpop.permute.xlu1 %1364  ;;  %4360 = vmatpush1.bf16.xpose.msra.mxu0 %v6085_v26 }
 0x2c3   :  { %4100 = vmatpush1.bf16.xpose.msra.mxu1 %v6058_v52  ;;  %4361 = vmatprep.subr.bf16.mxu0 %v6093_v46  ;;  %v182_v52 = vld [vmem:[%s9386_s0 + $0x508] sm:$0xff] }
 0x2c4   :  { %869 = vperm.xlu0 %5867, %v327_v41   ;;  %4140 = vmatprep.subr.bf16.mxu1 %v6063_v55  ;;  %v199_v41 = vld [vmem:[%s9386_s0 + $0x590] sm:$0xff] }
 0x2c6   :  { %v1285_v50 = vpop.permute.xlu1 %1284 }
 0x2c7   :  { %v1360_v51 = vpop.permute.xlu0 %1359 }
 0x2c8   :  { %v1793_v55 = vmul.f32 %v1360_v51, %v197_v48  ;;  %v6076_v51 = vld [vmem:[%s9387_s2 + $0x178] ss:$60 sps:$4 sm:$0xff]  }
 0x2ca   :  { %4102 = vmatmul.mubr.bf16.vlgmr.msra.gmra.mrb[0].mxu1 %v7924_v12  ;;  %v1375_v9 = vpop.permute.xlu1 %1374  ;;  %4362 = vmatpush1.bf16.xpose.msra.mxu0 %v6091_v5  ;;  %v1794_v5 = vmul.f32 %v1365_v13, %v198_v19  ;;  %v184_v13 = vld [vmem:[%s9386_s0 + $0x518] sm:$0xff] }
 0x2cb   :  { %v1280_v7 = vpop.permute.xlu0 %1279  ;;  %4111 = vmatprep.mubr.bf16.mxu1 %v7960_v6  ;;  %4141 = vmatpush1.bf16.xpose.msra.mxu1 %v6061_v10  ;;  %v183_v10 = vld [vmem:[%s9386_s0 + $0x510] sm:$0xff] }
 0x2cc   :  { %4142 = vmatprep.subr.bf16.mxu1 %v6066_v4  ;;  %4363 = vmatprep.subr.bf16.mxu0 %v6099_v16  ;;  %v1777_v46 = vmul.f32 %v1280_v7, %v181_v42  ;;  %v1778_v16 = vmul.f32 %v1285_v50, %v182_v52  ;;  %v1933_v7 = vpack.c.bf16 %v1794_v5, %v1793_v55  ;;  %v6109_v50 = vld [vmem:[%s9387_s2 + $0x370] ss:$60 sps:$4 sm:$0xff]  }
 0x2ce   :  { %v1295_v8 = vpop.permute.xlu1 %1294 }
 0x2cf   :  { %v1370_v61 = vpop.permute.xlu0 %1369  ;;  %v1780_v19 = vmul.f32 %v1295_v8, %v184_v13  ;;  %v203_v8 = vld [vmem:[%s9386_s0 + $0x5b0] sm:$0xff] }
 0x2d2   :  { %4112 = vmatmul.mubr.bf16.gmra.mrb[4].mxu1 %v7941_v45  ;;  %v8039_v2 = vpop.permute.xlu1 %1384  ;;  %4364 = vmatpush1.bf16.xpose.msra.mxu0 %v6097_v30  ;;  %v200_v30 = vld [vmem:[%s9386_s0 + $0x598] sm:$0xff] }
 0x2d3   :  { %v1290_v18 = vpop.permute.xlu0 %1289  ;;  %4121 = vmatprep.mubr.bf16.mxu1 %v7984_v36  ;;  %4143 = vmatpush1.bf16.xpose.msra.mxu1 %v6064_v62  ;;  %v1796_v48 = vmul.f32 %v1375_v9, %v200_v30  ;;  %v186_v9 = vld [vmem:[%s9386_s0 + $0x528] sm:$0xff] }
 0x2d4   :  { %4144 = vmatprep.subr.bf16.mxu1 %v6072_v44  ;;  %4365 = vmatprep.subr.bf16.mxu0 %v6105_v23  ;;  %v1795_v44 = vmul.f32 %v1370_v61, %v199_v41  ;;  %v6084_v23 = vld [vmem:[%s9387_s2 + $0x1f4] ss:$60 sps:$4 sm:$0xff]   ;;  %v185_v61 = vld [vmem:[%s9386_s0 + $0x520] sm:$0xff] }
 0x2d6   :  { %v1305_v49 = vpop.permute.xlu1 %1304  ;;  %v1934_v55 = vpack.c.bf16 %v1796_v48, %v1795_v44  ;;  %v189_v48 = vld [vmem:[%s9386_s0 + $0x540] sm:$0xff] }
 0x2d7   :  { %v1380_v15 = vpop.permute.xlu0 %1379 }
 0x2da   :  { %4122 = vmatmul.mubr.bf16.gmra.mrb[8].mxu1 %v7962_v34  ;;  %v8061_v59 = vpop.permute.xlu1 %1394  ;;  %4366 = vmatpush1.bf16.xpose.msra.mxu0 %v6103_v24  ;;  %v1925_v24 = vpack.c.bf16 %v1778_v16, %v1777_v46  ;;  %v187_v16 = vld [vmem:[%s9386_s0 + $0x530] sm:$0xff] }
 0x2db   :  { %v1300_v26 = vpop.permute.xlu0 %1299  ;;  %4131 = vmatprep.mubr.bf16.mxu1 %v8007_v40  ;;  %4145 = vmatpush1.bf16.xpose.msra.mxu1 %v6070_v32  ;;  %v1779_v32 = vmul.f32 %v1290_v18, %v183_v10  ;;  %v202_v18 = vld [vmem:[%s9386_s0 + $0x5a8] sm:$0xff] }
 0x2dc   :  { %4146 = vmatprep.subr.bf16.mxu1 %v6078_v38  ;;  %4367 = vmatprep.subr.bf16.mxu0 %v6111_v33  ;;  %v201_v38 = vld [vmem:[%s9386_s0 + $0x5a0] sm:$0xff]  ;;  %v6117_v33 = vld [vmem:[%s9387_s2 + $0x3ec] ss:$60 sps:$4 sm:$0xff]   ;;  %v1781_v5 = vmul.f32 %v1300_v26, %v185_v61  ;;  %v1798_v10 = vmul.f32 %v8039_v2, %v202_v18  ;;  %v188_v2 = vld [vmem:[%s9386_s0 + $0x538] sm:$0xff] }
 0x2dd   :  { %v1797_v46 = vmul.f32 %v1380_v15, %v201_v38  ;;  %v1926_v41 = vpack.c.bf16 %v1780_v19, %v1779_v32  ;;  %v204_v15 = vld [vmem:[%s9386_s0 + $0x5b8] sm:$0xff]  ;;  %v205_v32 = vld [vmem:[%s9386_s0 + $0x5c0] sm:$0xff]  ;;  %v206_v19 = vld [vmem:[%s9386_s0 + $0x5c8] sm:$0xff] }
 0x2de   :  { %v1315_v4 = vpop.permute.xlu1 %1314  ;;  %v6123_v38 = vld [vmem:[%s9387_s2 + $0x464] ss:$60 sps:$4 sm:$0xff]  }
 0x2df   :  { %v1390_v62 = vpop.permute.xlu0 %1389  ;;  %v1935_v13 = vpack.c.bf16 %v1798_v10, %v1797_v46  ;;  %v1784_v61 = vmul.f32 %v1315_v4, %v188_v2  ;;  %v207_v4 = vld [vmem:[%s9386_s0 + $0x5d0] sm:$0xff]  ;;  %v208_v10 = vld [vmem:[%s9386_s0 + $0x5d8] sm:$0xff] }
 0x2e0   :  { %v1799_v44 = vmul.f32 %v1390_v62, %v203_v8  ;;  %v1800_v62 = vmul.f32 %v8061_v59, %v204_v15  ;;  %v191_v2 = vld [vmem:[%s9386_s0 + $0x550] sm:$0xff] }
 0x2e2   :  { %4132 = vmatmul.mubr.bf16.gmra.mrb[12].mxu1 %v7986_v47  ;;  %2439 = vxpose.xlu0.c.b16.start [1/8] (narrow) %v1933_v7, 64  ;;  %v1405_v42 = vpop.permute.xlu1 %1404  ;;  %v6082_v7 = vld [vmem:[%s9387_s2 + $0x1f0] ss:$60 sps:$4 sm:$0xff]  }
 0x2e3   :  { %2423 = vxpose.xlu1.c.b16.start [1/8] (narrow) %v1925_v24, 64  ;;  %v1310_v52 = vpop.permute.xlu0 %1309  ;;  %4147 = vmatpush1.bf16.xpose.msra.mxu1 %v6076_v51  ;;  %v1782_v51 = vmul.f32 %v1305_v49, %v186_v9  ;;  %v6090_v49 = vld [vmem:[%s9387_s2 + $0x26c] ss:$60 sps:$4 sm:$0xff]  }
 0x2e4   :  { %4148 = vmatprep.subr.bf16.mxu1 %v6084_v23  ;;  %4368 = vmatpush1.bf16.xpose.msra.mxu0 %v6109_v50  ;;  %v6115_v23 = vld [vmem:[%s9387_s2 + $0x3e8] ss:$60 sps:$4 sm:$0xff]   ;;  %v1783_v24 = vmul.f32 %v1310_v52, %v187_v16  ;;  %v1936_v52 = vpack.c.bf16 %v1800_v62, %v1799_v44  ;;  %v6129_v44 = vld [vmem:[%s9387_s2 + $0x4dc] ss:$60 sps:$4 sm:$0xff]  }
 0x2e5   :  { %4369 = vmatprep.subr.bf16.mxu0 %v6117_v33  ;;  %v1927_v50 = vpack.c.bf16 %v1782_v51, %v1781_v5  ;;  %v6088_v51 = vld [vmem:[%s9387_s2 + $0x268] ss:$60 sps:$4 sm:$0xff]  }
 0x2e6   :  { %2440 = vxpose.xlu0.c.b16.cont [2/8] (narrow) %v1934_v55, 64  ;;  %v1325_v30 = vpop.permute.xlu1 %1324  ;;  %v190_v55 = vld [vmem:[%s9386_s0 + $0x548] sm:$0xff]  ;;  %v1928_v9 = vpack.c.bf16 %v1784_v61, %v1783_v24 }
 0x2e7   :  { %2424 = vxpose.xlu1.c.b16.cont [2/8] (narrow) %v1926_v41, 64  ;;  %v1400_v26 = vpop.permute.xlu0 %1399  ;;  %v1802_v41 = vmul.f32 %v1405_v42, %v206_v19  ;;  %v1786_v8 = vmul.f32 %v1325_v30, %v190_v55  ;;  %v6121_v42 = vld [vmem:[%s9387_s2 + $0x460] ss:$60 sps:$4 sm:$0xff]   ;;  %v210_v62 = vld [vmem:[%s9386_s0 + $0x5e8] sm:$0xff] }
 0x2e8   :  { %v1801_v59 = vmul.f32 %v1400_v26, %v205_v32 }
 0x2ea   :  { %2441 = vxpose.xlu0.c.b16.cont [3/8] (narrow) %v1935_v13, 64  ;;  %v1415_v33 = vpop.permute.xlu1 %1414  ;;  %v1937_v15 = vpack.c.bf16 %v1802_v41, %v1801_v59  ;;  %v192_v13 = vld [vmem:[%s9386_s0 + $0x558] sm:$0xff] }
 0x2eb   :  { %2425 = vxpose.xlu1.c.b16.cont [3/8] (narrow) %v1927_v50, 64  ;;  %v1320_v18 = vpop.permute.xlu0 %1319  ;;  %4149 = vmatpush1.bf16.xpose.msra.mxu1 %v6082_v7  ;;  %v6096_v7 = vld [vmem:[%s9387_s2 + $0x2e4] ss:$60 sps:$4 sm:$0xff]   ;;  %v6102_v59 = vld [vmem:[%s9387_s2 + $0x35c] ss:$60 sps:$4 sm:$0xff]  }
 0x2ec   :  { %4150 = vmatprep.subr.bf16.mxu1 %v6090_v49  ;;  %4370 = vmatpush1.bf16.xpose.msra.mxu0 %v6115_v23  ;;  %v1785_v46 = vmul.f32 %v1320_v18, %v189_v48  ;;  %v1804_v49 = vmul.f32 %v1415_v33, %v208_v10  ;;  %v209_v48 = vld [vmem:[%s9386_s0 + $0x5e0] sm:$0xff] }
 0x2ed   :  { %4371 = vmatprep.subr.bf16.mxu0 %v6123_v38  ;;  %v6094_v18 = vld [vmem:[%s9387_s2 + $0x2e0] ss:$60 sps:$4 sm:$0xff]  }
 0x2ee   :  { %2442 = vxpose.xlu0.c.b16.cont [4/8] (narrow) %v1936_v52, 64  ;;  %v1335_v5 = vpop.permute.xlu1 %1334  ;;  %v1929_v30 = vpack.c.bf16 %v1786_v8, %v1785_v46  ;;  %v193_v46 = vld [vmem:[%s9386_s0 + $0x560] sm:$0xff]  ;;  %v6135_v8 = vld [vmem:[%s9387_s2 + $0x554] ss:$60 sps:$4 sm:$0xff]  }
 0x2ef   :  { %2426 = vxpose.xlu1.c.b16.cont [4/8] (narrow) %v1928_v9, 64  ;;  %v1410_v16 = vpop.permute.xlu0 %1409  ;;  %v1788_v24 = vmul.f32 %v1335_v5, %v192_v13  ;;  %v194_v9 = vld [vmem:[%s9386_s0 + $0x568] sm:$0xff]  ;;  %v6100_v13 = vld [vmem:[%s9387_s2 + $0x358] ss:$60 sps:$4 sm:$0xff]  }
 0x2f0   :  { %v1803_v26 = vmul.f32 %v1410_v16, %v207_v4  ;;  %v6127_v4 = vld [vmem:[%s9387_s2 + $0x4d8] ss:$60 sps:$4 sm:$0xff]  }
 0x2f2   :  { %2443 = vxpose.xlu0.c.b16.cont [5/8] (narrow) %v1937_v15, 64  ;;  %v1425_v23 = vpop.permute.xlu1 %1424  ;;  %v1938_v32 = vpack.c.bf16 %v1804_v49, %v1803_v26  ;;  %v212_v15 = vld [vmem:[%s9386_s0 + $0x5f8] sm:$0xff]  ;;  %v211_v26 = vld [vmem:[%s9386_s0 + $0x5f0] sm:$0xff] }
 0x2f3   :  { %2427 = vxpose.xlu1.c.b16.cont [5/8] (narrow) %v1929_v30, 64  ;;  %v1330_v50 = vpop.permute.xlu0 %1329  ;;  %4151 = vmatpush1.bf16.xpose.msra.mxu1 %v6088_v51  ;;  %v1806_v52 = vmul.f32 %v1425_v23, %v210_v62  ;;  %v6108_v49 = vld [vmem:[%s9387_s2 + $0x3d4] ss:$60 sps:$4 sm:$0xff]   ;;  %v196_v23 = vld [vmem:[%s9386_s0 + $0x578] sm:$0xff]  ;;  %v6141_v62 = vld [vmem:[%s9387_s2 + $0x5cc] ss:$60 sps:$4 sm:$0xff]  }
 0x2f4   :  { %v1787_v38 = vmul.f32 %v1330_v50, %v191_v2  ;;  %4152 = vmatprep.subr.bf16.mxu1 %v6096_v7  ;;  %4372 = vmatpush1.bf16.xpose.msra.mxu0 %v6121_v42  ;;  %v195_v50 = vld [vmem:[%s9386_s0 + $0x570] sm:$0xff] }
 0x2f5   :  { %4373 = vmatprep.subr.bf16.mxu0 %v6129_v44 }
 0x2f6   :  { %v1930_v33 = vpack.c.bf16 %v1788_v24, %v1787_v38  ;;  %2444 = vxpose.xlu0.c.b16.cont [6/8] (narrow) %v1938_v32, 64  ;;  %v1345_v61 = vpop.permute.xlu1 %1344  ;;  %v6133_v24 = vld [vmem:[%s9387_s2 + $0x550] ss:$60 sps:$4 sm:$0xff]  }
 0x2f7   :  { %v1420_v19 = vpop.permute.xlu0 %1419  ;;  %v1790_v16 = vmul.f32 %v1345_v61, %v194_v9  ;;  %v6106_v9 = vld [vmem:[%s9387_s2 + $0x3d0] ss:$60 sps:$4 sm:$0xff]  }
 0x2f8   :  { %v1805_v55 = vmul.f32 %v1420_v19, %v209_v48  ;;  %2428 = vxpose.xlu1.c.b16.cont [6/8] (narrow) %v1930_v33, 64  ;;  %v102_v19 = vld [vmem:[%s9386_s0 + $0x288] sm:$0xff] }
 0x2fa   :  { %v1939_v41 = vpack.c.bf16 %v1806_v52, %v1805_v55  ;;  %v1435_v5 = vpop.permute.xlu1 %1434 }
 0x2fb   :  { %v1340_v10 = vpop.permute.xlu0 %1339  ;;  %4153 = vmatpush1.bf16.xpose.msra.mxu1 %v6094_v18  ;;  %v1808_v2 = vmul.f32 %v1435_v5, %v212_v15  ;;  %v101_v18 = vld [vmem:[%s9386_s0 + $0x280] sm:$0xff]  ;;  %v86_v5 = vld [vmem:[%s9386_s0 + $0x208] sm:$0xff] }
 0x2fc   :  { %v1789_v51 = vmul.f32 %v1340_v10, %v193_v46  ;;  %2445 = vxpose.xlu0.c.b16.cont [7/8] (narrow) %v1939_v41, 64  ;;  %4154 = vmatprep.subr.bf16.mxu1 %v6102_v59  ;;  %v6114_v41 = vld [vmem:[%s9387_s2 + $0x44c] ss:$60 sps:$4 sm:$0xff]   ;;  %v6147_v15 = vld [vmem:[%s9387_s2 + $0x644] ss:$60 sps:$4 sm:$0xff]  }
 0x2fd   :  { %4374 = vmatpush1.bf16.xpose.msra.mxu0 %v6127_v4  ;;  %v6139_v10 = vld [vmem:[%s9387_s2 + $0x5c8] ss:$60 sps:$4 sm:$0xff]  }
 0x2fe   :  { %v1931_v7 = vpack.c.bf16 %v1790_v16, %v1789_v51  ;;  %v1355_v42 = vpop.permute.xlu1 %1354  ;;  %4375 = vmatprep.subr.bf16.mxu0 %v6135_v8  ;;  %v85_v8 = vld [vmem:[%s9386_s0 + $0x200] sm:$0xff] }
 0x2ff   :  { %v1430_v30 = vpop.permute.xlu0 %1429  ;;  %v1792_v33 = vmul.f32 %v1355_v42, %v196_v23  ;;  %v6112_v23 = vld [vmem:[%s9387_s2 + $0x448] ss:$60 sps:$4 sm:$0xff]  }
 0x300   :  { %v1807_v44 = vmul.f32 %v1430_v30, %v211_v26  ;;  %2429 = vxpose.xlu1.c.b16.cont [7/8] (narrow) %v1931_v7, 64  ;;  %v104_v30 = vld [vmem:[%s9386_s0 + $0x298] sm:$0xff] }
 0x302   :  { %v1940_v32 = vpack.c.bf16 %v1808_v2, %v1807_v44  ;;  %v885_v38 = vpop.permute.xlu1 %884 }
 0x303   :  { %v1350_v48 = vpop.permute.xlu0 %1349  ;;  %4155 = vmatpush1.bf16.xpose.msra.mxu1 %v6100_v13  ;;  %v1698_v46 = vmul.f32 %v885_v38, %v102_v19  ;;  %v103_v13 = vld [vmem:[%s9386_s0 + $0x290] sm:$0xff]  ;;  %v88_v38 = vld [vmem:[%s9386_s0 + $0x218] sm:$0xff] }
 0x304   :  { %v1791_v61 = vmul.f32 %v1350_v48, %v195_v50  ;;  %2446 = vxpose.xlu0.c.b16.end [8/8] (narrow) %v1940_v32, 64  ;;  %4156 = vmatprep.subr.bf16.mxu1 %v6108_v49  ;;  %v6120_v32 = vld [vmem:[%s9387_s2 + $0x4c4] ss:$60 sps:$4 sm:$0xff]   ;;  %v6153_v19 = vld [vmem:[%s9387_s2 + $0x6bc] ss:$60 sps:$4 sm:$0xff]  }
 0x305   :  { %4376 = vmatpush1.bf16.xpose.msra.mxu0 %v6133_v24  ;;  %v6145_v48 = vld [vmem:[%s9387_s2 + $0x640] ss:$60 sps:$4 sm:$0xff]  }
 0x306   :  { %v1932_v52 = vpack.c.bf16 %v1792_v33, %v1791_v61  ;;  %v805_v55 = vpop.permute.xlu1 %804  ;;  %4377 = vmatprep.subr.bf16.mxu0 %v6141_v62  ;;  %v87_v62 = vld [vmem:[%s9386_s0 + $0x210] sm:$0xff] }
 0x307   :  { %v880_v59 = vpop.permute.xlu0 %879  ;;  %v1682_v7 = vmul.f32 %v805_v55, %v86_v5  ;;  %v6118_v5 = vld [vmem:[%s9387_s2 + $0x4c0] ss:$60 sps:$4 sm:$0xff]  }
 0x308   :  { %v1697_v4 = vmul.f32 %v880_v59, %v101_v18  ;;  %2430 = vxpose.xlu1.c.b16.end [8/8] (narrow) %v1932_v52, 64  ;;  %v106_v59 = vld [vmem:[%s9386_s0 + $0x2a8] sm:$0xff] }
 0x30a   :  { %v1885_v16 = vpack.c.bf16 %v1698_v46, %v1697_v4  ;;  %v895_v51 = vpop.permute.xlu1 %894 }
 0x30b   :  { %v800_v26 = vpop.permute.xlu0 %799  ;;  %4157 = vmatpush1.bf16.xpose.msra.mxu1 %v6106_v9  ;;  %v1700_v50 = vmul.f32 %v895_v51, %v104_v30  ;;  %v105_v9 = vld [vmem:[%s9386_s0 + $0x2a0] sm:$0xff]  ;;  %v90_v51 = vld [vmem:[%s9386_s0 + $0x228] sm:$0xff]  ;;  %v6156_v30 = vld [vmem:[%s9387_s2 + $0x734] ss:$60 sps:$4 sm:$0xff]  }
 0x30c   :  { %v1681_v42 = vmul.f32 %v800_v26, %v85_v8  ;;  %2343 = vxpose.xlu0.c.b16.start [1/8] (narrow) %v1885_v16, 64  ;;  %4158 = vmatprep.subr.bf16.mxu1 %v6114_v41  ;;  %v6126_v16 = vld [vmem:[%s9387_s2 + $0x53c] ss:$60 sps:$4 sm:$0xff]  }
 0x30d   :  { %4378 = vmatpush1.bf16.xpose.msra.mxu0 %v6139_v10  ;;  %v6151_v26 = vld [vmem:[%s9387_s2 + $0x6b8] ss:$60 sps:$4 sm:$0xff]  }
 0x30e   :  { %v1877_v2 = vpack.c.bf16 %v1682_v7, %v1681_v42  ;;  %v815_v44 = vpop.permute.xlu1 %814  ;;  %4379 = vmatprep.subr.bf16.mxu0 %v6147_v15  ;;  %v89_v15 = vld [vmem:[%s9386_s0 + $0x220] sm:$0xff] }
 0x30f   :  { %v890_v49 = vpop.permute.xlu0 %889  ;;  %v1684_v52 = vmul.f32 %v815_v44, %v88_v38  ;;  %v6124_v38 = vld [vmem:[%s9387_s2 + $0x538] ss:$60 sps:$4 sm:$0xff]  }
 0x310   :  { %v1699_v24 = vmul.f32 %v890_v49, %v103_v13  ;;  %2327 = vxpose.xlu1.c.b16.start [1/8] (narrow) %v1877_v2, 64  ;;  %v108_v49 = vld [vmem:[%s9386_s0 + $0x2b8] sm:$0xff] }
 0x312   :  { %v1886_v33 = vpack.c.bf16 %v1700_v50, %v1699_v24  ;;  %v905_v61 = vpop.permute.xlu1 %904 }
 0x313   :  { %v810_v18 = vpop.permute.xlu0 %809  ;;  %4159 = vmatpush1.bf16.xpose.msra.mxu1 %v6112_v23  ;;  %v1702_v8 = vmul.f32 %v905_v61, %v106_v59  ;;  %v107_v23 = vld [vmem:[%s9386_s0 + $0x2b0] sm:$0xff]  ;;  %v92_v61 = vld [vmem:[%s9386_s0 + $0x238] sm:$0xff] }
 0x314   :  { %v1683_v55 = vmul.f32 %v810_v18, %v87_v62  ;;  %2344 = vxpose.xlu0.c.b16.cont [2/8] (narrow) %v1886_v33, 64  ;;  %4160 = vmatprep.subr.bf16.mxu1 %v6120_v32  ;;  %v6132_v33 = vld [vmem:[%s9387_s2 + $0x5b4] ss:$60 sps:$4 sm:$0xff]  }
 0x315   :  { %4380 = vmatpush1.bf16.xpose.msra.mxu0 %v6145_v48  ;;  %v6154_v18 = vld [vmem:[%s9387_s2 + $0x730] ss:$60 sps:$4 sm:$0xff]  }
 0x316   :  { %v1878_v46 = vpack.c.bf16 %v1684_v52, %v1683_v55  ;;  %v825_v4 = vpop.permute.xlu1 %824  ;;  %4381 = vmatprep.subr.bf16.mxu0 %v6153_v19  ;;  %v91_v19 = vld [vmem:[%s9386_s0 + $0x230] sm:$0xff] }
 0x317   :  { %v900_v41 = vpop.permute.xlu0 %899  ;;  %v1686_v2 = vmul.f32 %v825_v4, %v90_v51  ;;  %v110_v4 = vld [vmem:[%s9386_s0 + $0x2c8] sm:$0xff] }
 0x318   :  { %v1701_v10 = vmul.f32 %v900_v41, %v105_v9  ;;  %2328 = vxpose.xlu1.c.b16.cont [2/8] (narrow) %v1878_v46, 64  ;;  %v109_v41 = vld [vmem:[%s9386_s0 + $0x2c0] sm:$0xff] }
 0x31a   :  { %v1887_v7 = vpack.c.bf16 %v1702_v8, %v1701_v10  ;;  %v915_v42 = vpop.permute.xlu1 %914 }
 0x31b   :  { %v820_v13 = vpop.permute.xlu0 %819  ;;  %4161 = vmatpush1.bf16.xpose.msra.mxu1 %v6118_v5  ;;  %v1704_v62 = vmul.f32 %v915_v42, %v108_v49  ;;  %v93_v42 = vld [vmem:[%s9386_s0 + $0x240] sm:$0xff] }
 0x31c   :  { %v1685_v44 = vmul.f32 %v820_v13, %v89_v15  ;;  %2345 = vxpose.xlu0.c.b16.cont [3/8] (narrow) %v1887_v7, 64  ;;  %4162 = vmatprep.subr.bf16.mxu1 %v6126_v16  ;;  %v6130_v16 = vld [vmem:[%s9387_s2 + $0x5b0] ss:$60 sps:$4 sm:$0xff]  }
 0x31d   :  { %4382 = vmatpush1.bf16.xpose.msra.mxu0 %v6151_v26  ;;  %v6138_v26 = vld [vmem:[%s9387_s2 + $0x62c] ss:$60 sps:$4 sm:$0xff]  }
 0x31e   :  { %v1879_v50 = vpack.c.bf16 %v1686_v2, %v1685_v44  ;;  %v835_v24 = vpop.permute.xlu1 %834  ;;  %4383 = vmatprep.subr.bf16.mxu0 %v6156_v30  ;;  %v94_v7 = vld [vmem:[%s9386_s0 + $0x248] sm:$0xff] }
 0x31f   :  { %v910_v32 = vpop.permute.xlu0 %909  ;;  %v1688_v9 = vmul.f32 %v835_v24, %v92_v61  ;;  %v6144_v61 = vld [vmem:[%s9387_s2 + $0x6a4] ss:$60 sps:$4 sm:$0xff]  }
 0x320   :  { %v1703_v48 = vmul.f32 %v910_v32, %v107_v23  ;;  %2329 = vxpose.xlu1.c.b16.cont [3/8] (narrow) %v1879_v50, 64  ;;  %v112_v23 = vld [vmem:[%s9386_s0 + $0x2d8] sm:$0xff]  ;;  %v111_v50 = vld [vmem:[%s9386_s0 + $0x2d0] sm:$0xff] }
 0x322   :  { %v1888_v52 = vpack.c.bf16 %v1704_v62, %v1703_v48  ;;  %v925_v55 = vpop.permute.xlu1 %924  ;;  %v6136_v62 = vld [vmem:[%s9387_s2 + $0x628] ss:$60 sps:$4 sm:$0xff]  }
 0x323   :  { %v830_v59 = vpop.permute.xlu0 %829  ;;  %4163 = vmatpush1.bf16.xpose.msra.mxu1 %v6124_v38  ;;  %v1706_v51 = vmul.f32 %v925_v55, %v110_v4  ;;  %v114_v4 = vld [vmem:[%s9386_s0 + $0x2e8] sm:$0xff] }
 0x324   :  { %v1687_v46 = vmul.f32 %v830_v59, %v91_v19  ;;  %2346 = vxpose.xlu0.c.b16.cont [4/8] (narrow) %v1888_v52, 64  ;;  %4164 = vmatprep.subr.bf16.mxu1 %v6132_v33  ;;  %v96_v19 = vld [vmem:[%s9386_s0 + $0x258] sm:$0xff] }
 0x325   :  { %4384 = vmatpush1.bf16.xpose.msra.mxu0 %v6154_v18  ;;  %v95_v18 = vld [vmem:[%s9386_s0 + $0x250] sm:$0xff] }
 0x326   :  { %v1880_v5 = vpack.c.bf16 %v1688_v9, %v1687_v46  ;;  %v845_v8 = vpop.permute.xlu1 %844 }
 0x327   :  { %v920_v10 = vpop.permute.xlu0 %919  ;;  %v1690_v44 = vmul.f32 %v845_v8, %v94_v7  ;;  %v98_v7 = vld [vmem:[%s9386_s0 + $0x268] sm:$0xff] }
 0x328   :  { %v1705_v15 = vmul.f32 %v920_v10, %v109_v41  ;;  %2330 = vxpose.xlu1.c.b16.cont [4/8] (narrow) %v1880_v5, 64  ;;  %v113_v41 = vld [vmem:[%s9386_s0 + $0x2e0] sm:$0xff] }
 0x32a   :  { %v1889_v30 = vpack.c.bf16 %v1706_v51, %v1705_v15  ;;  %v935_v13 = vpop.permute.xlu1 %934 }
 0x32b   :  { %v840_v2 = vpop.permute.xlu0 %839  ;;  %4165 = vmatpush1.bf16.xpose.msra.mxu1 %v6130_v16  ;;  %v1708_v48 = vmul.f32 %v935_v13, %v112_v23  ;;  %v6142_v16 = vld [vmem:[%s9387_s2 + $0x6a0] ss:$60 sps:$4 sm:$0xff]  }
 0x32c   :  { %v1689_v49 = vmul.f32 %v840_v2, %v93_v42  ;;  %2347 = vxpose.xlu0.c.b16.cont [5/8] (narrow) %v1889_v30, 64  ;;  %4166 = vmatprep.subr.bf16.mxu1 %v6138_v26  ;;  %v6150_v26 = vld [vmem:[%s9387_s2 + $0x71c] ss:$60 sps:$4 sm:$0xff]   ;;  %v97_v42 = vld [vmem:[%s9386_s0 + $0x260] sm:$0xff] }
 0x32d   :  { %v116_v23 = vld [vmem:[%s9386_s0 + $0x2f8] sm:$0xff] }
 0x32e   :  { %v1881_v24 = vpack.c.bf16 %v1690_v44, %v1689_v49  ;;  %v855_v32 = vpop.permute.xlu1 %854 }
 0x32f   :  { %v930_v38 = vpop.permute.xlu0 %929  ;;  %v1692_v9 = vmul.f32 %v855_v32, %v96_v19 }
 0x330   :  { %v1707_v33 = vmul.f32 %v930_v38, %v111_v50  ;;  %2331 = vxpose.xlu1.c.b16.cont [5/8] (narrow) %v1881_v24, 64  ;;  %v115_v50 = vld [vmem:[%s9386_s0 + $0x2f0] sm:$0xff] }
 0x331   :  { %v6148_v38 = vld [vmem:[%s9387_s2 + $0x718] ss:$60 sps:$4 sm:$0xff]  }
 0x332   :  { %v1890_v52 = vpack.c.bf16 %v1708_v48, %v1707_v33  ;;  %v945_v55 = vpop.permute.xlu1 %944  ;;  %v6159_v33 = vld [vmem:[%s9387_s2 + $0x78c] ss:$60 sps:$4 sm:$0xff]  }
 0x333   :  { %v850_v59 = vpop.permute.xlu0 %849  ;;  %4167 = vmatpush1.bf16.xpose.msra.mxu1 %v6136_v62  ;;  %v1710_v51 = vmul.f32 %v945_v55, %v114_v4  ;;  %v458_v4 = vld [vmem:[%s9385_s1 + $0x688] sm:$0xff] }
 0x334   :  { %v1691_v46 = vmul.f32 %v850_v59, %v95_v18  ;;  %2348 = vxpose.xlu0.c.b16.cont [6/8] (narrow) %v1890_v52, 64  ;;  %4168 = vmatprep.subr.bf16.mxu1 %v6144_v61  ;;  %v100_v61 = vld [vmem:[%s9386_s0 + $0x278] sm:$0xff]  ;;  %v99_v18 = vld [vmem:[%s9386_s0 + $0x270] sm:$0xff] }
 0x336   :  { %v1882_v5 = vpack.c.bf16 %v1692_v9, %v1691_v46  ;;  %v865_v8 = vpop.permute.xlu1 %864 }
 0x337   :  { %v940_v10 = vpop.permute.xlu0 %939  ;;  %v1694_v44 = vmul.f32 %v865_v8, %v98_v7  ;;  %v441_v8 = vld [vmem:[%s9385_s1 + $0x600] sm:$0xff]  ;;  %v444_v7 = vld [vmem:[%s9385_s1 + $0x618] sm:$0xff] }
 0x338   :  { %v1709_v15 = vmul.f32 %v940_v10, %v113_v41  ;;  %2332 = vxpose.xlu1.c.b16.cont [6/8] (narrow) %v1882_v5, 64  ;;  %v457_v41 = vld [vmem:[%s9385_s1 + $0x680] sm:$0xff]  ;;  %v442_v5 = vld [vmem:[%s9385_s1 + $0x608] sm:$0xff] }
 0x33a   :  { %v1891_v30 = vpack.c.bf16 %v1710_v51, %v1709_v15  ;;  %v955_v13 = vpop.permute.xlu1 %954  ;;  %v459_v51 = vld [vmem:[%s9385_s1 + $0x690] sm:$0xff] }
 0x33b   :  { %v860_v2 = vpop.permute.xlu0 %859  ;;  %4169 = vmatpush1.bf16.xpose.msra.mxu1 %v6142_v16  ;;  %v1712_v62 = vmul.f32 %v955_v13, %v116_v23  ;;  %v460_v16 = vld [vmem:[%s9385_s1 + $0x698] sm:$0xff]  ;;  %v6175_v13 = vld [vmem:[%s9387_s2 + $0x30] ss:$60 sps:$4 sm:$0xff]  }
 0x33c   :  { %v1693_v49 = vmul.f32 %v860_v2, %v97_v42  ;;  %2349 = vxpose.xlu0.c.b16.cont [7/8] (narrow) %v1891_v30, 64  ;;  %4170 = vmatprep.subr.bf16.mxu1 %v6150_v26  ;;  %v443_v42 = vld [vmem:[%s9385_s1 + $0x610] sm:$0xff]  ;;  %v462_v2 = vld [vmem:[%s9385_s1 + $0x6a8] sm:$0xff] }
 0x33d   :  { %v6177_v30 = vld [vmem:[%s9387_s2 + $0x34] ss:$60 sps:$4 sm:$0xff]  }
 0x33e   :  { %v1883_v24 = vpack.c.bf16 %v1694_v44, %v1693_v49  ;;  %v875_v19 = vpop.permute.xlu1 %874  ;;  %4424 = vmatprep.subr.bf16.mxu0 %v6177_v30  ;;  %v461_v44 = vld [vmem:[%s9385_s1 + $0x6a0] sm:$0xff]  ;;  %v6198_v30 = vld [vmem:[%s9387_s2 + $0x214] ss:$60 sps:$4 sm:$0xff]  }
 0x33f   :  { %v950_v32 = vpop.permute.xlu0 %949  ;;  %v1696_v59 = vmul.f32 %v875_v19, %v100_v61  ;;  %v448_v19 = vld [vmem:[%s9385_s1 + $0x638] sm:$0xff] }
 0x340   :  { %v1711_v48 = vmul.f32 %v950_v32, %v115_v50  ;;  %2333 = vxpose.xlu1.c.b16.cont [7/8] (narrow) %v1883_v24, 64  ;;  %v446_v50 = vld [vmem:[%s9385_s1 + $0x628] sm:$0xff]  ;;  %v445_v24 = vld [vmem:[%s9385_s1 + $0x620] sm:$0xff] }
 0x341   :  { %v6183_v32 = vld [vmem:[%s9387_s2 + $0xac] ss:$60 sps:$4 sm:$0xff]  }
 0x342   :  { %v1892_v52 = vpack.c.bf16 %v1712_v62, %v1711_v48  ;;  %v464_v62 = vld [vmem:[%s9385_s1 + $0x6b8] sm:$0xff]  ;;  %v463_v48 = vld [vmem:[%s9385_s1 + $0x6b0] sm:$0xff] }
 0x343   :  { %v870_v55 = vpop.permute.xlu0 %869  ;;  %4171 = vmatpush1.bf16.xpose.msra.mxu1 %v6148_v38  ;;  %v6181_v38 = vld [vmem:[%s9387_s2 + $0xa8] ss:$60 sps:$4 sm:$0xff]  }
 0x344   :  { %v1695_v9 = vmul.f32 %v870_v55, %v99_v18  ;;  %2350 = vxpose.xlu0.c.b16.end [8/8] (narrow) %v1892_v52, 64  ;;  %4630 = vmatprep.subr.bf16.mxu1 %v6159_v33  ;;  %v447_v18 = vld [vmem:[%s9385_s1 + $0x630] sm:$0xff]  ;;  %v6189_v52 = vld [vmem:[%s9387_s2 + $0x124] ss:$60 sps:$4 sm:$0xff]  }
 0x345   :  { %v6187_v55 = vld [vmem:[%s9387_s2 + $0x120] ss:$60 sps:$4 sm:$0xff]  }
 0x346   :  { %v1884_v46 = vpack.c.bf16 %v1696_v59, %v1695_v9  ;;  %v466_v59 = vld [vmem:[%s9385_s1 + $0x6c8] sm:$0xff]  ;;  %v465_v9 = vld [vmem:[%s9385_s1 + $0x6c0] sm:$0xff] }
 0x348   :  { %2334 = vxpose.xlu1.c.b16.end [8/8] (narrow) %v1884_v46, 64 }
 0x34c   :  { %1524 = vperm.xlu1 %5868, %v458_v4   ;;  %v450_v4 = vld [vmem:[%s9385_s1 + $0x648] sm:$0xff] }
 0x34d   :  { %1519 = vperm.xlu0 %5867, %v457_v41   ;;  %v449_v41 = vld [vmem:[%s9385_s1 + $0x640] sm:$0xff] }
 0x34e   :  { %v8394_v10 = vpop.trf.xlu0 }
 0x34f   :  { %4385 = vmatprep.mubr.bf16.mxu0 %v8394_v10 }
 0x350   :  { %1444 = vperm.xlu1 %5868, %v442_v5   ;;  %v6195_v5 = vld [vmem:[%s9387_s2 + $0x19c] ss:$60 sps:$4 sm:$0xff]  }
 0x351   :  { %1439 = vperm.xlu0 %5867, %v441_v8   ;;  %v6193_v8 = vld [vmem:[%s9387_s2 + $0x198] ss:$60 sps:$4 sm:$0xff]  }
 0x352   :  { %v8403_v15 = vpop.trf.xlu1  ;;  %v8405_v26 = vpop.trf.xlu0 }
 0x353   :  { %4386 = vmatmul.mubr.bf16.vlgmr.msra.gmra.mrb[0].mxu0 %v8403_v15 }
 0x354   :  { %1534 = vperm.xlu1 %5868, %v460_v16   ;;  %4395 = vmatprep.mubr.bf16.mxu0 %v8405_v26  ;;  %v468_v16 = vld [vmem:[%s9385_s1 + $0x6d8] sm:$0xff] }
 0x355   :  { %1529 = vperm.xlu0 %5867, %v459_v51   ;;  %4425 = vmatpush1.bf16.xpose.msra.mxu0 %v6175_v13  ;;  %v467_v51 = vld [vmem:[%s9385_s1 + $0x6d0] sm:$0xff] }
 0x356   :  { %v8427_v49 = vpop.trf.xlu1  ;;  %v8429_v23 = vpop.trf.xlu0  ;;  %4426 = vmatprep.subr.bf16.mxu0 %v6183_v32  ;;  %v6196_v13 = vld [vmem:[%s9387_s2 + $0x210] ss:$60 sps:$4 sm:$0xff]  }
 0x357   :  { %v6204_v32 = vld [vmem:[%s9387_s2 + $0x28c] ss:$60 sps:$4 sm:$0xff]  }
 0x358   :  { %1454 = vperm.xlu1 %5868, %v444_v7   ;;  %v452_v7 = vld [vmem:[%s9385_s1 + $0x658] sm:$0xff] }
 0x359   :  { %1449 = vperm.xlu0 %5867, %v443_v42   ;;  %v451_v42 = vld [vmem:[%s9385_s1 + $0x650] sm:$0xff] }
 0x35a   :  { %v8451_v33 = vpop.trf.xlu1  ;;  %v8453_v61 = vpop.trf.xlu0 }
 0x35b   :  { %4396 = vmatmul.mubr.bf16.gmra.mrb[4].mxu0 %v8427_v49 }
 0x35c   :  { %1544 = vperm.xlu1 %5868, %v462_v2   ;;  %4405 = vmatprep.mubr.bf16.mxu0 %v8429_v23  ;;  %v470_v2 = vld [vmem:[%s9385_s1 + $0x6e8] sm:$0xff] }
 0x35d   :  { %1539 = vperm.xlu0 %5867, %v461_v44   ;;  %4427 = vmatpush1.bf16.xpose.msra.mxu0 %v6181_v38  ;;  %v469_v44 = vld [vmem:[%s9385_s1 + $0x6e0] sm:$0xff] }
 0x35e   :  { %4428 = vmatprep.subr.bf16.mxu0 %v6189_v52  ;;  %v8475_v46 = vpop.trf.xlu1  ;;  %v6202_v38 = vld [vmem:[%s9387_s2 + $0x288] ss:$60 sps:$4 sm:$0xff]  }
 0x35f   :  { %v6210_v52 = vld [vmem:[%s9387_s2 + $0x304] ss:$60 sps:$4 sm:$0xff]  }
 0x360   :  { %1464 = vperm.xlu1 %5868, %v446_v50   ;;  %v454_v50 = vld [vmem:[%s9385_s1 + $0x668] sm:$0xff] }
 0x361   :  { %1459 = vperm.xlu0 %5867, %v445_v24   ;;  %v453_v24 = vld [vmem:[%s9385_s1 + $0x660] sm:$0xff] }
 0x363   :  { %4406 = vmatmul.mubr.bf16.gmra.mrb[8].mxu0 %v8451_v33 }
 0x364   :  { %1554 = vperm.xlu1 %5868, %v464_v62   ;;  %4415 = vmatprep.mubr.bf16.mxu0 %v8453_v61  ;;  %v472_v62 = vld [vmem:[%s9385_s1 + $0x6f8] sm:$0xff] }
 0x365   :  { %1549 = vperm.xlu0 %5867, %v463_v48   ;;  %4429 = vmatpush1.bf16.xpose.msra.mxu0 %v6187_v55  ;;  %v471_v48 = vld [vmem:[%s9385_s1 + $0x6f0] sm:$0xff]  ;;  %v6208_v55 = vld [vmem:[%s9387_s2 + $0x300] ss:$60 sps:$4 sm:$0xff]  }
 0x366   :  { %4430 = vmatprep.subr.bf16.mxu0 %v6195_v5 }
 0x368   :  { %1474 = vperm.xlu1 %5868, %v448_v19   ;;  %v456_v19 = vld [vmem:[%s9385_s1 + $0x678] sm:$0xff] }
 0x369   :  { %1469 = vperm.xlu0 %5867, %v447_v18   ;;  %v455_v18 = vld [vmem:[%s9385_s1 + $0x670] sm:$0xff] }
 0x36b   :  { %4416 = vmatmul.mubr.bf16.gmra.mrb[12].mxu0 %v8475_v46 }
 0x36c   :  { %1564 = vperm.xlu1 %5868, %v466_v59   ;;  %v474_v59 = vld [vmem:[%s9385_s1 + $0x708] sm:$0xff] }
 0x36d   :  { %1559 = vperm.xlu0 %5867, %v465_v9   ;;  %4431 = vmatpush1.bf16.xpose.msra.mxu0 %v6193_v8  ;;  %v473_v9 = vld [vmem:[%s9385_s1 + $0x700] sm:$0xff]  ;;  %v6216_v8 = vld [vmem:[%s9387_s2 + $0x37c] ss:$60 sps:$4 sm:$0xff]  }
 0x36e   :  { %4432 = vmatprep.subr.bf16.mxu0 %v6198_v30 }
 0x370   :  { %1484 = vperm.xlu1 %5868, %v450_v4   ;;  %v476_v4 = vld [vmem:[%s9385_s1 + $0x718] sm:$0xff] }
 0x371   :  { %1479 = vperm.xlu0 %5867, %v449_v41   ;;  %v475_v41 = vld [vmem:[%s9385_s1 + $0x710] sm:$0xff] }
 0x374   :  { %1574 = vperm.xlu1 %5868, %v468_v16   ;;  %v6214_v16 = vld [vmem:[%s9387_s2 + $0x378] ss:$60 sps:$4 sm:$0xff]  }
 0x375   :  { %1569 = vperm.xlu0 %5867, %v467_v51   ;;  %4433 = vmatpush1.bf16.xpose.msra.mxu0 %v6196_v13  ;;  %v6157_v51 = vld [vmem:[%s9387_s2 + $0x788] ss:$60 sps:$4 sm:$0xff]   ;;  %v6217_v13 = vld [vmem:[%s9387_s2 + $0x3f0] ss:$60 sps:$4 sm:$0xff]  }
 0x376   :  { %4434 = vmatprep.subr.bf16.mxu0 %v6204_v32  ;;  %v6165_v32 = vld [vmem:[%s9387_s2 + $0x87c] ss:$60 sps:$4 sm:$0xff]  }
 0x378   :  { %1494 = vperm.xlu1 %5868, %v452_v7   ;;  %v6162_v7 = vld [vmem:[%s9387_s2 + $0x804] ss:$60 sps:$4 sm:$0xff]  }
 0x379   :  { %1489 = vperm.xlu0 %5867, %v451_v42  }
 0x37c   :  { %1584 = vperm.xlu1 %5868, %v470_v2   ;;  %v6219_v2 = vld [vmem:[%s9387_s2 + $0x3f4] ss:$60 sps:$4 sm:$0xff]  }
 0x37d   :  { %1579 = vperm.xlu0 %5867, %v469_v44   ;;  %4435 = vmatpush1.bf16.xpose.msra.mxu0 %v6202_v38  ;;  %v6225_v38 = vld [vmem:[%s9387_s2 + $0x46c] ss:$60 sps:$4 sm:$0xff]  }
 0x37e   :  { %4436 = vmatprep.subr.bf16.mxu0 %v6210_v52  ;;  %v6168_v52 = vld [vmem:[%s9387_s2 + $0x794] ss:$60 sps:$4 sm:$0xff]  }
 0x380   :  { %1504 = vperm.xlu1 %5868, %v454_v50   ;;  %v6160_v50 = vld [vmem:[%s9387_s2 + $0x800] ss:$60 sps:$4 sm:$0xff]  }
 0x381   :  { %1499 = vperm.xlu0 %5867, %v453_v24  }
 0x384   :  { %1594 = vperm.xlu1 %5868, %v472_v62   ;;  %v6223_v62 = vld [vmem:[%s9387_s2 + $0x468] ss:$60 sps:$4 sm:$0xff]  }
 0x385   :  { %1589 = vperm.xlu0 %5867, %v471_v48   ;;  %4437 = vmatpush1.bf16.xpose.msra.mxu0 %v6208_v55  ;;  %v6231_v55 = vld [vmem:[%s9387_s2 + $0x4e4] ss:$60 sps:$4 sm:$0xff]  }
 0x386   :  { %4438 = vmatprep.subr.bf16.mxu0 %v6216_v8  ;;  %v6166_v8 = vld [vmem:[%s9387_s2 + $0x790] ss:$60 sps:$4 sm:$0xff]  }
 0x388   :  { %1514 = vperm.xlu1 %5868, %v456_v19   ;;  %v6163_v19 = vld [vmem:[%s9387_s2 + $0x878] ss:$60 sps:$4 sm:$0xff]  }
 0x389   :  { %1509 = vperm.xlu0 %5867, %v455_v18  }
 0x38c   :  { %1604 = vperm.xlu1 %5868, %v474_v59   ;;  %v6229_v59 = vld [vmem:[%s9387_s2 + $0x4e0] ss:$60 sps:$4 sm:$0xff]  }
 0x38d   :  { %1599 = vperm.xlu0 %5867, %v473_v9   ;;  %4439 = vmatpush1.bf16.xpose.msra.mxu0 %v6214_v16  ;;  %v6171_v16 = vld [vmem:[%s9387_s2 + $0x80c] ss:$60 sps:$4 sm:$0xff]  }
 0x38e   :  { %v8556_v5 = vpop.trf.xlu0  ;;  %4440 = vmatprep.subr.bf16.mxu0 %v6219_v2  ;;  %v6172_v2 = vld [vmem:[%s9387_s2 + $0x880] ss:$60 sps:$4 sm:$0xff]  }
 0x38f   :  { %4172 = vmatprep.mubr.bf16.mxu1 %v8556_v5 }
 0x390   :  { %1614 = vperm.xlu1 %5868, %v476_v4   ;;  %v6237_v4 = vld [vmem:[%s9387_s2 + $0x55c] ss:$60 sps:$4 sm:$0xff]  }
 0x391   :  { %1609 = vperm.xlu0 %5867, %v475_v41   ;;  %v6235_v41 = vld [vmem:[%s9387_s2 + $0x558] ss:$60 sps:$4 sm:$0xff]  }
 0x392   :  { %v8571_v42 = vpop.trf.xlu1  ;;  %v8573_v30 = vpop.trf.xlu0 }
 0x393   :  { %4173 = vmatmul.mubr.bf16.vlgmr.msra.gmra.mrb[0].mxu1 %v8571_v42 }
 0x394   :  { %4182 = vmatprep.mubr.bf16.mxu1 %v8573_v30  ;;  %4631 = vmatpush1.bf16.xpose.msra.mxu1 %v6157_v51  ;;  %v6238_v51 = vld [vmem:[%s9387_s2 + $0x5d0] ss:$60 sps:$4 sm:$0xff]  }
 0x395   :  { %4632 = vmatprep.subr.bf16.mxu1 %v6162_v7  ;;  %4441 = vmatpush1.bf16.xpose.msra.mxu0 %v6217_v13  ;;  %v6169_v7 = vld [vmem:[%s9387_s2 + $0x808] ss:$60 sps:$4 sm:$0xff]  }
 0x396   :  { %v8583_v44 = vpop.trf.xlu1  ;;  %v8588_v24 = vpop.trf.xlu0  ;;  %4442 = vmatprep.subr.bf16.mxu0 %v6225_v38  ;;  %v6241_v13 = vld [vmem:[%s9387_s2 + $0x648] ss:$60 sps:$4 sm:$0xff]   ;;  %v6255_v38 = vld [vmem:[%s9387_s2 + $0x73c] ss:$60 sps:$4 sm:$0xff]  }
 0x39a   :  { %v8601_v48 = vpop.trf.xlu1  ;;  %v8606_v18 = vpop.trf.xlu0 }
 0x39b   :  { %4183 = vmatmul.mubr.bf16.gmra.mrb[4].mxu1 %v8583_v44 }
 0x39c   :  { %4192 = vmatprep.mubr.bf16.mxu1 %v8588_v24  ;;  %4633 = vmatpush1.bf16.xpose.msra.mxu1 %v6160_v50  ;;  %v6247_v50 = vld [vmem:[%s9387_s2 + $0x6c0] ss:$60 sps:$4 sm:$0xff]  }
 0x39d   :  { %4634 = vmatprep.subr.bf16.mxu1 %v6165_v32  ;;  %4443 = vmatpush1.bf16.xpose.msra.mxu0 %v6223_v62  ;;  %v230_v32 = vld [vmem:[%s9386_s0 + $0x688] sm:$0xff] }
 0x39e   :  { %4444 = vmatprep.subr.bf16.mxu0 %v6231_v55  ;;  %v8619_v9 = vpop.trf.xlu1  ;;  %v214_v55 = vld [vmem:[%s9386_s0 + $0x608] sm:$0xff] }
 0x3a3   :  { %4193 = vmatmul.mubr.bf16.gmra.mrb[8].mxu1 %v8601_v48 }
 0x3a4   :  { %4202 = vmatprep.mubr.bf16.mxu1 %v8606_v18  ;;  %4635 = vmatpush1.bf16.xpose.msra.mxu1 %v6163_v19 }
 0x3a5   :  { %4694 = vmatprep.subr.bf16.mxu1 %v6168_v52  ;;  %4445 = vmatpush1.bf16.xpose.msra.mxu0 %v6229_v59  ;;  %v6253_v59 = vld [vmem:[%s9387_s2 + $0x738] ss:$60 sps:$4 sm:$0xff]  }
 0x3a6   :  { %4446 = vmatprep.subr.bf16.mxu0 %v6237_v4 }
 0x3ab   :  { %4203 = vmatmul.mubr.bf16.gmra.mrb[12].mxu1 %v8619_v9 }
 0x3ac   :  { %4662 = vmatprep.mubr.bf16.mxu1 %v7815_v20  ;;  %v6240_v20 = vld [vmem:[%s9387_s2 + $0x5d4] ss:$60 sps:$4 sm:$0xff]  }
 0x3ad   :  { %4447 = vmatpush1.bf16.xpose.msra.mxu0 %v6235_v41 }
 0x3ae   :  { %4448 = vmatprep.subr.bf16.mxu0 %v6240_v20 }
 0x3b3   :  { %4663 = vmatmul.mubr.bf16.vlgmr.msra.gmra.mrb[16].mxu1 %v7924_v12  ;;  %v6174_v12 = vld [vmem:[%s9387_s2 + $0x884] ss:$60 sps:$4 sm:$0xff]  }
 0x3b4   :  { %4670 = vmatprep.mubr.bf16.mxu1 %v7960_v6  ;;  %4695 = vmatpush1.bf16.xpose.msra.mxu1 %v6166_v8  ;;  %v6243_v6 = vld [vmem:[%s9387_s2 + $0x64c] ss:$60 sps:$4 sm:$0xff]  }
 0x3b5   :  { %4696 = vmatprep.subr.bf16.mxu1 %v6171_v16  ;;  %4449 = vmatpush1.bf16.xpose.msra.mxu0 %v6238_v51  ;;  %v232_v51 = vld [vmem:[%s9386_s0 + $0x698] sm:$0xff] }
 0x3b6   :  { %4450 = vmatprep.subr.bf16.mxu0 %v6243_v6 }
 0x3bb   :  { %4671 = vmatmul.mubr.bf16.gmra.mrb[20].mxu1 %v7941_v45  ;;  %v6180_v45 = vld [vmem:[%s9387_s2 + $0x79c] ss:$60 sps:$4 sm:$0xff]  }
 0x3bc   :  { %4678 = vmatprep.mubr.bf16.mxu1 %v7984_v36  ;;  %4697 = vmatpush1.bf16.xpose.msra.mxu1 %v6169_v7  ;;  %v6249_v36 = vld [vmem:[%s9387_s2 + $0x6c4] ss:$60 sps:$4 sm:$0xff]   ;;  %v6186_v7 = vld [vmem:[%s9387_s2 + $0x814] ss:$60 sps:$4 sm:$0xff]  }
 0x3bd   :  { %4698 = vmatprep.subr.bf16.mxu1 %v6174_v12  ;;  %4451 = vmatpush1.bf16.xpose.msra.mxu0 %v6241_v13  ;;  %v231_v12 = vld [vmem:[%s9386_s0 + $0x690] sm:$0xff] }
 0x3be   :  { %4452 = vmatprep.subr.bf16.mxu0 %v6249_v36  ;;  %v6259_v36 = vld [vmem:[%s9387_s2 + $0x3f8] ss:$60 sps:$4 sm:$0xff]  }
 0x3c3   :  { %4679 = vmatmul.mubr.bf16.gmra.mrb[24].mxu1 %v7962_v34  ;;  %v229_v34 = vld [vmem:[%s9386_s0 + $0x680] sm:$0xff] }
 0x3c4   :  { %4686 = vmatprep.mubr.bf16.mxu1 %v8007_v40  ;;  %4699 = vmatpush1.bf16.xpose.msra.mxu1 %v6172_v2 }
 0x3c5   :  { %4758 = vmatprep.subr.bf16.mxu1 %v6180_v45  ;;  %4453 = vmatpush1.bf16.xpose.msra.mxu0 %v6247_v50 }
 0x3c6   :  { %4454 = vmatprep.subr.bf16.mxu0 %v6255_v38 }
 0x3cb   :  { %4687 = vmatmul.mubr.bf16.gmra.mrb[28].mxu1 %v7986_v47  ;;  %v1525_v40 = vpop.permute.xlu1 %1524  ;;  %v213_v47 = vld [vmem:[%s9386_s0 + $0x600] sm:$0xff] }
 0x3cc   :  { %v1826_v62 = vmul.f32 %v1525_v40, %v230_v32  ;;  %v1520_v19 = vpop.permute.xlu0 %1519  ;;  %4726 = vmatprep.mubr.bf16.mxu1 %v8556_v5  ;;  %v6178_v5 = vld [vmem:[%s9387_s2 + $0x798] ss:$60 sps:$4 sm:$0xff]  }
 0x3cd   :  { %v1825_v52 = vmul.f32 %v1520_v19, %v229_v34  ;;  %4455 = vmatpush1.bf16.xpose.msra.mxu0 %v6253_v59  ;;  %v216_v32 = vld [vmem:[%s9386_s0 + $0x618] sm:$0xff]  ;;  %v233_v59 = vld [vmem:[%s9386_s0 + $0x6a0] sm:$0xff] }
 0x3ce   :  { %5855 = vmatprep.subr.msk.bf16.mxu0 %vm3928_vm0, %v6259_v36 }
 0x3cf   :  { %v1949_v4 = vpack.c.bf16 %v1826_v62, %v1825_v52  ;;  %v1445_v41 = vpop.permute.xlu1 %1444  ;;  %v6184_v62 = vld [vmem:[%s9387_s2 + $0x810] ss:$60 sps:$4 sm:$0xff]  }
 0x3d0   :  { %v1810_v8 = vmul.f32 %v1445_v41, %v214_v55  ;;  %v1440_v16 = vpop.permute.xlu0 %1439  ;;  %v234_v52 = vld [vmem:[%s9386_s0 + $0x6a8] sm:$0xff] }
 0x3d1   :  { %v1809_v20 = vmul.f32 %v1440_v16, %v213_v47  ;;  %2471 = vxpose.xlu0.c.b16.start [1/8] (narrow) %v1949_v4, 64  ;;  %v6192_v55 = vld [vmem:[%s9387_s2 + $0x88c] ss:$60 sps:$4 sm:$0xff]  }
 0x3d3   :  { %v1941_v6 = vpack.c.bf16 %v1810_v8, %v1809_v20  ;;  %4727 = vmatmul.mubr.bf16.vlgmr.msra.gmra.mrb[16].mxu1 %v8571_v42  ;;  %v1535_v13 = vpop.permute.xlu1 %1534  ;;  %v215_v42 = vld [vmem:[%s9386_s0 + $0x610] sm:$0xff]  ;;  %v217_v20 = vld [vmem:[%s9386_s0 + $0x620] sm:$0xff] }
 0x3d4   :  { %v1828_v2 = vmul.f32 %v1535_v13, %v232_v51  ;;  %v1530_v45 = vpop.permute.xlu0 %1529  ;;  %4734 = vmatprep.mubr.bf16.mxu1 %v8573_v30  ;;  %4759 = vmatpush1.bf16.xpose.msra.mxu1 %v6178_v5  ;;  %v218_v5 = vld [vmem:[%s9386_s0 + $0x628] sm:$0xff]  ;;  %v236_v13 = vld [vmem:[%s9386_s0 + $0x6b8] sm:$0xff] }
 0x3d5   :  { %v1827_v50 = vmul.f32 %v1530_v45, %v231_v12  ;;  %2455 = vxpose.xlu1.c.b16.start [1/8] (narrow) %v1941_v6, 64  ;;  %4760 = vmatprep.subr.bf16.mxu1 %v6186_v7  ;;  %v235_v45 = vld [vmem:[%s9386_s0 + $0x6b0] sm:$0xff] }
 0x3d7   :  { %v1950_v30 = vpack.c.bf16 %v1828_v2, %v1827_v50  ;;  %v1455_v34 = vpop.permute.xlu1 %1454  ;;  %v6201_v2 = vld [vmem:[%s9387_s2 + $0x7a4] ss:$60 sps:$4 sm:$0xff]  }
 0x3d8   :  { %v1812_v40 = vmul.f32 %v1455_v34, %v216_v32  ;;  %v1450_v38 = vpop.permute.xlu0 %1449  ;;  %v220_v34 = vld [vmem:[%s9386_s0 + $0x638] sm:$0xff] }
 0x3d9   :  { %v1811_v19 = vmul.f32 %v1450_v38, %v215_v42  ;;  %2472 = vxpose.xlu0.c.b16.cont [2/8] (narrow) %v1950_v30, 64 }
 0x3db   :  { %v1942_v47 = vpack.c.bf16 %v1812_v40, %v1811_v19  ;;  %4735 = vmatmul.mubr.bf16.gmra.mrb[20].mxu1 %v8583_v44  ;;  %v1545_v4 = vpop.permute.xlu1 %1544  ;;  %v219_v40 = vld [vmem:[%s9386_s0 + $0x630] sm:$0xff] }
 0x3dc   :  { %v1830_v41 = vmul.f32 %v1545_v4, %v234_v52  ;;  %v1540_v8 = vpop.permute.xlu0 %1539  ;;  %4742 = vmatprep.mubr.bf16.mxu1 %v8588_v24  ;;  %4761 = vmatpush1.bf16.xpose.msra.mxu1 %v6184_v62  ;;  %v6190_v24 = vld [vmem:[%s9387_s2 + $0x888] ss:$60 sps:$4 sm:$0xff]  }
 0x3dd   :  { %v1829_v16 = vmul.f32 %v1540_v8, %v233_v59  ;;  %2456 = vxpose.xlu1.c.b16.cont [2/8] (narrow) %v1942_v47, 64  ;;  %4762 = vmatprep.subr.bf16.mxu1 %v6192_v55  ;;  %v237_v55 = vld [vmem:[%s9386_s0 + $0x6c0] sm:$0xff] }
 0x3df   :  { %v1951_v51 = vpack.c.bf16 %v1830_v41, %v1829_v16  ;;  %v1465_v7 = vpop.permute.xlu1 %1464  ;;  %v222_v16 = vld [vmem:[%s9386_s0 + $0x648] sm:$0xff] }
 0x3e0   :  { %v1814_v44 = vmul.f32 %v1465_v7, %v218_v5  ;;  %v1460_v12 = vpop.permute.xlu0 %1459  ;;  %v221_v5 = vld [vmem:[%s9386_s0 + $0x640] sm:$0xff] }
 0x3e1   :  { %v1813_v6 = vmul.f32 %v1460_v12, %v217_v20  ;;  %2473 = vxpose.xlu0.c.b16.cont [3/8] (narrow) %v1951_v51, 64 }
 0x3e3   :  { %v1943_v36 = vpack.c.bf16 %v1814_v44, %v1813_v6  ;;  %4743 = vmatmul.mubr.bf16.gmra.mrb[24].mxu1 %v8601_v48  ;;  %v1555_v50 = vpop.permute.xlu1 %1554  ;;  %v239_v6 = vld [vmem:[%s9386_s0 + $0x6d0] sm:$0xff] }
 0x3e4   :  { %v1832_v32 = vmul.f32 %v1555_v50, %v236_v13  ;;  %v1550_v42 = vpop.permute.xlu0 %1549  ;;  %4750 = vmatprep.mubr.bf16.mxu1 %v8606_v18  ;;  %4763 = vmatpush1.bf16.xpose.msra.mxu1 %v6190_v24  ;;  %v238_v18 = vld [vmem:[%s9386_s0 + $0x6c8] sm:$0xff]  ;;  %v6207_v24 = vld [vmem:[%s9387_s2 + $0x81c] ss:$60 sps:$4 sm:$0xff]  }
 0x3e5   :  { %v1831_v30 = vmul.f32 %v1550_v42, %v235_v45  ;;  %2457 = vxpose.xlu1.c.b16.cont [3/8] (narrow) %v1943_v36, 64  ;;  %4822 = vmatprep.subr.bf16.mxu1 %v6201_v2  ;;  %v223_v42 = vld [vmem:[%s9386_s0 + $0x650] sm:$0xff] }
 0x3e7   :  { %v1952_v38 = vpack.c.bf16 %v1832_v32, %v1831_v30  ;;  %v1475_v62 = vpop.permute.xlu1 %1474  ;;  %v224_v32 = vld [vmem:[%s9386_s0 + $0x658] sm:$0xff] }
 0x3e8   :  { %v1816_v48 = vmul.f32 %v1475_v62, %v220_v34  ;;  %v1470_v19 = vpop.permute.xlu0 %1469  ;;  %v242_v62 = vld [vmem:[%s9386_s0 + $0x6e8] sm:$0xff] }
 0x3e9   :  { %v1815_v52 = vmul.f32 %v1470_v19, %v219_v40  ;;  %2474 = vxpose.xlu0.c.b16.cont [4/8] (narrow) %v1952_v38, 64  ;;  %v241_v19 = vld [vmem:[%s9386_s0 + $0x6e0] sm:$0xff] }
 0x3eb   :  { %v1944_v59 = vpack.c.bf16 %v1816_v48, %v1815_v52  ;;  %4751 = vmatmul.mubr.bf16.gmra.mrb[32].mxu1 %v8619_v9  ;;  %v1565_v47 = vpop.permute.xlu1 %1564  ;;  %v6199_v9 = vld [vmem:[%s9387_s2 + $0x7a0] ss:$60 sps:$4 sm:$0xff]   ;;  %v6213_v48 = vld [vmem:[%s9387_s2 + $0x894] ss:$60 sps:$4 sm:$0xff]  }
 0x3ec   :  { %v1834_v4 = vmul.f32 %v1565_v47, %v238_v18  ;;  %v1560_v41 = vpop.permute.xlu0 %1559  ;;  %4790 = vmatprep.mubr.bf16.mxu1 %v7113_v25  ;;  %v240_v25 = vld [vmem:[%s9386_s0 + $0x6d8] sm:$0xff] }
 0x3ed   :  { %v1833_v8 = vmul.f32 %v1560_v41, %v237_v55  ;;  %2458 = vxpose.xlu1.c.b16.cont [4/8] (narrow) %v1944_v59, 64  ;;  %v225_v41 = vld [vmem:[%s9386_s0 + $0x660] sm:$0xff] }
 0x3ef   :  { %v1953_v20 = vpack.c.bf16 %v1834_v4, %v1833_v8  ;;  %v1485_v51 = vpop.permute.xlu1 %1484  ;;  %v226_v4 = vld [vmem:[%s9386_s0 + $0x668] sm:$0xff] }
 0x3f0   :  { %v1818_v7 = vmul.f32 %v1485_v51, %v222_v16  ;;  %v1480_v44 = vpop.permute.xlu0 %1479  ;;  %v244_v51 = vld [vmem:[%s9386_s0 + $0x6f8] sm:$0xff] }
 0x3f1   :  { %v1817_v12 = vmul.f32 %v1480_v44, %v221_v5  ;;  %2475 = vxpose.xlu0.c.b16.cont [5/8] (narrow) %v1953_v20, 64  ;;  %v243_v44 = vld [vmem:[%s9386_s0 + $0x6f0] sm:$0xff] }
 0x3f3   :  { %v1945_v13 = vpack.c.bf16 %v1818_v7, %v1817_v12  ;;  %4791 = vmatmul.mubr.bf16.vlgmr.msra.gmra.mrb[16].mxu1 %v7479_v11  ;;  %v1575_v2 = vpop.permute.xlu1 %1574  ;;  %v6222_v7 = vld [vmem:[%s9387_s2 + $0x7ac] ss:$60 sps:$4 sm:$0xff]  }
 0x3f4   :  { %v1836_v45 = vmul.f32 %v1575_v2, %v240_v25  ;;  %v1570_v36 = vpop.permute.xlu0 %1569  ;;  %4798 = vmatprep.mubr.bf16.mxu1 %v7203_v17  ;;  %4823 = vmatpush1.bf16.xpose.msra.mxu1 %v6199_v9  ;;  %v6205_v17 = vld [vmem:[%s9387_s2 + $0x818] ss:$60 sps:$4 sm:$0xff]  }
 0x3f5   :  { %v1835_v50 = vmul.f32 %v1570_v36, %v239_v6  ;;  %2459 = vxpose.xlu1.c.b16.cont [5/8] (narrow) %v1945_v13, 64  ;;  %4824 = vmatprep.subr.bf16.mxu1 %v6207_v24  ;;  %v228_v13 = vld [vmem:[%s9386_s0 + $0x678] sm:$0xff]  ;;  %v227_v2 = vld [vmem:[%s9386_s0 + $0x670] sm:$0xff] }
 0x3f7   :  { %v1954_v30 = vpack.c.bf16 %v1836_v45, %v1835_v50  ;;  %v1495_v34 = vpop.permute.xlu1 %1494 }
 0x3f8   :  { %v1820_v11 = vmul.f32 %v1495_v34, %v224_v32  ;;  %v1490_v40 = vpop.permute.xlu0 %1489 }
 0x3f9   :  { %v1819_v38 = vmul.f32 %v1490_v40, %v223_v42  ;;  %2476 = vxpose.xlu0.c.b16.cont [6/8] (narrow) %v1954_v30, 64  ;;  %v245_v42 = vld [vmem:[%s9386_s0 + $0x700] sm:$0xff] }
 0x3fb   :  { %v1946_v52 = vpack.c.bf16 %v1820_v11, %v1819_v38  ;;  %4799 = vmatmul.mubr.bf16.gmra.mrb[20].mxu1 %v7508_v29  ;;  %v1585_v18 = vpop.permute.xlu1 %1584  ;;  %v248_v38 = vld [vmem:[%s9386_s0 + $0x718] sm:$0xff] }
 0x3fc   :  { %v1838_v55 = vmul.f32 %v1585_v18, %v242_v62  ;;  %v1580_v59 = vpop.permute.xlu0 %1579  ;;  %4806 = vmatprep.mubr.bf16.mxu1 %v7211_v54  ;;  %4825 = vmatpush1.bf16.xpose.msra.mxu1 %v6205_v17  ;;  %v6211_v54 = vld [vmem:[%s9387_s2 + $0x890] ss:$60 sps:$4 sm:$0xff]  }
 0x3fd   :  { %v1837_v47 = vmul.f32 %v1580_v59, %v241_v19  ;;  %2460 = vxpose.xlu1.c.b16.cont [6/8] (narrow) %v1946_v52, 64  ;;  %4826 = vmatprep.subr.bf16.mxu1 %v6213_v48  ;;  %v247_v62 = vld [vmem:[%s9386_s0 + $0x710] sm:$0xff] }
 0x3ff   :  { %v1955_v8 = vpack.c.bf16 %v1838_v55, %v1837_v47  ;;  %v1505_v16 = vpop.permute.xlu1 %1504  ;;  %v6226_v47 = vld [vmem:[%s9387_s2 + $0x820] ss:$60 sps:$4 sm:$0xff]  }
 0x400   :  { %v1822_v29 = vmul.f32 %v1505_v16, %v226_v4  ;;  %v1500_v5 = vpop.permute.xlu0 %1499  ;;  %v6234_v4 = vld [vmem:[%s9387_s2 + $0x89c] ss:$60 sps:$4 sm:$0xff]  }
 0x401   :  { %v1821_v20 = vmul.f32 %v1500_v5, %v225_v41  ;;  %2477 = vxpose.xlu0.c.b16.cont [7/8] (narrow) %v1955_v8, 64  ;;  %v6262_v8 = vld [vmem:[%s9387_s2 + $0xb0] ss:$60 sps:$4 sm:$0xff]  }
 0x403   :  { %v1947_v9 = vpack.c.bf16 %v1822_v29, %v1821_v20  ;;  %4807 = vmatmul.mubr.bf16.gmra.mrb[24].mxu1 %v7547_v57  ;;  %v1595_v12 = vpop.permute.xlu1 %1594  ;;  %v3945_v29 = vsel %vm3928_vm0, %v6262_v8, 0 }
 0x404   :  { %v1840_v25 = vmul.f32 %v1595_v12, %v244_v51  ;;  %v1590_v24 = vpop.permute.xlu0 %1589  ;;  %4814 = vmatprep.mubr.bf16.mxu1 %v7219_v63  ;;  %4827 = vmatpush1.bf16.xpose.msra.mxu1 %v6211_v54  ;;  %v246_v63 = vld [vmem:[%s9386_s0 + $0x708] sm:$0xff] }
 0x405   :  { %v1839_v6 = vmul.f32 %v1590_v24, %v243_v44  ;;  %2461 = vxpose.xlu1.c.b16.cont [7/8] (narrow) %v1947_v9, 64  ;;  %4886 = vmatprep.subr.bf16.mxu1 %v6222_v7  ;;  %v6263_v54 = vld [vmem:[%s9387_s2 + $0x4e8] ss:$60 sps:$4 sm:$0xff]  }
 0x406   :  { %v6277_v51 = vld [vmem:[%s9387_s2 + $0x8a8] ss:$60 sps:$4 sm:$0xff]  }
 0x407   :  { %v1956_v45 = vpack.c.bf16 %v1840_v25, %v1839_v6  ;;  %v1515_v36 = vpop.permute.xlu1 %1514  ;;  %v6264_v7 = vld [vmem:[%s9387_s2 + $0x128] ss:$60 sps:$4 sm:$0xff]   ;;  %v6265_v25 = vld [vmem:[%s9387_s2 + $0x560] ss:$60 sps:$4 sm:$0xff]  }
 0x408   :  { %v1824_v57 = vmul.f32 %v1515_v36, %v228_v13  ;;  %v1510_v50 = vpop.permute.xlu0 %1509  ;;  %v3948_v12 = vsel %vm3928_vm0, %v6264_v7, 0  ;;  %v6266_v36 = vld [vmem:[%s9387_s2 + $0x1a0] ss:$60 sps:$4 sm:$0xff]  }
 0x409   :  { %v1823_v32 = vmul.f32 %v1510_v50, %v227_v2  ;;  %2478 = vxpose.xlu0.c.b16.end [8/8] (narrow) %v1956_v45, 64  ;;  %v3996_v2 = vsel %vm3928_vm0, %v6277_v51, 0 }
 0x40b   :  { %v1948_v30 = vpack.c.bf16 %v1824_v57, %v1823_v32  ;;  %4815 = vmatmul.mubr.bf16.gmra.mrb[36].mxu1 %v7571_v21  ;;  %v1605_v34 = vpop.permute.xlu1 %1604  ;;  %v6220_v21 = vld [vmem:[%s9387_s2 + $0x7a8] ss:$60 sps:$4 sm:$0xff]   ;;  %v3951_v32 = vsel %vm3928_vm0, %v6266_v36, 0 }
 0x40c   :  { %v1842_v11 = vmul.f32 %v1605_v34, %v246_v63  ;;  %v1600_v40 = vpop.permute.xlu0 %1599  ;;  %4854 = vmatprep.mubr.bf16.mxu1 %v7704_v1  ;;  %v6228_v1 = vld [vmem:[%s9387_s2 + $0x824] ss:$60 sps:$4 sm:$0xff]   ;;  %v6267_v63 = vld [vmem:[%s9387_s2 + $0x5d8] ss:$60 sps:$4 sm:$0xff]  }
 0x40d   :  { %v1841_v17 = vmul.f32 %v1600_v40, %v245_v42  ;;  %2462 = vxpose.xlu1.c.b16.end [8/8] (narrow) %v1948_v30, 64 }
 0x40f   :  { %v1957_v48 = vpack.c.bf16 %v1842_v11, %v1841_v17  ;;  %v1615_v19 = vpop.permute.xlu1 %1614  ;;  %v6268_v11 = vld [vmem:[%s9387_s2 + $0x218] ss:$60 sps:$4 sm:$0xff]  }
 0x410   :  { %v1844_v52 = vmul.f32 %v1615_v19, %v248_v38  ;;  %v1610_v18 = vpop.permute.xlu0 %1609  ;;  %v3954_v17 = vsel %vm3928_vm0, %v6268_v11, 0  ;;  %v6269_v38 = vld [vmem:[%s9387_s2 + $0x650] ss:$60 sps:$4 sm:$0xff]  }
 0x411   :  { %v1843_v55 = vmul.f32 %v1610_v18, %v247_v62  ;;  %2487 = vxpose.xlu0.c.b16.start [1/2] (short) (narrow) %v1957_v48, 64  ;;  %v6270_v18 = vld [vmem:[%s9387_s2 + $0x290] ss:$60 sps:$4 sm:$0xff]  }
 0x413   :  { %v1958_v59 = vpack.c.bf16 %v1844_v52, %v1843_v55  ;;  %4855 = vmatmul.mubr.bf16.vlgmr.msra.gmra.mrb[16].mxu1 %v7842_v0  ;;  %v6246_v0 = vld [vmem:[%s9387_s2 + $0x7b4] ss:$60 sps:$4 sm:$0xff]  }
 0x414   :  { %4862 = vmatprep.mubr.bf16.mxu1 %v7749_v56  ;;  %4887 = vmatpush1.bf16.xpose.msra.mxu1 %v6220_v21  ;;  %v6232_v56 = vld [vmem:[%s9387_s2 + $0x898] ss:$60 sps:$4 sm:$0xff]  }
 0x415   :  { %2488 = vxpose.xlu0.c.b16.end [2/2] (short) (narrow) %v1958_v59, 64  ;;  %4888 = vmatprep.subr.bf16.mxu1 %v6228_v1  ;;  %v3957_v1 = vsel %vm3928_vm0, %v6270_v18, 0  ;;  %v6272_v59 = vld [vmem:[%s9387_s2 + $0x6c8] ss:$60 sps:$4 sm:$0xff]  }
 0x41b   :  { %4863 = vmatmul.mubr.bf16.gmra.mrb[20].mxu1 %v7862_v35  ;;  %v6252_v35 = vld [vmem:[%s9387_s2 + $0x82c] ss:$60 sps:$4 sm:$0xff]  }
 0x41c   :  { %4870 = vmatprep.mubr.bf16.mxu1 %v7769_v43  ;;  %4889 = vmatpush1.bf16.xpose.msra.mxu1 %v6226_v47  ;;  %v6244_v43 = vld [vmem:[%s9387_s2 + $0x7b0] ss:$60 sps:$4 sm:$0xff]  }
 0x41d   :  { %4890 = vmatprep.subr.bf16.mxu1 %v6234_v4 }
 0x423   :  { %4871 = vmatmul.mubr.bf16.gmra.mrb[24].mxu1 %v7879_v53  ;;  %v6258_v53 = vld [vmem:[%s9387_s2 + $0x8a4] ss:$60 sps:$4 sm:$0xff]  }
 0x424   :  { %4878 = vmatprep.mubr.bf16.mxu1 %v7789_v58  ;;  %4891 = vmatpush1.bf16.xpose.msra.mxu1 %v6232_v56  ;;  %v6250_v58 = vld [vmem:[%s9387_s2 + $0x828] ss:$60 sps:$4 sm:$0xff]  }
 0x425   :  { %4950 = vmatprep.subr.bf16.mxu1 %v6246_v0 }
 0x42b   :  { %4879 = vmatmul.mubr.bf16.gmra.mrb[40].mxu1 %v7899_v27  ;;  %v6256_v27 = vld [vmem:[%s9387_s2 + $0x8a0] ss:$60 sps:$4 sm:$0xff]  }
 0x42c   :  { %4918 = vmatprep.mubr.bf16.mxu1 %v8394_v10  ;;  %v6271_v10 = vld [vmem:[%s9387_s2 + $0x7b8] ss:$60 sps:$4 sm:$0xff]  }
 0x42d   :  { %v3990_v41 = vsel %vm3928_vm0, %v6271_v10, 0 }
 0x433   :  { %4919 = vmatmul.mubr.bf16.vlgmr.msra.gmra.mrb[16].mxu1 %v8403_v15  ;;  %v6260_v15 = vld [vmem:[%s9387_s2 + $0x38] ss:$60 sps:$4 sm:$0xff]  }
 0x434   :  { %4926 = vmatprep.mubr.bf16.mxu1 %v8405_v26  ;;  %4951 = vmatpush1.bf16.xpose.msra.mxu1 %v6244_v43  ;;  %v6273_v43 = vld [vmem:[%s9387_s2 + $0x308] ss:$60 sps:$4 sm:$0xff]  }
 0x435   :  { %4952 = vmatprep.subr.bf16.mxu1 %v6252_v35 }
 0x43b   :  { %4927 = vmatmul.mubr.bf16.gmra.mrb[20].mxu1 %v8427_v49  ;;  %v3942_v49 = vsel %vm3928_vm0, %v6260_v15, 0  ;;  %v6280_v15 = vld [vmem:[%s9387_s2 + $0x784] ss:$60 sps:$4 sm:$0xff]  }
 0x43c   :  { %4934 = vmatprep.mubr.bf16.mxu1 %v8429_v23  ;;  %4953 = vmatpush1.bf16.xpose.msra.mxu1 %v6250_v58  ;;  %v6261_v23 = vld [vmem:[%s9387_s2 + $0x470] ss:$60 sps:$4 sm:$0xff]   ;;  %v3960_v58 = vsel %vm3928_vm0, %v6273_v43, 0 }
 0x43d   :  { %4954 = vmatprep.subr.bf16.mxu1 %v6258_v53  ;;  %v6275_v53 = vld [vmem:[%s9387_s2 + $0x740] ss:$60 sps:$4 sm:$0xff]  }
 0x443   :  { %4935 = vmatmul.mubr.bf16.gmra.mrb[24].mxu1 %v8451_v33 }
 0x444   :  { %4942 = vmatprep.mubr.bf16.mxu1 %v8453_v61  ;;  %4955 = vmatpush1.bf16.xpose.msra.mxu1 %v6256_v27  ;;  %v6276_v27 = vld [vmem:[%s9387_s2 + $0x380] ss:$60 sps:$4 sm:$0xff]  }
 0x445   :  { %5863 = vmatprep.subr.msk.bf16.mxu1 %vm3928_vm0, %v6271_v10  ;;  %v3963_v10 = vsel %vm3928_vm0, %v6276_v27, 0 }
 0x44b   :  { %4943 = vmatmul.mubr.bf16.gmra.mrb[44].mxu1 %v8475_v46  ;;  %v6274_v46 = vld [vmem:[%s9387_s2 + $0x830] ss:$60 sps:$4 sm:$0xff]  }
 0x44c   :  { %v3993_v20 = vsel %vm3928_vm0, %v6274_v46, 0 }
 0x453   :  { %v2479_v26 = vpop.trf.xlu0 }
 0x454   :  { %4456 = vmatprep.mubr.bf16.mxu0 %v2479_v26  ;;  %4982 = vmatprep.mubr.bf16.mxu1 %v2479_v26  ;;  %v6278_v26 = vld [vmem:[%s9387_s2 + $0x780] ss:$60 sps:$4 sm:$0xff]  }
 0x457   :  { %v2463_v33 = vpop.trf.xlu1  ;;  %v2480_v61 = vpop.trf.xlu0 }
 0x458   :  { %4457 = vmatmul.mubr.bf16.vlgmr.msra.gmra.mrb[0].mxu0 %v2463_v33  ;;  %4983 = vmatmul.mubr.bf16.vlgmr.msra.gmra.mrb[16].mxu1 %v2463_v33 }
 0x459   :  { %5635 = vmatpush3.bf16.xpose.msra.mxu0 %v3942_v49  ;;  %4990 = vmatprep.mubr.bf16.mxu1 %v2480_v61  ;;  %v6283_v49 = vld [vmem:[%s9387_s2 + $0x7fc] ss:$60 sps:$4 sm:$0xff]  }
 0x45a   :  { %5856 = vmatprep.subr.msk.bf16.mxu0 %vm3928_vm0, %v6261_v23  ;;  %4466 = vmatprep.mubr.bf16.mxu0 %v2480_v61  ;;  %v6281_v23 = vld [vmem:[%s9387_s2 + $0x7f8] ss:$60 sps:$4 sm:$0xff]  }
 0x45b   :  { %5666 = vmatpush3.bf16.xpose.msra.mxu1 %v3990_v41  ;;  %v2464_v16 = vpop.trf.xlu1  ;;  %v2481_v5 = vpop.trf.xlu0  ;;  %v6286_v61 = vld [vmem:[%s9387_s2 + $0x874] ss:$60 sps:$4 sm:$0xff]  }
 0x45c   :  { %5864 = vmatprep.subr.msk.bf16.mxu1 %vm3928_vm0, %v6274_v46 }
 0x45f   :  { %v2465_v44 = vpop.trf.xlu1  ;;  %v2482_v24 = vpop.trf.xlu0 }
 0x460   :  { %4991 = vmatmul.mubr.bf16.gmra.mrb[20].mxu1 %v2464_v16  ;;  %4467 = vmatmul.mubr.bf16.gmra.mrb[4].mxu0 %v2464_v16  ;;  %v6284_v16 = vld [vmem:[%s9387_s2 + $0x870] ss:$60 sps:$4 sm:$0xff]  }
 0x461   :  { %5637 = vmatpush3.bf16.xpose.msra.mxu0 %v3945_v29  ;;  %4998 = vmatprep.mubr.bf16.mxu1 %v2481_v5 }
 0x462   :  { %5857 = vmatprep.subr.msk.bf16.mxu0 %vm3928_vm0, %v6263_v54  ;;  %4476 = vmatprep.mubr.bf16.mxu0 %v2481_v5 }
 0x463   :  { %5668 = vmatpush3.bf16.xpose.msra.mxu1 %v3993_v20  ;;  %v2466_v57 = vpop.trf.xlu1 }
 0x464   :  { %5865 = vmatprep.subr.msk.bf16.mxu1 %vm3928_vm0, %v6277_v51 }
 0x466   :  { %v8924_v9 = vpop.f32.mrb[0].mxu1 }
 0x467   :  { %v8930_v6 = vpop.f32.mrb[1].mxu1 }
 0x468   :  { %v8932_v13 = vpop.f32.mrb[2].mxu1  ;;  %4999 = vmatmul.mubr.bf16.gmra.mrb[24].mxu1 %v2465_v44  ;;  %4477 = vmatmul.mubr.bf16.gmra.mrb[8].mxu0 %v2465_v44 }
 0x469   :  { %5639 = vmatpush3.bf16.xpose.msra.mxu0 %v3948_v12  ;;  %v8935_v45 = vpop.f32.mrb[3].mxu1  ;;  %5006 = vmatprep.mubr.bf16.mxu1 %v2482_v24 }
 0x46a   :  { %5858 = vmatprep.subr.msk.bf16.mxu0 %vm3928_vm0, %v6265_v25  ;;  %4486 = vmatprep.mubr.bf16.mxu0 %v2482_v24 }
 0x46b   :  { %5670 = vmatpush3.bf16.xpose.msra.mxu1 %v3996_v2 }
 0x46e   :  { %v8941_v50 = vpop.f32.mrb[4].mxu1 }
 0x46f   :  { %v8947_v42 = vpop.f32.mrb[5].mxu1 }
 0x470   :  { %v8949_v30 = vpop.f32.mrb[6].mxu1  ;;  %5007 = vmatmul.mubr.bf16.gmra.mrb[48].mxu1 %v2466_v57  ;;  %4487 = vmatmul.mubr.bf16.gmra.mrb[12].mxu0 %v2466_v57 }
 0x471   :  { %5641 = vmatpush3.bf16.xpose.msra.mxu0 %v3951_v32  ;;  %v8951_v34 = vpop.f32.mrb[7].mxu1 }
 0x472   :  { %5859 = vmatprep.subr.msk.bf16.mxu0 %vm3928_vm0, %v6267_v63 }
 0x476   :  { %v8957_v40 = vpop.f32.mrb[8].mxu1 }
 0x477   :  { %v8963_v62 = vpop.f32.mrb[9].mxu1  ;;  %v2495_v48 = vpop.trf.xlu0 }
 0x478   :  { %v8965_v19 = vpop.f32.mrb[10].mxu1  ;;  %5650 = vmatprep.mubr.msk.bf16.mxu0 %vm3928_vm0, %v2495_v48  ;;  %5671 = vmatprep.mubr.msk.bf16.mxu1 %vm3928_vm0, %v2495_v48 }
 0x479   :  { %5643 = vmatpush3.bf16.xpose.msra.mxu0 %v3954_v17  ;;  %v8969_v52 = vpop.f32.mrb[11].mxu1 }
 0x47a   :  { %5860 = vmatprep.subr.msk.bf16.mxu0 %vm3928_vm0, %v6269_v38 }
 0x47b   :  { %v2496_v21 = vpop.trf.xlu0 }
 0x47c   :  { %5672 = vmatmul.mubr.msk.bf16.vlgmr.msra.gmra.mrb[52].mxu1 %vm3928_vm0, %v2496_v21 }
 0x47e   :  { %v8976_v55 = vpop.f32.mrb[12].mxu1 }
 0x47f   :  { %v8982_v47 = vpop.f32.mrb[13].mxu1  ;;  %v2497_v4 = vpop.trf.xlu0 }
 0x480   :  { %v4208_v56 = vpop.f32.mrb[14].mxu1  ;;  %5675 = vmatprep.mubr.msk.bf16.mxu1 %vm3928_vm0, %v2497_v4 }
 0x481   :  { %5645 = vmatpush3.bf16.xpose.msra.mxu0 %v3957_v1  ;;  %v4209_v0 = vpop.f32.mrb[15].mxu1 }
 0x482   :  { %5861 = vmatprep.subr.msk.bf16.mxu0 %vm3928_vm0, %v6272_v59 }
 0x483   :  { %v2498_v35 = vpop.trf.xlu0 }
 0x484   :  { %5676 = vmatmul.mubr.msk.bf16.gmra.mrb[56].mxu1 %vm3928_vm0, %v2498_v35 }
 0x489   :  { %5647 = vmatpush3.bf16.xpose.msra.mxu0 %v3960_v58 }
 0x48a   :  { %5862 = vmatprep.subr.msk.bf16.mxu0 %vm3928_vm0, %v6275_v53 }
 0x491   :  { %5649 = vmatpush3.bf16.xpose.msra.mxu0 %v3963_v10 }
 0x492   :  { %4566 = vmatprep.subr.bf16.mxu0 %v6280_v15 }
 0x498   :  { %5651 = vmatmul.mubr.msk.bf16.vlgmr.msra.gmra.mrb[0].mxu0 %vm3928_vm0, %v2495_v48 }
 0x499   :  { %4567 = vmatpush1.bf16.xpose.msra.mxu0 %v6278_v26  ;;  %5652 = vmatprep.mubr.msk.bf16.mxu0 %vm3928_vm0, %v2496_v21 }
 0x49a   :  { %4568 = vmatprep.subr.bf16.mxu0 %v6283_v49 }
 0x49e   :  { %v9013_v33 = vpop.f32.mrb[28].mxu1 }
 0x49f   :  { %v4690_v41 = vpop.f32.mrb[29].mxu1 }
 0x4a0   :  { %5653 = vmatmul.mubr.msk.bf16.gmra.mrb[4].mxu0 %vm3928_vm0, %v2496_v21  ;;  %v4691_v46 = vpop.f32.mrb[30].mxu1 }
 0x4a1   :  { %v4692_v8 = vpop.f32.mrb[31].mxu1  ;;  %4569 = vmatpush1.bf16.xpose.msra.mxu0 %v6281_v23  ;;  %5654 = vmatprep.mubr.msk.bf16.mxu0 %vm3928_vm0, %v2497_v4 }
 0x4a2   :  { %4570 = vmatprep.subr.bf16.mxu0 %v6286_v61 }
 0x4a8   :  { %5655 = vmatmul.mubr.msk.bf16.gmra.mrb[8].mxu0 %vm3928_vm0, %v2497_v4 }
 0x4a9   :  { %5656 = vmatprep.mubr.msk.bf16.mxu0 %vm3928_vm0, %v2498_v35  ;;  %4571 = vmatpush1.bf16.xpose.msra.mxu0 %v6284_v16 }
 0x4b0   :  { %5657 = vmatmul.mubr.msk.bf16.gmra.mrb[12].mxu0 %vm3928_vm0, %v2498_v35 }
 0x4b1   :  { %4598 = vmatprep.mubr.bf16.mxu0 %v7586_v31 }
 0x4b8   :  { %4599 = vmatmul.mubr.bf16.vlgmr.msra.gmra.mrb[16].mxu0 %v7226_v22 }
 0x4b9   :  { %4606 = vmatprep.mubr.bf16.mxu0 %v7605_v60 }
 0x4be   :  { %v9029_v29 = vpop.f32.mrb[32].mxu1 }
 0x4bf   :  { %v4754_v5 = vpop.f32.mrb[33].mxu1 }
 0x4c0   :  { %4607 = vmatmul.mubr.bf16.gmra.mrb[20].mxu0 %v7231_v14  ;;  %v4755_v54 = vpop.f32.mrb[34].mxu1 }
 0x4c1   :  { %4614 = vmatprep.mubr.bf16.mxu0 %v7630_v3  ;;  %v4756_v20 = vpop.f32.mrb[35].mxu1 }
 0x4c8   :  { %4615 = vmatmul.mubr.bf16.gmra.mrb[24].mxu0 %v7238_v28 }
 0x4c9   :  { %4622 = vmatprep.mubr.bf16.mxu0 %v7658_v37 }
 0x4d0   :  { %4623 = vmatmul.mubr.bf16.gmra.mrb[28].mxu0 %v7240_v39 }
 0x4de   :  { %v9036_v31 = vpop.f32.mrb[36].mxu1 }
 0x4df   :  { %v4818_v22 = vpop.f32.mrb[37].mxu1 }
 0x4e0   :  { %v4819_v51 = vpop.f32.mrb[38].mxu1 }
 0x4e1   :  { %v4820_v60 = vpop.f32.mrb[39].mxu1 }
 0x4fe   :  { %v9038_v7 = vpop.f32.mrb[40].mxu1 }
 0x4ff   :  { %v4882_v44 = vpop.f32.mrb[41].mxu1 }
 0x500   :  { %v4883_v12 = vpop.f32.mrb[42].mxu1 }
 0x501   :  { %v4884_v14 = vpop.f32.mrb[43].mxu1 }
 0x51e   :  { %v9040_v25 = vpop.f32.mrb[44].mxu1 }
 0x51f   :  { %v4946_v3 = vpop.f32.mrb[45].mxu1 }
 0x520   :  { %v4947_v24 = vpop.f32.mrb[46].mxu1 }
 0x521   :  { %v4948_v2 = vpop.f32.mrb[47].mxu1 }
 0x52b   :  { %v9042_v28 = vpop.f32.mrb[16].mxu1 }
 0x52c   :  { %v4986_v37 = vpop.f32.mrb[17].mxu1 }
 0x52d   :  { %v9044_v36 = vpop.f32.mrb[18].mxu1 }
 0x52e   :  { %v4989_v39 = vpop.f32.mrb[19].mxu1 }
 0x533   :  { %v9046_v57 = vpop.f32.mrb[20].mxu1 }
 0x534   :  { %v4994_v32 = vpop.f32.mrb[21].mxu1 }
 0x535   :  { %v9048_v63 = vpop.f32.mrb[22].mxu1 }
 0x536   :  { %v4997_v11 = vpop.f32.mrb[23].mxu1 }
 0x53b   :  { %v9050_v17 = vpop.f32.mrb[24].mxu1 }
 0x53c   :  { %v5002_v38 = vpop.f32.mrb[25].mxu1 }
 0x53d   :  { %v9052_v48 = vpop.f32.mrb[26].mxu1 }
 0x53e   :  { %v5005_v18 = vpop.f32.mrb[27].mxu1 }
 0x543   :  { %v9054_v21 = vpop.f32.mrb[48].mxu1 }
 0x544   :  { %v5010_v1 = vpop.f32.mrb[49].mxu1 }
 0x545   :  { %v5011_v59 = vpop.f32.mrb[50].mxu1 }
 0x546   :  { %v5012_v4 = vpop.f32.mrb[51].mxu1 }
 0x54f   :  { %v9056_v56 = vpop.f32.mrb[52].mxu1 }
 0x550   :  { %v5048_v0 = vpop.f32.mrb[53].mxu1 }
 0x551   :  { %v9058_v43 = vpop.f32.mrb[54].mxu1 }
 0x552   :  { %v9060_v35 = vpop.f32.mrb[55].mxu1 }
 0x557   :  { %v9062_v58 = vpop.f32.mrb[56].mxu1 }
 0x558   :  { %v9064_v53 = vpop.f32.mrb[57].mxu1 }
 0x559   :  { %v5678_v27 = vpop.f32.mrb[58].mxu1 }
 0x55a   :  { %v9066_v10 = vpop.f32.mrb[59].mxu1 }
 0x56b   :  { %v4529_v15 = vpop.f32.mrb[0].mxu0 }
 0x56c   :  { %v9069_v26 = vadd.f32 %v4529_v15, %v8924_v9  ;;  %v4531_v49 = vpop.f32.mrb[1].mxu0 }
 0x56d   :  { %v9072_v23 = vadd.f32 %v4531_v49, %v8930_v6  ;;  %v4533_v61 = vpop.f32.mrb[2].mxu0 }
 0x56e   :  { %v9075_v41 = vadd.f32 %v4533_v61, %v8932_v13  ;;  %v4535_v46 = vpop.f32.mrb[3].mxu0 }
 0x56f   :  { %v9078_v8 = vadd.f32 %v4535_v46, %v8935_v45 }
 0x570   :  { %v5078_v16 = vadd.f32 %v9075_v41, %v9069_v26 }
 0x571   :  { %v5092_v5 = vadd.f32 %v9078_v8, %v9072_v23 }
 0x573   :  { %v4539_v9 = vpop.f32.mrb[4].mxu0 }
 0x574   :  { %v9085_v54 = vadd.f32 %v4539_v9, %v8941_v50  ;;  %v4541_v6 = vpop.f32.mrb[5].mxu0 }
 0x575   :  { %v9088_v20 = vadd.f32 %v4541_v6, %v8947_v42  ;;  %v4543_v13 = vpop.f32.mrb[6].mxu0 }
 0x576   :  { %v5079_v22 = vadd.f32 %v9085_v54, %v5078_v16  ;;  %v9092_v45 = vadd.f32 %v4543_v13, %v8949_v30  ;;  %v4545_v51 = vpop.f32.mrb[7].mxu0 }
 0x577   :  { %v5093_v60 = vadd.f32 %v9088_v20, %v5092_v5  ;;  %v9096_v44 = vadd.f32 %v4545_v51, %v8951_v34 }
 0x578   :  { %v5080_v12 = vadd.f32 %v9092_v45, %v5079_v22 }
 0x579   :  { %v5094_v50 = vadd.f32 %v9096_v44, %v5093_v60 }
 0x57b   :  { %v4549_v14 = vpop.f32.mrb[8].mxu0 }
 0x57c   :  { %v5687_v42 = vadd.f32 %v4549_v14, %v8957_v40  ;;  %v4551_v3 = vpop.f32.mrb[9].mxu0 }
 0x57d   :  { %v9102_v24 = vadd.f32 %v4551_v3, %v8963_v62  ;;  %v4553_v2 = vpop.f32.mrb[10].mxu0 }
 0x57e   :  { %v5081_v30 = vadd.f32 %v5687_v42, %v5080_v12  ;;  %v5689_v37 = vadd.f32 %v4553_v2, %v8965_v19  ;;  %v4555_v39 = vpop.f32.mrb[11].mxu0 }
 0x57f   :  { %v5095_v32 = vadd.f32 %v9102_v24, %v5094_v50  ;;  %v9107_v34 = vadd.f32 %v4555_v39, %v8969_v52 }
 0x580   :  { %v5082_v11 = vadd.f32 %v5689_v37, %v5081_v30 }
 0x581   :  { %v5096_v38 = vadd.f32 %v9107_v34, %v5095_v32 }
 0x583   :  { %v4559_v18 = vpop.f32.mrb[12].mxu0 }
 0x584   :  { %v5691_v40 = vadd.f32 %v4559_v18, %v8976_v55  ;;  %v4561_v1 = vpop.f32.mrb[13].mxu0 }
 0x585   :  { %v5692_v62 = vadd.f32 %v4561_v1, %v8982_v47  ;;  %v4563_v59 = vpop.f32.mrb[14].mxu0 }
 0x586   :  { %v5084_v4 = vsel %vm5083_vm1, %v5691_v40, 0.0  ;;  %v4564_v19 = vpop.f32.mrb[15].mxu0 }
 0x587   :  { %v5085_v27 = vadd.f32 %v5084_v4, %v5082_v11  ;;  %v5097_v15 = vsel %vm5083_vm1, %v5692_v62, 0.0 }
 0x588   :  { %v5098_v49 = vadd.f32 %v5097_v15, %v5096_v38 }
 0x589   :  { %v5086_v52 = vrot.slane %v5085_v27, 4 }
 0x58a   :  { %v5099_v61 = vrot.slane %v5098_v49, 4 }
 0x58b   :  { %v5087_v46 = vadd.f32 %v5086_v52, %v5085_v27  ;;  %v4600_v16 = vpop.f32.mrb[16].mxu0 }
 0x58c   :  { %v5100_v5 = vadd.f32 %v5099_v61, %v5098_v49  ;;  %v5693_v9 = vadd.f32 %v9042_v28, %v4600_v16  ;;  %v4602_v6 = vpop.f32.mrb[17].mxu0 }
 0x58d   :  { %v5088_v55 = vrot.slane %v5087_v46, 2  ;;  %v4603_v13 = vpop.f32.mrb[18].mxu0 }
 0x58e   :  { %v5101_v22 = vrot.slane %v5100_v5, 2  ;;  %v9115_v47 = vadd.f32 %v5693_v9, %v5048_v0  ;;  %v5694_v51 = vadd.f32 %v9044_v36, %v4603_v13  ;;  %v4605_v60 = vpop.f32.mrb[19].mxu0 }
 0x58f   :  { %v5089_v12 = vadd.f32 %v5088_v55, %v5087_v46 }
 0x590   :  { %v5102_v50 = vadd.f32 %v5101_v22, %v5100_v5  ;;  %v9119_v14 = vadd.f32 %v5694_v51, %v9060_v35  ;;  %v5106_v28 = vsel %vm5105_vm2, %v9115_v47, 0.0 }
 0x591   :  { %v5090_v3 = vrot.slane %v5089_v12, 1 }
 0x592   :  { %v5103_v2 = vrot.slane %v5102_v50, 1  ;;  %v5107_v30 = vsel %vm5105_vm2, %v9119_v14, 0.0 }
 0x593   :  { %v5091_v39 = vadd.f32 %v5090_v3, %v5089_v12  ;;  %v5108_v0 = vadd.f32 %v5107_v30, %v5106_v28  ;;  %v4608_v32 = vpop.f32.mrb[20].mxu0 }
 0x594   :  { %v5104_v11 = vadd.f32 %v5103_v2, %v5102_v50  ;;  %v5695_v36 = vadd.f32 %v9046_v57, %v4608_v32  ;;  %v4610_v38 = vpop.f32.mrb[21].mxu0 }
 0x595   :  { %v5126_v18 = vmul.f32 0.020408163, %v5091_v39  ;;  %v4611_v1 = vpop.f32.mrb[22].mxu0 }
 0x596   :  { %v5127_v59 = vmul.f32 0.020408163, %v5104_v11  ;;  %v9127_v35 = vadd.f32 %v5695_v36, %v9056_v56  ;;  %v5696_v4 = vadd.f32 %v9048_v63, %v4611_v1  ;;  %v4613_v19 = vpop.f32.mrb[23].mxu0 }
 0x597   :  { %v9131_v27 = vsub.f32 %v9069_v26, %v5126_v18  ;;  %v9134_v15 = vsub.f32 %v9075_v41, %v5126_v18  ;;  %v9137_v49 = vsub.f32 %v9085_v54, %v5126_v18  ;;  %v9140_v57 = vsub.f32 %v9092_v45, %v5126_v18 }
 0x598   :  { %v9142_v52 = vsub.f32 %v5687_v42, %v5126_v18  ;;  %v9144_v61 = vsub.f32 %v5689_v37, %v5126_v18  ;;  %v9146_v56 = vsub.f32 %v5691_v40, %v5126_v18  ;;  %v9149_v63 = vsub.f32 %v9072_v23, %v5127_v59 }
 0x599   :  { %v5150_v26 = vmul.f32 %v9131_v27, %v9131_v27  ;;  %v5153_v41 = vmul.f32 %v9134_v15, %v9134_v15  ;;  %v5156_v54 = vmul.f32 %v9137_v49, %v9137_v49  ;;  %v9158_v45 = vsub.f32 %v9078_v8, %v5127_v59 }
 0x59a   :  { %v9161_v37 = vsub.f32 %v9088_v20, %v5127_v59  ;;  %v9164_v40 = vsub.f32 %v9096_v44, %v5127_v59  ;;  %v9167_v23 = vsub.f32 %v9102_v24, %v5127_v59  ;;  %v9170_v16 = vsub.f32 %v9107_v34, %v5127_v59 }
 0x59b   :  { %v5171_v42 = vadd.f32 %v5153_v41, %v5150_v26  ;;  %v4616_v46 = vpop.f32.mrb[24].mxu0  ;;  %v9172_v5 = vsub.f32 %v5692_v62, %v5127_v59  ;;  %v5151_v8 = vmul.f32 %v9149_v63, %v9149_v63  ;;  %v5159_v20 = vmul.f32 %v9140_v57, %v9140_v57 }
 0x59c   :  { %v4618_v9 = vpop.f32.mrb[25].mxu0  ;;  %v5154_v44 = vmul.f32 %v9158_v45, %v9158_v45  ;;  %v5162_v24 = vmul.f32 %v9142_v52, %v9142_v52  ;;  %v5168_v34 = vmul.f32 %v9146_v56, %v9146_v56  ;;  %v5157_v62 = vmul.f32 %v9161_v37, %v9161_v37 }
 0x59d   :  { %v5172_v6 = vadd.f32 %v5171_v42, %v5156_v54  ;;  %v4619_v55 = vpop.f32.mrb[26].mxu0  ;;  %v5109_v13 = vsel %vm5105_vm2, %v9127_v35, 0.0  ;;  %v9189_v50 = vadd.f32 %v5696_v4, %v9058_v43  ;;  %v5165_v3 = vmul.f32 %v9144_v61, %v9144_v61 }
 0x59e   :  { %v4621_v22 = vpop.f32.mrb[27].mxu0  ;;  %v5184_v60 = vadd.f32 %v5154_v44, %v5151_v8  ;;  %v5110_v12 = vadd.f32 %v5109_v13, %v5108_v0  ;;  %v5697_v2 = vadd.f32 %v9050_v17, %v4616_v46  ;;  %v5698_v28 = vadd.f32 %v9052_v48, %v4619_v55 }
 0x59f   :  { %v5173_v51 = vadd.f32 %v5172_v6, %v5159_v20  ;;  %v5160_v39 = vmul.f32 %v9164_v40, %v9164_v40  ;;  %v5111_v11 = vsel %vm5105_vm2, %v9189_v50, 0.0  ;;  %v5176_v17 = vsel %vm5083_vm1, %v5168_v34, 0.0 }
 0x5a0   :  { %v5185_v32 = vadd.f32 %v5184_v60, %v5157_v62  ;;  %v5112_v36 = vadd.f32 %v5111_v11, %v5110_v12  ;;  %v9200_v0 = vadd.f32 %v5697_v2, %v9064_v53  ;;  %v9203_v43 = vadd.f32 %v5698_v28, %v9066_v10 }
 0x5a1   :  { %v5174_v30 = vadd.f32 %v5173_v51, %v5162_v24  ;;  %v5163_v48 = vmul.f32 %v9167_v23, %v9167_v23  ;;  %v5169_v59 = vmul.f32 %v9172_v5, %v9172_v5  ;;  %v5166_v41 = vmul.f32 %v9170_v16, %v9170_v16 }
 0x5a2   :  { %v5186_v18 = vadd.f32 %v5185_v32, %v5160_v39  ;;  %v5113_v4 = vsel %vm5105_vm2, %v9200_v0, 0.0  ;;  %v5115_v53 = vsel %vm5105_vm2, %v9203_v43, 0.0 }
 0x5a3   :  { %v5175_v38 = vadd.f32 %v5174_v30, %v5165_v3  ;;  %v4624_v1 = vpop.f32.mrb[28].mxu0  ;;  %v5114_v42 = vadd.f32 %v5113_v4, %v5112_v36  ;;  %v5189_v55 = vsel %vm5083_vm1, %v5169_v59, 0.0  ;;  %v9233_v4 = vld [vmem:[%s9388_s3] sm:$0x7] }
 0x5a4   :  { %v4689_v10 = vadd.f32 %v9013_v33, %v4624_v1  ;;  %v4626_v19 = vpop.f32.mrb[29].mxu0  ;;  %v5187_v54 = vadd.f32 %v5186_v18, %v5163_v48 }
 0x5a5   :  { %v5177_v26 = vadd.f32 %v5176_v17, %v5175_v38  ;;  %v4627_v46 = vpop.f32.mrb[30].mxu0  ;;  %v5116_v44 = vadd.f32 %v5115_v53, %v5114_v42 }
 0x5a6   :  { %v4753_v8 = vadd.f32 %v9029_v29, %v4689_v10  ;;  %v4628_v9 = vpop.f32.mrb[31].mxu0  ;;  %v5188_v6 = vadd.f32 %v5187_v54, %v5166_v41  ;;  %v9241_v41 = vld [vmem:[%s9389_s4] sm:$0x7] }
 0x5a7   :  { %v5178_v20 = vrot.slane %v5177_v26, 4 }
 0x5a8   :  { %v4817_v24 = vadd.f32 %v9036_v31, %v4753_v8  ;;  %v5190_v33 = vadd.f32 %v5189_v55, %v5188_v6  ;;  %v5227_v31 = vlaneseq }
 0x5a9   :  { %v5179_v34 = vadd.f32 %v5178_v20, %v5177_v26 }
 0x5aa   :  { %v4881_v62 = vadd.f32 %v9038_v7, %v4817_v24  ;;  %v5191_v22 = vrot.slane %v5190_v33, 4  ;;  %v9225_v48 = vshrl.u32 %v5227_v31, 7 }
 0x5ab   :  { %v5180_v13 = vrot.slane %v5179_v34, 2 }
 0x5ac   :  { %v4945_v51 = vadd.f32 %v9040_v25, %v4881_v62  ;;  %v5192_v12 = vadd.f32 %v5191_v22, %v5190_v33  ;;  %v5233_v26 = vsub.s32 1, %v9225_v48 }
 0x5ad   :  { %v5181_v60 = vadd.f32 %v5180_v13, %v5179_v34 }
 0x5ae   :  { %v5009_v29 = vadd.f32 %v9054_v21, %v4945_v51  ;;  %v5193_v2 = vrot.slane %v5192_v12, 2  ;;  %v5234_v20 = vrot.slane %v9233_v4, %v5233_v26 }
 0x5af   :  { %v5182_v3 = vrot.slane %v5181_v60, 1 }
 0x5b0   :  { %v5073_v28 = vadd.f32 %v9062_v58, %v5009_v29  ;;  %v5194_v39 = vadd.f32 %v5193_v2, %v5192_v12  ;;  %v9228_v58 = vsub.s32 0, %v9225_v48 }
 0x5b1   :  { %v5183_v30 = vadd.f32 %v5182_v3, %v5181_v60 }
 0x5b2   :  { %v5118_v32 = vsel %vm5117_vm3, %v5073_v28, 0.0  ;;  %v5195_v7 = vrot.slane %v5194_v39, 1  ;;  %v5230_v19 = vrot.slane %v9233_v4, %v9228_v58  ;;  %v5283_v9 = vrot.slane %v9241_v41, %v9228_v58 }
 0x5b3   :  { %v5216_v11 = vmul.f32 0.020408163, %v5183_v30  ;;  %v5119_v36 = vadd.f32 %v5118_v32, %v5116_v44 }
 0x5b4   :  { %v5196_v17 = vadd.f32 %v5195_v7, %v5194_v39 }
 0x5b5   :  { %v5219_v38 = vadd.f32 0.001, %v5216_v11  ;;  %v5120_v25 = vrot.slane %v5119_v36, 4 }
 0x5b6   :  { %v5217_v21 = vmul.f32 0.020408163, %v5196_v17 }
 0x5b7   :  { %6287 = vrsqrt.f32 %v5219_v38  ;;  %v5121_v18 = vadd.f32 %v5120_v25, %v5119_v36 }
 0x5b8   :  { %v5220_v1 = vadd.f32 0.001, %v5217_v21 }
 0x5b9   :  { %v5122_v59 = vrot.slane %v5121_v18, 2 }
 0x5ba   :  { %6289 = vrsqrt.f32 %v5220_v1 }
 0x5bb   :  { %v5123_v53 = vadd.f32 %v5122_v59, %v5121_v18 }
 0x5bd   :  { %v5124_v10 = vrot.slane %v5123_v53, 1 }
 0x5bf   :  { %v5125_v54 = vadd.f32 %v5124_v10, %v5123_v53 }
 0x5c1   :  { %v6288_v42 = vpop.eup %6287  ;;  %v5128_v46 = vmul.f32 0.020408163, %v5125_v54 }
 0x5c2   :  { %v5242_v8 = vmul.f32 %v6288_v42, %v5230_v19 }
 0x5c3   :  { %v9247_v6 = vsub.f32 %v9115_v47, %v5128_v46  ;;  %v9250_v44 = vsub.f32 %v9119_v14, %v5128_v46  ;;  %v9253_v55 = vsub.f32 %v9127_v35, %v5128_v46  ;;  %v9256_v24 = vsub.f32 %v9189_v50, %v5128_v46 }
 0x5c4   :  { %v5248_v34 = vrot.slane %v5242_v8, %v9228_v58  ;;  %v9260_v33 = vsub.f32 %v9200_v0, %v5128_v46  ;;  %v9263_v62 = vsub.f32 %v9203_v43, %v5128_v46  ;;  %v9265_v13 = vsub.f32 %v5073_v28, %v5128_v46  ;;  %v6290_v47 = vpop.eup %6289 }
 0x5c5   :  { %v5287_v14 = vrot.slane %v9241_v41, %v5233_v26  ;;  %v5152_v35 = vmul.f32 %v9247_v6, %v9247_v6  ;;  %v5155_v50 = vmul.f32 %v9250_v44, %v9250_v44  ;;  %v5243_v3 = vmul.f32 %v6290_v47, %v5234_v20 }
 0x5c6   :  { %v5257_v22 = vmul.f32 %v5248_v34, %v9131_v27  ;;  %v5260_v51 = vmul.f32 %v5248_v34, %v9134_v15  ;;  %v5263_v0 = vmul.f32 %v5248_v34, %v9137_v49  ;;  %v5266_v43 = vmul.f32 %v5248_v34, %v9140_v57 }
 0x5c7   :  { %v5269_v60 = vmul.f32 %v5248_v34, %v9142_v52  ;;  %v5272_v12 = vmul.f32 %v5248_v34, %v9144_v61  ;;  %v5275_v29 = vmul.f32 %v5248_v34, %v9146_v56  ;;  %v5252_v15 = vrot.slane %v5243_v3, %v9228_v58 }
 0x5c8   :  { %v5295_v2 = vadd.f32 %v5283_v9, %v5257_v22  ;;  %v5298_v28 = vadd.f32 %v5283_v9, %v5260_v51  ;;  %v5301_v30 = vadd.f32 %v5283_v9, %v5263_v0  ;;  %v5304_v39 = vadd.f32 %v5283_v9, %v5266_v43 }
 0x5c9   :  { %v5307_v31 = vadd.f32 %v5283_v9, %v5269_v60  ;;  %v5310_v32 = vadd.f32 %v5283_v9, %v5272_v12  ;;  %v5313_v27 = vadd.f32 %v5283_v9, %v5275_v29  ;;  %v5158_v49 = vmul.f32 %v9253_v55, %v9253_v55 }
 0x5ca   :  { %5316 = vst [vmem:[%s9390_s5] sm:$0xff] %v5295_v2  ;;  %5319 = vst [vmem:[%s9390_s5 + $0x18] sm:$0xff] %v5298_v28  ;;  %v5161_v57 = vmul.f32 %v9256_v24, %v9256_v24  ;;  %v5197_v52 = vsel %vm5105_vm2, %v5152_v35, 0.0  ;;  %v5258_v61 = vmul.f32 %v5252_v15, %v9149_v63  ;;  %v5261_v56 = vmul.f32 %v5252_v15, %v9158_v45 }
 0x5cb   :  { %5322 = vst [vmem:[%s9390_s5 + $0x30] sm:$0xff] %v5301_v30  ;;  %5325 = vst [vmem:[%s9390_s5 + $0x48] sm:$0xff] %v5304_v39  ;;  %v5264_v11 = vmul.f32 %v5252_v15, %v9161_v37  ;;  %v5267_v7 = vmul.f32 %v5252_v15, %v9164_v40  ;;  %v5270_v36 = vmul.f32 %v5252_v15, %v9167_v23  ;;  %v5198_v25 = vsel %vm5105_vm2, %v5155_v50, 0.0 }
 0x5cc   :  { %5328 = vst [vmem:[%s9390_s5 + $0x60] sm:$0xff] %v5307_v31  ;;  %5331 = vst [vmem:[%s9390_s5 + $0x78] sm:$0xff] %v5310_v32  ;;  %v5273_v38 = vmul.f32 %v5252_v15, %v9170_v16  ;;  %v5276_v17 = vmul.f32 %v5252_v15, %v9172_v5  ;;  %v5296_v21 = vadd.f32 %v5287_v14, %v5258_v61  ;;  %v5200_v40 = vsel %vm5105_vm2, %v5158_v49, 0.0 }
 0x5cd   :  { %5334 = vst [vmem:[%s9390_s5 + $0x90] sm:$0x1] %v5313_v27  ;;  %v5299_v18 = vadd.f32 %v5287_v14, %v5261_v56  ;;  %v5302_v1 = vadd.f32 %v5287_v14, %v5264_v11  ;;  %v5305_v59 = vadd.f32 %v5287_v14, %v5267_v7  ;;  %v5308_v53 = vadd.f32 %v5287_v14, %v5270_v36 }
 0x5ce   :  { %v5311_v63 = vadd.f32 %v5287_v14, %v5273_v38  ;;  %v5314_v10 = vadd.f32 %v5287_v14, %v5276_v17  ;;  %v5199_v45 = vadd.f32 %v5198_v25, %v5197_v52  ;;  %5317 = vst [vmem:[%s9390_s5 + $0x8] sm:$0xff] %v5296_v21  ;;  %v5164_v37 = vmul.f32 %v9260_v33, %v9260_v33 }
 0x5cf   :  { %5320 = vst [vmem:[%s9390_s5 + $0x20] sm:$0xff] %v5299_v18  ;;  %5323 = vst [vmem:[%s9390_s5 + $0x38] sm:$0xff] %v5302_v1  ;;  %v5167_v16 = vmul.f32 %v9263_v62, %v9263_v62  ;;  %v5202_v5 = vsel %vm5105_vm2, %v5161_v57, 0.0  ;;  %v5170_v26 = vmul.f32 %v9265_v13, %v9265_v13  ;;  %v5237_v43 = vsub.s32 2, %v9225_v48 }
 0x5d0   :  { %5326 = vst [vmem:[%s9390_s5 + $0x50] sm:$0xff] %v5305_v59  ;;  %5329 = vst [vmem:[%s9390_s5 + $0x68] sm:$0xff] %v5308_v53  ;;  %v5201_v23 = vadd.f32 %v5200_v40, %v5199_v45  ;;  %v5204_v54 = vsel %vm5105_vm2, %v5164_v37, 0.0 }
 0x5d1   :  { %5332 = vst [vmem:[%s9390_s5 + $0x80] sm:$0xff] %v5311_v63  ;;  %5335 = vst [vmem:[%s9390_s5 + $0x98] sm:$0x1] %v5314_v10  ;;  %v5206_v46 = vsel %vm5105_vm2, %v5167_v16, 0.0  ;;  %v5208_v9 = vsel %vm5117_vm3, %v5170_v26, 0.0  ;;  %v5238_v60 = vrot.slane %v9233_v4, %v5237_v43  ;;  %v5291_v3 = vrot.slane %v9241_v41, %v5237_v43 }
 0x5d2   :  { %v5203_v19 = vadd.f32 %v5202_v5, %v5201_v23 }
 0x5d4   :  { %v5205_v42 = vadd.f32 %v5204_v54, %v5203_v19 }
 0x5d6   :  { %v5207_v8 = vadd.f32 %v5206_v46, %v5205_v42 }
 0x5d8   :  { %v5209_v20 = vadd.f32 %v5208_v9, %v5207_v8 }
 0x5da   :  { %v5210_v34 = vrot.slane %v5209_v20, 4 }
 0x5dc   :  { %v5211_v47 = vadd.f32 %v5210_v34, %v5209_v20 }
 0x5de   :  { %v5212_v14 = vrot.slane %v5211_v47, 2 }
 0x5e0   :  { %v5213_v35 = vadd.f32 %v5212_v14, %v5211_v47 }
 0x5e2   :  { %v5214_v50 = vrot.slane %v5213_v35, 1 }
 0x5e4   :  { %v5215_v22 = vadd.f32 %v5214_v50, %v5213_v35 }
 0x5e6   :  { %v5218_v51 = vmul.f32 0.020408163, %v5215_v22 }
 0x5e8   :  { %v5221_v0 = vadd.f32 0.001, %v5218_v51 }
 0x5ea   :  { %6291 = vrsqrt.f32 %v5221_v0 }
 0x5f4   :  { %v6292_v12 = vpop.eup %6291 }
 0x5f5   :  { %v5244_v29 = vmul.f32 %v6292_v12, %v5238_v60 }
 0x5f7   :  { %v5256_v2 = vrot.slane %v5244_v29, %v9228_v58 }
 0x5f9   :  { %v5259_v28 = vmul.f32 %v5256_v2, %v9247_v6  ;;  %v5262_v30 = vmul.f32 %v5256_v2, %v9250_v44  ;;  %v5265_v39 = vmul.f32 %v5256_v2, %v9253_v55  ;;  %v5268_v31 = vmul.f32 %v5256_v2, %v9256_v24 }
 0x5fa   :  { %v5271_v32 = vmul.f32 %v5256_v2, %v9260_v33  ;;  %v5274_v48 = vmul.f32 %v5256_v2, %v9263_v62  ;;  %v5277_v4 = vmul.f32 %v5256_v2, %v9265_v13 }
 0x5fb   :  { %v5297_v27 = vadd.f32 %v5291_v3, %v5259_v28  ;;  %v5300_v15 = vadd.f32 %v5291_v3, %v5262_v30  ;;  %v5303_v49 = vadd.f32 %v5291_v3, %v5265_v39  ;;  %v5306_v41 = vadd.f32 %v5291_v3, %v5268_v31 }
 0x5fc   :  { %v5309_v57 = vadd.f32 %v5291_v3, %v5271_v32  ;;  %v5312_v58 = vadd.f32 %v5291_v3, %v5274_v48  ;;  %v5315_v52 = vadd.f32 %v5291_v3, %v5277_v4 }
 0x5fd   :  { %5318 = vst.msk [vmem:[%s9390_s5 + $0x10] sm:$0xff] %vm5105_vm2, %v5297_v27  ;;  %5321 = vst.msk [vmem:[%s9390_s5 + $0x28] sm:$0xff] %vm5105_vm2, %v5300_v15 }
 0x5fe   :  { %5324 = vst.msk [vmem:[%s9390_s5 + $0x40] sm:$0xff] %vm5105_vm2, %v5303_v49  ;;  %5327 = vst.msk [vmem:[%s9390_s5 + $0x58] sm:$0xff] %vm5105_vm2, %v5306_v41 }
 0x5ff   :  { %5330 = vst.msk [vmem:[%s9390_s5 + $0x70] sm:$0xff] %vm5105_vm2, %v5309_v57  ;;  %5333 = vst.msk [vmem:[%s9390_s5 + $0x88] sm:$0xff] %vm5105_vm2, %v5312_v58 }
 0x600   :  { %5336 = vst.msk [vmem:[%s9390_s5 + $0xa0] sm:$0x1] %vm5117_vm3, %v5315_v52 }

</bundles_post_ra>
